<compile_context>
chip_gen: v5e
topology: v5e:2x2
jax: 0.10.0
libtpu: 0.0.40
codegen_flags: <defaults>
</compile_context>

<pallas_src>
import jax
import jax.numpy as jnp
from jax.experimental import pallas as pl
from jax.experimental.pallas import tpu as pltpu


def _net_kernel(
    xyz_ref,             # (TM, 8)   [x, y, z, 1, 0, 0, 0, 0]
    w1_ref,              # (8, 4H)   layer-1 weights, biases folded into row 3
    w2_ref, b2_ref,      # (4H, 4H), (1, 4H)
    w3_ref, b3_ref,      # (4H, 4H), (1, 4H)
    w4_ref, b4_ref,      # (4H, 1),  (1, 1)
    o_ref,               # (TM, 1)
):
    f32 = jnp.float32

    # layer 1: U1 = [u1_1 | u1_2 | u1_3 | u1_4]   (TM, 4H)
    u1 = jnp.tanh(jnp.dot(xyz_ref[...], w1_ref[...], preferred_element_type=f32))

    # layer 2 (packed block matmul): U2 = [u2_1 | u2_2 | u2_3 | u2_4]
    u2 = jnp.tanh(
        jnp.dot(u1, w2_ref[...], preferred_element_type=f32) + b2_ref[...]
    )

    # layer 3 (signs folded into W3, biases pre-combined): result IS
    # u34 = cat([u3_1, u3_2], dim=1)   (TM, 4H)
    u34 = jnp.tanh(
        jnp.dot(u2, w3_ref[...], preferred_element_type=f32) + b3_ref[...]
    )

    # layer 4: plain matvec, (TM, 4H) @ (4H, 1) -> (TM, 1).  No transpose.
    u = jnp.dot(u34, w4_ref[...], preferred_element_type=f32) + b4_ref[...]
    o_ref[...] = u.astype(o_ref.dtype)


def pack_params(params):
    """Pack the 14 Linear layers into 4 dense matmul operands (call once)."""
    p = params
    H = p["w11"].shape[1]
    f32 = jnp.float32
    ZH = jnp.zeros((H, H), f32)
    Z2H = jnp.zeros((H, 2 * H), f32)

    # layer 1 (bias folded via the constant-1 input column)
    W1 = jnp.concatenate(
        [
            jnp.concatenate([p["w11"], p["w11"], p["w12"], p["w12"]], axis=1),
            jnp.concatenate([p["w13"], -p["w13"], p["w14"], -p["w14"]], axis=1),
            jnp.concatenate([p["w15"], p["w15"], p["w16"], p["w16"]], axis=1),
            jnp.concatenate([p["b11"], p["b11"], p["b12"], p["b12"]], axis=1),
            jnp.zeros((4, 4 * H), f32),
        ],
        axis=0,
    )                                                              # (8, 4H)

    # layer 2 block matrix + combined bias
    W2 = jnp.concatenate(
        [
            jnp.concatenate([p["w21"], p["w23"], ZH, ZH], axis=1),
            jnp.concatenate([p["w23"], p["w21"], ZH, ZH], axis=1),
            jnp.concatenate([ZH, ZH, p["w22"], p["w24"]], axis=1),
            jnp.concatenate([ZH, ZH, p["w24"], p["w22"]], axis=1),
        ],
        axis=0,
    )                                                              # (4H, 4H)
    b2a = p["b21"] + p["b23"]
    b2b = p["b22"] + p["b24"]
    B2 = jnp.concatenate([b2a, b2a, b2b, b2b], axis=1)             # (1, 4H)

    # layer 3: b31 cancels, b32 doubles, signs folded in
    W3 = jnp.concatenate(
        [
            jnp.concatenate([p["w31"], Z2H], axis=1),
            jnp.concatenate([-p["w31"], Z2H], axis=1),
            jnp.concatenate([Z2H, p["w32"]], axis=1),
            jnp.concatenate([Z2H, p["w32"]], axis=1),
        ],
        axis=0,
    )                                                              # (4H, 4H)
    B3 = jnp.concatenate([jnp.zeros((1, 2 * H), f32), 2.0 * p["b32"]], axis=1)

    W4 = p["w41"]                                                  # (4H, 1)
    B4 = p["b41"]                                                  # (1, 1)
    return dict(W1=W1, W2=W2, B2=B2, W3=W3, B3=B3, W4=W4, B4=B4)


def _choose_tm(N):
    """Grid = 1 on single-TC chips (v5e/v6e); even grid >= 2 on v7x."""
    try:
        kind = jax.devices()[0].device_kind.lower()
    except Exception:  # pragma: no cover - defensive
        kind = ""
    two_tensorcores = "7" in kind  # v7x: 2 TensorCores/chip share the grid
    if two_tensorcores and N >= 512:
        g = max(2, pl.cdiv(N, 2048))
        if g % 2:
            g += 1
        return pl.cdiv(N, g)
    # single TensorCore: one big tile amortizes the ~0.35us/step overhead
    return min(N, 4096)


def net_forward(x, y, z, params=None, *, packed=None, tm=None):
    """Pallas forward.  x, y, z: (N, 1) float32.  Returns (N, 1) float32."""
    if packed is None:
        packed = pack_params(params)
    N = x.shape[0]
    f32 = jnp.float32

    if tm is None:
        tm = _choose_tm(N)
    tm = max(8, min(tm, N))
    tm = ((tm + 7) // 8) * 8          # sublane alignment for the (tm, 1) block
    G = pl.cdiv(N, tm)
    Np = G * tm

    # merged input stream (N, 8) = [x, y, z, 1, 0, 0, 0, 0]
    xyz = jnp.concatenate(
        [x, y, z, jnp.ones((N, 1), f32), jnp.zeros((N, 4), f32)], axis=1
    )
    if Np > N:
        xyz = jnp.pad(xyz, ((0, Np - N), (0, 0)))

    weights = [packed["W1"], packed["W2"], packed["B2"],
               packed["W3"], packed["B3"], packed["W4"], packed["B4"]]

    def full_spec(arr):
        nd = arr.ndim
        return pl.BlockSpec(arr.shape, lambda i, _nd=nd: (0,) * _nd)

    out = pl.pallas_call(
        _net_kernel,
        out_shape=jax.ShapeDtypeStruct((Np, 1), f32),
        grid_spec=pltpu.PrefetchScalarGridSpec(
            num_scalar_prefetch=0,
            grid=(G,),
            in_specs=[pl.BlockSpec((tm, 8), lambda i: (i, 0))]
            + [full_spec(w) for w in weights],
            out_specs=pl.BlockSpec((tm, 1), lambda i: (i, 0)),
        ),
        compiler_params=pltpu.CompilerParams(
            dimension_semantics=("parallel",),
        ),
    )(xyz, *weights)

    return out[:N]


def init_params(key, node_num):
    """Deterministic synthetic init (PyTorch-like uniform fan-in bound)."""
    H = node_num
    shapes = {
        # Linear(1, H): weight stored transposed as (1, H); bias as (1, H)
        "w11": (1, H), "b11": (1, H),
        "w12": (1, H), "b12": (1, H),
        "w13": (1, H), "w14": (1, H), "w15": (1, H), "w16": (1, H),
        # Linear(H, H): weight (H, H) [already (in, out)]; bias (1, H)
        "w21": (H, H), "b21": (1, H),
        "w22": (H, H), "b22": (1, H),
        "w23": (H, H), "b23": (1, H),
        "w24": (H, H), "b24": (1, H),
        # Linear(H, 2H)
        "w31": (H, 2 * H), "b31": (1, 2 * H),
        "w32": (H, 2 * H), "b32": (1, 2 * H),
        # Linear(4H, 1)
        "w41": (4 * H, 1), "b41": (1, 1),
    }
    fan_in = {
        "w11": 1, "b11": 1, "w12": 1, "b12": 1,
        "w13": 1, "w14": 1, "w15": 1, "w16": 1,
        "w21": H, "b21": H, "w22": H, "b22": H,
        "w23": H, "b23": H, "w24": H, "b24": H,
        "w31": H, "b31": H, "w32": H, "b32": H,
        "w41": 4 * H, "b41": 4 * H,
    }
    params = {}
    keys = jax.random.split(key, len(shapes))
    for k, (name, shp) in zip(keys, sorted(shapes.items())):
        bound = 1.0 / jnp.sqrt(jnp.float32(fan_in[name]))
        params[name] = jax.random.uniform(
            k, shp, dtype=jnp.float32, minval=-bound, maxval=bound
        )
    return params


def net_forward_ref(x, y, z, p):
    """Pure-JAX reference mirroring the PyTorch forward exactly."""
    a = x * p["w11"] + p["b11"]
    d = x * p["w12"] + p["b12"]
    b = y * p["w13"]
    e = y * p["w14"]
    c = z * p["w15"]
    f = z * p["w16"]
    u1_1 = jnp.tanh(a + b + c)
    u1_2 = jnp.tanh(a - b + c)
    u1_3 = jnp.tanh(d + e + f)
    u1_4 = jnp.tanh(d - e + f)

    def lin(u, w, bb):
        return u @ w + bb

    u2_1 = jnp.tanh(lin(u1_1, p["w21"], p["b21"]) + lin(u1_2, p["w23"], p["b23"]))
    u2_2 = jnp.tanh(lin(u1_1, p["w23"], p["b23"]) + lin(u1_2, p["w21"], p["b21"]))
    u2_3 = jnp.tanh(lin(u1_3, p["w22"], p["b22"]) + lin(u1_4, p["w24"], p["b24"]))
    u2_4 = jnp.tanh(lin(u1_3, p["w24"], p["b24"]) + lin(u1_4, p["w22"], p["b22"]))
    u3_1 = jnp.tanh(lin(u2_1, p["w31"], p["b31"]) - lin(u2_2, p["w31"], p["b31"]))
    u3_2 = jnp.tanh(lin(u2_3, p["w32"], p["b32"]) + lin(u2_4, p["w32"], p["b32"]))
    u34 = jnp.concatenate([u3_1, u3_2], axis=1)
    return u34 @ p["w41"] + p["b41"]


if __name__ == "__main__":
    NODE_NUM = 32     # hidden width H  -> packed width 4H = 128
    N = 1024          # collocation points (batch)

    key = jax.random.PRNGKey(0)
    kx, ky, kz, kp = jax.random.split(key, 4)
    x = jax.random.normal(kx, (N, 1), dtype=jnp.float32)
    y = jax.random.normal(ky, (N, 1), dtype=jnp.float32)
    z = jax.random.normal(kz, (N, 1), dtype=jnp.float32)
    params = init_params(kp, NODE_NUM)

    packed = pack_params(params)   # hoisted: done once per parameter set
    u = jax.block_until_ready(net_forward(x, y, z, packed=packed))
    u_ref = jax.block_until_ready(net_forward_ref(x, y, z, params))

    assert u.shape == (N, 1)
    err = float(jnp.max(jnp.abs(u - u_ref)))
    assert jnp.allclose(u, u_ref, atol=1e-4, rtol=1e-4), f"mismatch vs reference: {err}"

    print("KERNEL_OK")
</pallas_src>

<mosaic_0001>
module attributes {stable_mosaic.version = 11 : i64} {
  func.func @_net_kernel(%arg0: i32, %arg1: memref<1024x8xf32, #tpu.memory_space<vmem>>, %arg2: memref<8x128xf32, #tpu.memory_space<vmem>>, %arg3: memref<128x128xf32, #tpu.memory_space<vmem>>, %arg4: memref<1x128xf32, #tpu.memory_space<vmem>>, %arg5: memref<128x128xf32, #tpu.memory_space<vmem>>, %arg6: memref<1x128xf32, #tpu.memory_space<vmem>>, %arg7: memref<128x1xf32, #tpu.memory_space<vmem>>, %arg8: memref<1x1xf32, #tpu.memory_space<vmem>>, %arg9: memref<1024x1xf32, #tpu.memory_space<vmem>>) attributes {dimension_semantics = [#tpu.dimension_semantics<parallel>], iteration_bounds = array<i64: 1>, scalar_prefetch = 0 : i64, scratch_operands = 0 : i64, tpu.core_type = #tpu.core_type<tc>, window_params = [{transform_indices = @transform_0, window_bounds = array<i64: 1024, 8>}, {pipeline_mode = #tpu.pipeline_mode<synchronous>, transform_indices = @transform_1, window_bounds = array<i64: 8, 128>}, {pipeline_mode = #tpu.pipeline_mode<synchronous>, transform_indices = @transform_2, window_bounds = array<i64: 128, 128>}, {pipeline_mode = #tpu.pipeline_mode<synchronous>, transform_indices = @transform_3, window_bounds = array<i64: 1, 128>}, {pipeline_mode = #tpu.pipeline_mode<synchronous>, transform_indices = @transform_4, window_bounds = array<i64: 128, 128>}, {pipeline_mode = #tpu.pipeline_mode<synchronous>, transform_indices = @transform_5, window_bounds = array<i64: 1, 128>}, {pipeline_mode = #tpu.pipeline_mode<synchronous>, transform_indices = @transform_6, window_bounds = array<i64: 128, 1>}, {pipeline_mode = #tpu.pipeline_mode<synchronous>, transform_indices = @transform_7, window_bounds = array<i64: 1, 1>}, {transform_indices = @transform_8, window_bounds = array<i64: 1024, 1>}]} {
    %c0 = arith.constant 0 : index
    %c0_0 = arith.constant 0 : index
    %0 = vector.load %arg1[%c0, %c0_0] : memref<1024x8xf32, #tpu.memory_space<vmem>>, vector<1024x8xf32>
    %c0_1 = arith.constant 0 : index
    %c0_2 = arith.constant 0 : index
    %1 = vector.load %arg2[%c0_1, %c0_2] : memref<8x128xf32, #tpu.memory_space<vmem>>, vector<8x128xf32>
    %cst = arith.constant dense<0.000000e+00> : vector<1024x128xf32>
    %2 = tpu.matmul %0, %1, %cst {dimension_numbers = #tpu.dot_dimension_numbers<[1], [0], [0], [1], [0, 0, 1, 1], [], []>} : vector<1024x8xf32>, vector<8x128xf32>, vector<1024x128xf32> -> vector<1024x128xf32>
    %3 = math.tanh %2 : vector<1024x128xf32>
    %c0_3 = arith.constant 0 : index
    %c0_4 = arith.constant 0 : index
    %4 = vector.load %arg3[%c0_3, %c0_4] : memref<128x128xf32, #tpu.memory_space<vmem>>, vector<128x128xf32>
    %cst_5 = arith.constant dense<0.000000e+00> : vector<1024x128xf32>
    %5 = tpu.matmul %3, %4, %cst_5 {dimension_numbers = #tpu.dot_dimension_numbers<[1], [0], [0], [1], [0, 0, 1, 1], [], []>} : vector<1024x128xf32>, vector<128x128xf32>, vector<1024x128xf32> -> vector<1024x128xf32>
    %c0_6 = arith.constant 0 : index
    %c0_7 = arith.constant 0 : index
    %6 = vector.load %arg4[%c0_6, %c0_7] : memref<1x128xf32, #tpu.memory_space<vmem>>, vector<1x128xf32>
    %7 = vector.broadcast %6 : vector<1x128xf32> to vector<1024x128xf32>
    %8 = arith.addf %5, %7 : vector<1024x128xf32>
    %9 = math.tanh %8 : vector<1024x128xf32>
    %c0_8 = arith.constant 0 : index
    %c0_9 = arith.constant 0 : index
    %10 = vector.load %arg5[%c0_8, %c0_9] : memref<128x128xf32, #tpu.memory_space<vmem>>, vector<128x128xf32>
    %cst_10 = arith.constant dense<0.000000e+00> : vector<1024x128xf32>
    %11 = tpu.matmul %9, %10, %cst_10 {dimension_numbers = #tpu.dot_dimension_numbers<[1], [0], [0], [1], [0, 0, 1, 1], [], []>} : vector<1024x128xf32>, vector<128x128xf32>, vector<1024x128xf32> -> vector<1024x128xf32>
    %c0_11 = arith.constant 0 : index
    %c0_12 = arith.constant 0 : index
    %12 = vector.load %arg6[%c0_11, %c0_12] : memref<1x128xf32, #tpu.memory_space<vmem>>, vector<1x128xf32>
    %13 = vector.broadcast %12 : vector<1x128xf32> to vector<1024x128xf32>
    %14 = arith.addf %11, %13 : vector<1024x128xf32>
    %15 = math.tanh %14 : vector<1024x128xf32>
    %c0_13 = arith.constant 0 : index
    %c0_14 = arith.constant 0 : index
    %16 = vector.load %arg7[%c0_13, %c0_14] : memref<128x1xf32, #tpu.memory_space<vmem>>, vector<128x1xf32>
    %cst_15 = arith.constant dense<0.000000e+00> : vector<1024x1xf32>
    %17 = tpu.matmul %15, %16, %cst_15 {dimension_numbers = #tpu.dot_dimension_numbers<[1], [0], [0], [1], [0, 0, 1, 1], [], []>} : vector<1024x128xf32>, vector<128x1xf32>, vector<1024x1xf32> -> vector<1024x1xf32>
    %c0_16 = arith.constant 0 : index
    %c0_17 = arith.constant 0 : index
    %18 = vector.load %arg8[%c0_16, %c0_17] : memref<1x1xf32, #tpu.memory_space<vmem>>, vector<1x1xf32>
    %19 = vector.broadcast %18 : vector<1x1xf32> to vector<1024x1xf32>
    %20 = arith.addf %17, %19 : vector<1024x1xf32>
    %c0_18 = arith.constant 0 : index
    %c0_19 = arith.constant 0 : index
    %21 = vector.load %arg9[%c0_18, %c0_19] : memref<1024x1xf32, #tpu.memory_space<vmem>>, vector<1024x1xf32>
    tpu.vector_store %arg9[%c0_18, %c0_19], %20 {strides = array<i32>} : memref<1024x1xf32, #tpu.memory_space<vmem>>, vector<1024x1xf32>,
    return
  }
  func.func @transform_0(%arg0: i32) -> (i32, i32) {
    %c0_i32 = arith.constant 0 : i32
    %c0_i32_0 = arith.constant 0 : i32
    return %arg0, %c0_i32 : i32, i32
  }
  func.func @transform_1(%arg0: i32) -> (i32, i32) {
    %c0_i32 = arith.constant 0 : i32
    %c0_i32_0 = arith.constant 0 : i32
    %c0_i32_1 = arith.constant 0 : i32
    return %c0_i32, %c0_i32_0 : i32, i32
  }
  func.func @transform_2(%arg0: i32) -> (i32, i32) {
    %c0_i32 = arith.constant 0 : i32
    %c0_i32_0 = arith.constant 0 : i32
    %c0_i32_1 = arith.constant 0 : i32
    return %c0_i32, %c0_i32_0 : i32, i32
  }
  func.func @transform_3(%arg0: i32) -> (i32, i32) {
    %c0_i32 = arith.constant 0 : i32
    %c0_i32_0 = arith.constant 0 : i32
    %c0_i32_1 = arith.constant 0 : i32
    return %c0_i32, %c0_i32_0 : i32, i32
  }
  func.func @transform_4(%arg0: i32) -> (i32, i32) {
    %c0_i32 = arith.constant 0 : i32
    %c0_i32_0 = arith.constant 0 : i32
    %c0_i32_1 = arith.constant 0 : i32
    return %c0_i32, %c0_i32_0 : i32, i32
  }
  func.func @transform_5(%arg0: i32) -> (i32, i32) {
    %c0_i32 = arith.constant 0 : i32
    %c0_i32_0 = arith.constant 0 : i32
    %c0_i32_1 = arith.constant 0 : i32
    return %c0_i32, %c0_i32_0 : i32, i32
  }
  func.func @transform_6(%arg0: i32) -> (i32, i32) {
    %c0_i32 = arith.constant 0 : i32
    %c0_i32_0 = arith.constant 0 : i32
    %c0_i32_1 = arith.constant 0 : i32
    return %c0_i32, %c0_i32_0 : i32, i32
  }
  func.func @transform_7(%arg0: i32) -> (i32, i32) {
    %c0_i32 = arith.constant 0 : i32
    %c0_i32_0 = arith.constant 0 : i32
    %c0_i32_1 = arith.constant 0 : i32
    return %c0_i32, %c0_i32_0 : i32, i32
  }
  func.func @transform_8(%arg0: i32) -> (i32, i32) {
    %c0_i32 = arith.constant 0 : i32
    %c0_i32_0 = arith.constant 0 : i32
    return %arg0, %c0_i32 : i32, i32
  }
}

</mosaic_0001>

<bundles_post_ra>
// kernel: tpu_custom_call.1
= control target key start
LH: loop header
LB: loop body
LE: loop exit
PB: predicated region body
PF: predicated region fallthrough
CT: control target
= control target key end

     0   :  { %vm160_vm0 = vcmask 64512   ;;  %vm2593_vm1 = vcmask 7168   ;;  %s5616_s1 = inlined_call_operand.vmem [shape: f32[8,128], index: 1, kind: input, shape index: {}]   ;;  %s5617_s0 = inlined_call_operand.vmem [shape: f32[1024,8], index: 0, kind: input, shape index: {}]   ;;  %s5618_s2 = inlined_call_operand.vmem [shape: f32[128,128], index: 2, kind: input, shape index: {}]   ;;  %s5619_s3 = inlined_call_operand.vmem [shape: f32[1,128], index: 3, kind: input, shape index: {}]   ;;  %s5620_s4 = inlined_call_operand.vmem [shape: f32[128,128], index: 4, kind: input, shape index: {}]   ;;  %s5621_s5 = inlined_call_operand.vmem [shape: f32[1,128], index: 5, kind: input, shape index: {}]   ;;  %s5622_s6 = inlined_call_operand.vmem [shape: f32[128,1], index: 6, kind: input, shape index: {}]   ;;  %s5623_s7 = inlined_call_operand.<no memory space> [shape: f32[1,1], index: 7, kind: input, shape index: {}]   ;;  %s5624_s8 = inlined_call_operand.vmem [shape: f32[1024,1], index: 8, kind: output, shape index: {}]  }
   0x1   :  { %v159_v0 = vld [vmem:[%s5616_s1] sm:$0xff]  ;;  %v1089_v2 = vld [vmem:[%s5618_s2 + $0x78] sm:$0xff]  ;;  %v32_v3 = vld [vmem:[%s5617_s0 + $0x8] sm:$0xff] }
   0x2   :  { %v31_v1 = vld [vmem:[%s5617_s0] sm:$0xff]  ;;  %560 = vmatpush.msra.mxu0 %v159_v0  ;;  %2854 = vmatpush.msra.mxu1 %v1089_v2  ;;  %v33_v4 = vld [vmem:[%s5617_s0 + $0x10] sm:$0xff]  ;;  %v34_v5 = vld [vmem:[%s5617_s0 + $0x18] sm:$0xff] }
   0x3   :  { %2726 = vmatmul.msk.f32.vlgmr.msra.gmra.mxu0 %vm160_vm0, %v31_v1  ;;  %v35_v6 = vld [vmem:[%s5617_s0 + $0x20] sm:$0xff]  ;;  %v1088_v7 = vld [vmem:[%s5618_s2 + $0x70] sm:$0xff]  ;;  %v36_v8 = vld [vmem:[%s5617_s0 + $0x28] sm:$0xff] }
   0x4   :  { %1094 = vmatpush.msrb.mxu0 %v1089_v2  ;;  %2855 = vmatpush.msra.mxu1 %v1088_v7  ;;  %v37_v9 = vld [vmem:[%s5617_s0 + $0x30] sm:$0xff]  ;;  %v38_v10 = vld [vmem:[%s5617_s0 + $0x38] sm:$0xff]  ;;  %v39_v11 = vld [vmem:[%s5617_s0 + $0x40] sm:$0xff] }
   0x5   :  { %v40_v12 = vld [vmem:[%s5617_s0 + $0x48] sm:$0xff]  ;;  %v41_v13 = vld [vmem:[%s5617_s0 + $0x50] sm:$0xff]  ;;  %v1086_v15 = vld [vmem:[%s5618_s2 + $0x60] sm:$0xff] }
   0x6   :  { %1095 = vmatpush.msrb.mxu0 %v1088_v7  ;;  %v1087_v14 = vld [vmem:[%s5618_s2 + $0x68] sm:$0xff]  ;;  %v1085_v16 = vld [vmem:[%s5618_s2 + $0x58] sm:$0xff]  ;;  %v1084_v18 = vld [vmem:[%s5618_s2 + $0x50] sm:$0xff] }
   0x7   :  { %2856 = vmatpush.msra.mxu1 %v1087_v14  ;;  %v42_v17 = vld [vmem:[%s5617_s0 + $0x58] sm:$0xff]  ;;  %v1083_v19 = vld [vmem:[%s5618_s2 + $0x48] sm:$0xff]  ;;  %v1082_v20 = vld [vmem:[%s5618_s2 + $0x40] sm:$0xff] }
   0x8   :  { %1096 = vmatpush.msrb.mxu0 %v1087_v14  ;;  %v43_v21 = vld [vmem:[%s5617_s0 + $0x60] sm:$0xff]  ;;  %v1081_v22 = vld [vmem:[%s5618_s2 + $0x38] sm:$0xff]  ;;  %v1080_v23 = vld [vmem:[%s5618_s2 + $0x30] sm:$0xff] }
   0x9   :  { %2857 = vmatpush.msra.mxu1 %v1086_v15  ;;  %v1079_v24 = vld [vmem:[%s5618_s2 + $0x28] sm:$0xff]  ;;  %v1078_v25 = vld [vmem:[%s5618_s2 + $0x20] sm:$0xff]  ;;  %v1077_v27 = vld [vmem:[%s5618_s2 + $0x18] sm:$0xff] }
   0xa   :  { %1097 = vmatpush.msrb.mxu0 %v1086_v15  ;;  %v44_v26 = vld [vmem:[%s5617_s0 + $0x68] sm:$0xff]  ;;  %v1076_v28 = vld [vmem:[%s5618_s2 + $0x10] sm:$0xff]  ;;  %v1074_v30 = vld [vmem:[%s5618_s2] sm:$0xff] }
   0xb   :  { %2727 = vmatmul.msk.f32.gmra.mxu0 %vm160_vm0, %v32_v3  ;;  %2858 = vmatpush.msra.mxu1 %v1085_v16  ;;  %v1075_v29 = vld [vmem:[%s5618_s2 + $0x8] sm:$0xff]  ;;  %v45_v31 = vld [vmem:[%s5617_s0 + $0x70] sm:$0xff]  ;;  %v46_v32 = vld [vmem:[%s5617_s0 + $0x78] sm:$0xff] }
   0xc   :  { %1098 = vmatpush.msrb.mxu0 %v1085_v16  ;;  %v47_v34 = vld [vmem:[%s5617_s0 + $0x80] sm:$0xff]  ;;  %v48_v36 = vld [vmem:[%s5617_s0 + $0x88] sm:$0xff]  ;;  %v49_v39 = vld [vmem:[%s5617_s0 + $0x90] sm:$0xff] }
   0xd   :  { %2859 = vmatpush.msra.mxu1 %v1084_v18  ;;  %v50_v42 = vld [vmem:[%s5617_s0 + $0x98] sm:$0xff]  ;;  %v51_v45 = vld [vmem:[%s5617_s0 + $0xa0] sm:$0xff]  ;;  %v52_v48 = vld [vmem:[%s5617_s0 + $0xa8] sm:$0xff] }
   0xe   :  { %1099 = vmatpush.msrb.mxu0 %v1084_v18  ;;  %v53_v51 = vld [vmem:[%s5617_s0 + $0xb0] sm:$0xff]  ;;  %v54_v54 = vld [vmem:[%s5617_s0 + $0xb8] sm:$0xff]  ;;  %v55_v57 = vld [vmem:[%s5617_s0 + $0xc0] sm:$0xff] }
   0xf   :  { %2860 = vmatpush.msra.mxu1 %v1083_v19  ;;  %v56_v60 = vld [vmem:[%s5617_s0 + $0xc8] sm:$0xff]  ;;  %v57_v63 = vld [vmem:[%s5617_s0 + $0xd0] sm:$0xff]  ;;  %v58_v2 = vld [vmem:[%s5617_s0 + $0xd8] sm:$0xff] }
  0x10   :  { %1100 = vmatpush.msrb.mxu0 %v1083_v19  ;;  %v62_v14 = vld [vmem:[%s5617_s0 + $0xf8] sm:$0xff] }
  0x11   :  { %2861 = vmatpush.msra.mxu1 %v1082_v20 }
  0x12   :  { %1101 = vmatpush.msrb.mxu0 %v1082_v20  ;;  %v64_v20 = vld [vmem:[%s5617_s0 + $0x108] sm:$0xff] }
  0x13   :  { %2728 = vmatmul.msk.f32.gmra.mxu0 %vm160_vm0, %v33_v4  ;;  %2862 = vmatpush.msra.mxu1 %v1081_v22 }
  0x14   :  { %1102 = vmatpush.msrb.mxu0 %v1081_v22 }
  0x15   :  { %2863 = vmatpush.msra.mxu1 %v1080_v23 }
  0x16   :  { %1103 = vmatpush.msrb.mxu0 %v1080_v23 }
  0x17   :  { %2864 = vmatpush.msra.mxu1 %v1079_v24 }
  0x18   :  { %1104 = vmatpush.msrb.mxu0 %v1079_v24  ;;  %v65_v24 = vld [vmem:[%s5617_s0 + $0x110] sm:$0xff] }
  0x19   :  { %2865 = vmatpush.msra.mxu1 %v1078_v25 }
  0x1a   :  { %1105 = vmatpush.msrb.mxu0 %v1078_v25 }
  0x1b   :  { %2729 = vmatmul.msk.f32.gmra.mxu0 %vm160_vm0, %v34_v5  ;;  %2866 = vmatpush.msra.mxu1 %v1077_v27  ;;  %v59_v5 = vld [vmem:[%s5617_s0 + $0xe0] sm:$0xff] }
  0x1c   :  { %1106 = vmatpush.msrb.mxu0 %v1077_v27 }
  0x1d   :  { %2867 = vmatpush.msra.mxu1 %v1076_v28 }
  0x1e   :  { %1107 = vmatpush.msrb.mxu0 %v1076_v28  ;;  %v66_v28 = vld [vmem:[%s5617_s0 + $0x118] sm:$0xff] }
  0x1f   :  { %2868 = vmatpush.msra.mxu1 %v1075_v29 }
  0x20   :  { %1108 = vmatpush.msrb.mxu0 %v1075_v29 }
  0x21   :  { %2869 = vmatpush.msra.mxu1 %v1074_v30 }
  0x22   :  { %1109 = vmatpush.msrb.mxu0 %v1074_v30 }
  0x23   :  { %2730 = vmatmul.msk.f32.gmra.mxu0 %vm160_vm0, %v35_v6 }
  0x2b   :  { %2731 = vmatmul.msk.f32.gmra.mxu0 %vm160_vm0, %v36_v8  ;;  %v60_v8 = vld [vmem:[%s5617_s0 + $0xe8] sm:$0xff] }
  0x33   :  { %2732 = vmatmul.msk.f32.gmra.mxu0 %vm160_vm0, %v37_v9 }
  0x3b   :  { %2733 = vmatmul.msk.f32.gmra.mxu0 %vm160_vm0, %v38_v10 }
  0x43   :  { %2734 = vmatmul.msk.f32.gmra.mxu0 %vm160_vm0, %v39_v11  ;;  %v61_v11 = vld [vmem:[%s5617_s0 + $0xf0] sm:$0xff] }
  0x4b   :  { %2735 = vmatmul.msk.f32.gmra.mxu0 %vm160_vm0, %v40_v12 }
  0x53   :  { %2736 = vmatmul.msk.f32.gmra.mxu0 %vm160_vm0, %v41_v13 }
  0x5b   :  { %2737 = vmatmul.msk.f32.gmra.mxu0 %vm160_vm0, %v42_v17  ;;  %v63_v17 = vld [vmem:[%s5617_s0 + $0x100] sm:$0xff] }
  0x63   :  { %2738 = vmatmul.msk.f32.gmra.mxu0 %vm160_vm0, %v43_v21 }
  0x6b   :  { %2739 = vmatmul.msk.f32.gmra.mxu0 %vm160_vm0, %v44_v26 }
  0x73   :  { %2740 = vmatmul.msk.f32.gmra.mxu0 %vm160_vm0, %v45_v31 }
  0x7b   :  { %2741 = vmatmul.msk.f32.gmra.mxu0 %vm160_vm0, %v46_v32  ;;  %v67_v32 = vld [vmem:[%s5617_s0 + $0x120] sm:$0xff] }
  0x80   :  { %v3807_v33 = vpop.f32.mrf.mxu0 }
  0x83   :  { %2742 = vmatmul.msk.f32.gmra.mxu0 %vm160_vm0, %v47_v34 }
  0x88   :  { %v565_v35 = vpop.f32.mrf.mxu0 }
  0x89   :  { %2873 = vtanh.f32 %v565_v35 }
  0x8b   :  { %2743 = vmatmul.msk.f32.gmra.mxu0 %vm160_vm0, %v48_v36 }
  0x8f   :  { %v2874_v37 = vpop.eup %2873 }
  0x90   :  { %v568_v38 = vpop.f32.mrf.mxu0  ;;  %1113 = vmatmul.f32.vlgmr.msra.gmra.mxu1 %v2874_v37  ;;  %v68_v37 = vld [vmem:[%s5617_s0 + $0x128] sm:$0xff] }
  0x91   :  { %2875 = vtanh.f32 %v568_v38 }
  0x93   :  { %2744 = vmatmul.msk.f32.gmra.mxu0 %vm160_vm0, %v49_v39 }
  0x97   :  { %v2876_v40 = vpop.eup %2875 }
  0x98   :  { %v571_v41 = vpop.f32.mrf.mxu0  ;;  %1116 = vmatmul.f32.gmra.mxu1 %v2876_v40 }
  0x99   :  { %2877 = vtanh.f32 %v571_v41  ;;  %v69_v41 = vld [vmem:[%s5617_s0 + $0x130] sm:$0xff] }
  0x9b   :  { %2745 = vmatmul.msk.f32.gmra.mxu0 %vm160_vm0, %v50_v42 }
  0x9f   :  { %v2878_v43 = vpop.eup %2877 }
  0xa0   :  { %v574_v44 = vpop.f32.mrf.mxu0  ;;  %1119 = vmatmul.f32.gmra.mxu1 %v2878_v43 }
  0xa1   :  { %2879 = vtanh.f32 %v574_v44 }
  0xa3   :  { %2746 = vmatmul.msk.f32.gmra.mxu0 %vm160_vm0, %v51_v45  ;;  %v70_v45 = vld [vmem:[%s5617_s0 + $0x138] sm:$0xff] }
  0xa7   :  { %v2880_v46 = vpop.eup %2879 }
  0xa8   :  { %v577_v47 = vpop.f32.mrf.mxu0  ;;  %1122 = vmatmul.f32.gmra.mxu1 %v2880_v46 }
  0xa9   :  { %2881 = vtanh.f32 %v577_v47 }
  0xab   :  { %2747 = vmatmul.msk.f32.gmra.mxu0 %vm160_vm0, %v52_v48 }
  0xaf   :  { %v2882_v49 = vpop.eup %2881 }
  0xb0   :  { %v580_v50 = vpop.f32.mrf.mxu0  ;;  %1125 = vmatmul.f32.gmra.mxu1 %v2882_v49  ;;  %v71_v49 = vld [vmem:[%s5617_s0 + $0x140] sm:$0xff] }
  0xb1   :  { %2883 = vtanh.f32 %v580_v50 }
  0xb3   :  { %2748 = vmatmul.msk.f32.gmra.mxu0 %vm160_vm0, %v53_v51 }
  0xb7   :  { %v2884_v52 = vpop.eup %2883 }
  0xb8   :  { %v583_v53 = vpop.f32.mrf.mxu0  ;;  %1128 = vmatmul.f32.gmra.mxu1 %v2884_v52 }
  0xb9   :  { %2885 = vtanh.f32 %v583_v53  ;;  %v72_v53 = vld [vmem:[%s5617_s0 + $0x148] sm:$0xff] }
  0xbb   :  { %2749 = vmatmul.msk.f32.gmra.mxu0 %vm160_vm0, %v54_v54 }
  0xbf   :  { %v2886_v55 = vpop.eup %2885 }
  0xc0   :  { %v586_v56 = vpop.f32.mrf.mxu0  ;;  %1131 = vmatmul.f32.gmra.mxu1 %v2886_v55 }
  0xc1   :  { %2887 = vtanh.f32 %v586_v56 }
  0xc3   :  { %2750 = vmatmul.msk.f32.gmra.mxu0 %vm160_vm0, %v55_v57  ;;  %v73_v57 = vld [vmem:[%s5617_s0 + $0x150] sm:$0xff] }
  0xc7   :  { %v2888_v58 = vpop.eup %2887 }
  0xc8   :  { %v589_v59 = vpop.f32.mrf.mxu0  ;;  %1134 = vmatmul.f32.gmra.mxu1 %v2888_v58 }
  0xc9   :  { %2889 = vtanh.f32 %v589_v59 }
  0xcb   :  { %2751 = vmatmul.msk.f32.gmra.mxu0 %vm160_vm0, %v56_v60 }
  0xcf   :  { %v2890_v61 = vpop.eup %2889 }
  0xd0   :  { %v592_v62 = vpop.f32.mrf.mxu0  ;;  %1137 = vmatmul.f32.gmra.mxu1 %v2890_v61  ;;  %v74_v61 = vld [vmem:[%s5617_s0 + $0x158] sm:$0xff] }
  0xd1   :  { %2891 = vtanh.f32 %v592_v62 }
  0xd3   :  { %2752 = vmatmul.msk.f32.gmra.mxu0 %vm160_vm0, %v57_v63 }
  0xd7   :  { %v2892_v0 = vpop.eup %2891 }
  0xd8   :  { %v595_v1 = vpop.f32.mrf.mxu0  ;;  %1140 = vmatmul.f32.gmra.mxu1 %v2892_v0 }
  0xd9   :  { %2893 = vtanh.f32 %v595_v1  ;;  %v75_v1 = vld [vmem:[%s5617_s0 + $0x160] sm:$0xff] }
  0xdb   :  { %2753 = vmatmul.msk.f32.gmra.mxu0 %vm160_vm0, %v58_v2 }
  0xdf   :  { %v2894_v3 = vpop.eup %2893 }
  0xe0   :  { %v598_v4 = vpop.f32.mrf.mxu0  ;;  %1143 = vmatmul.f32.gmra.mxu1 %v2894_v3 }
  0xe1   :  { %2895 = vtanh.f32 %v598_v4 }
  0xe3   :  { %2754 = vmatmul.msk.f32.gmra.mxu0 %vm160_vm0, %v59_v5  ;;  %v76_v5 = vld [vmem:[%s5617_s0 + $0x168] sm:$0xff] }
  0xe7   :  { %v2896_v6 = vpop.eup %2895 }
  0xe8   :  { %v601_v7 = vpop.f32.mrf.mxu0  ;;  %1146 = vmatmul.f32.gmra.mxu1 %v2896_v6 }
  0xe9   :  { %2897 = vtanh.f32 %v601_v7 }
  0xeb   :  { %2755 = vmatmul.msk.f32.gmra.mxu0 %vm160_vm0, %v60_v8 }
  0xef   :  { %v2898_v9 = vpop.eup %2897 }
  0xf0   :  { %v604_v10 = vpop.f32.mrf.mxu0  ;;  %1149 = vmatmul.f32.gmra.mxu1 %v2898_v9  ;;  %v77_v9 = vld [vmem:[%s5617_s0 + $0x170] sm:$0xff] }
  0xf1   :  { %2899 = vtanh.f32 %v604_v10 }
  0xf3   :  { %2756 = vmatmul.msk.f32.gmra.mxu0 %vm160_vm0, %v61_v11 }
  0xf7   :  { %v2900_v12 = vpop.eup %2899 }
  0xf8   :  { %v607_v13 = vpop.f32.mrf.mxu0  ;;  %1152 = vmatmul.f32.gmra.mxu1 %v2900_v12 }
  0xf9   :  { %2901 = vtanh.f32 %v607_v13  ;;  %v78_v13 = vld [vmem:[%s5617_s0 + $0x178] sm:$0xff] }
  0xfb   :  { %2757 = vmatmul.msk.f32.gmra.mxu0 %vm160_vm0, %v62_v14 }
  0xff   :  { %v2902_v15 = vpop.eup %2901 }
 0x100   :  { %v610_v16 = vpop.f32.mrf.mxu0  ;;  %1155 = vmatmul.f32.gmra.mxu1 %v2902_v15 }
 0x101   :  { %2903 = vtanh.f32 %v610_v16 }
 0x103   :  { %2758 = vmatmul.msk.f32.gmra.mxu0 %vm160_vm0, %v63_v17  ;;  %v79_v17 = vld [vmem:[%s5617_s0 + $0x180] sm:$0xff] }
 0x107   :  { %v2904_v18 = vpop.eup %2903 }
 0x108   :  { %v613_v19 = vpop.f32.mrf.mxu0  ;;  %1158 = vmatmul.f32.gmra.mxu1 %v2904_v18 }
 0x109   :  { %2905 = vtanh.f32 %v613_v19 }
 0x10b   :  { %2759 = vmatmul.msk.f32.gmra.mxu0 %vm160_vm0, %v64_v20 }
 0x10d   :  { %v3881_v21 = vpop.f32.mrf.mxu1 }
 0x10f   :  { %v2906_v22 = vpop.eup %2905 }
 0x110   :  { %v616_v23 = vpop.f32.mrf.mxu0  ;;  %1161 = vmatmul.f32.gmra.mxu1 %v2906_v22  ;;  %v80_v22 = vld [vmem:[%s5617_s0 + $0x188] sm:$0xff] }
 0x111   :  { %2907 = vtanh.f32 %v616_v23 }
 0x113   :  { %2760 = vmatmul.msk.f32.gmra.mxu0 %vm160_vm0, %v65_v24 }
 0x115   :  { %v3887_v25 = vpop.f32.mrf.mxu1 }
 0x117   :  { %v2908_v26 = vpop.eup %2907 }
 0x118   :  { %v619_v27 = vpop.f32.mrf.mxu0  ;;  %1164 = vmatmul.f32.gmra.mxu1 %v2908_v26 }
 0x119   :  { %2909 = vtanh.f32 %v619_v27  ;;  %v81_v27 = vld [vmem:[%s5617_s0 + $0x190] sm:$0xff] }
 0x11b   :  { %2761 = vmatmul.msk.f32.gmra.mxu0 %vm160_vm0, %v66_v28 }
 0x11d   :  { %v3893_v29 = vpop.f32.mrf.mxu1 }
 0x11f   :  { %v2910_v30 = vpop.eup %2909 }
 0x120   :  { %v622_v31 = vpop.f32.mrf.mxu0  ;;  %1167 = vmatmul.f32.gmra.mxu1 %v2910_v30 }
 0x121   :  { %2911 = vtanh.f32 %v622_v31 }
 0x123   :  { %2762 = vmatmul.msk.f32.gmra.mxu0 %vm160_vm0, %v67_v32  ;;  %v82_v32 = vld [vmem:[%s5617_s0 + $0x198] sm:$0xff] }
 0x125   :  { %v3899_v34 = vpop.f32.mrf.mxu1 }
 0x127   :  { %v2912_v35 = vpop.eup %2911 }
 0x128   :  { %v625_v36 = vpop.f32.mrf.mxu0  ;;  %1170 = vmatmul.f32.gmra.mxu1 %v2912_v35 }
 0x129   :  { %2913 = vtanh.f32 %v625_v36 }
 0x12b   :  { %2763 = vmatmul.msk.f32.gmra.mxu0 %vm160_vm0, %v68_v37 }
 0x12d   :  { %v3905_v38 = vpop.f32.mrf.mxu1 }
 0x12f   :  { %v2914_v39 = vpop.eup %2913 }
 0x130   :  { %v628_v40 = vpop.f32.mrf.mxu0  ;;  %1173 = vmatmul.f32.gmra.mxu1 %v2914_v39  ;;  %v83_v39 = vld [vmem:[%s5617_s0 + $0x1a0] sm:$0xff] }
 0x131   :  { %2915 = vtanh.f32 %v628_v40 }
 0x133   :  { %2764 = vmatmul.msk.f32.gmra.mxu0 %vm160_vm0, %v69_v41 }
 0x135   :  { %v3911_v42 = vpop.f32.mrf.mxu1 }
 0x137   :  { %v2916_v43 = vpop.eup %2915 }
 0x138   :  { %v631_v44 = vpop.f32.mrf.mxu0  ;;  %1176 = vmatmul.f32.gmra.mxu1 %v2916_v43 }
 0x139   :  { %2917 = vtanh.f32 %v631_v44  ;;  %v84_v44 = vld [vmem:[%s5617_s0 + $0x1a8] sm:$0xff] }
 0x13b   :  { %2765 = vmatmul.msk.f32.gmra.mxu0 %vm160_vm0, %v70_v45 }
 0x13d   :  { %v3917_v46 = vpop.f32.mrf.mxu1 }
 0x13f   :  { %v2918_v47 = vpop.eup %2917 }
 0x140   :  { %v634_v48 = vpop.f32.mrf.mxu0  ;;  %1179 = vmatmul.f32.gmra.mxu1 %v2918_v47 }
 0x141   :  { %2919 = vtanh.f32 %v634_v48 }
 0x143   :  { %2766 = vmatmul.msk.f32.gmra.mxu0 %vm160_vm0, %v71_v49  ;;  %v85_v49 = vld [vmem:[%s5617_s0 + $0x1b0] sm:$0xff] }
 0x145   :  { %v3923_v50 = vpop.f32.mrf.mxu1 }
 0x147   :  { %v2920_v51 = vpop.eup %2919 }
 0x148   :  { %v637_v52 = vpop.f32.mrf.mxu0  ;;  %1182 = vmatmul.f32.gmra.mxu1 %v2920_v51 }
 0x149   :  { %2921 = vtanh.f32 %v637_v52 }
 0x14b   :  { %2767 = vmatmul.msk.f32.gmra.mxu0 %vm160_vm0, %v72_v53 }
 0x14d   :  { %v3929_v54 = vpop.f32.mrf.mxu1 }
 0x14f   :  { %v2922_v55 = vpop.eup %2921 }
 0x150   :  { %v640_v56 = vpop.f32.mrf.mxu0  ;;  %1185 = vmatmul.f32.gmra.mxu1 %v2922_v55  ;;  %v86_v55 = vld [vmem:[%s5617_s0 + $0x1b8] sm:$0xff] }
 0x151   :  { %2923 = vtanh.f32 %v640_v56 }
 0x153   :  { %2768 = vmatmul.msk.f32.gmra.mxu0 %vm160_vm0, %v73_v57 }
 0x155   :  { %v3935_v58 = vpop.f32.mrf.mxu1 }
 0x157   :  { %v2924_v59 = vpop.eup %2923 }
 0x158   :  { %v643_v60 = vpop.f32.mrf.mxu0  ;;  %1188 = vmatmul.f32.gmra.mxu1 %v2924_v59 }
 0x159   :  { %2925 = vtanh.f32 %v643_v60  ;;  %v87_v60 = vld [vmem:[%s5617_s0 + $0x1c0] sm:$0xff] }
 0x15b   :  { %2769 = vmatmul.msk.f32.gmra.mxu0 %vm160_vm0, %v74_v61 }
 0x15d   :  { %v3941_v62 = vpop.f32.mrf.mxu1 }
 0x15f   :  { %v2926_v63 = vpop.eup %2925 }
 0x160   :  { %v646_v0 = vpop.f32.mrf.mxu0  ;;  %1191 = vmatmul.f32.gmra.mxu1 %v2926_v63 }
 0x161   :  { %2927 = vtanh.f32 %v646_v0 }
 0x163   :  { %2770 = vmatmul.msk.f32.gmra.mxu0 %vm160_vm0, %v75_v1  ;;  %v88_v1 = vld [vmem:[%s5617_s0 + $0x1c8] sm:$0xff] }
 0x165   :  { %v3947_v2 = vpop.f32.mrf.mxu1 }
 0x167   :  { %v2928_v3 = vpop.eup %2927 }
 0x168   :  { %v649_v4 = vpop.f32.mrf.mxu0  ;;  %1194 = vmatmul.f32.gmra.mxu1 %v2928_v3 }
 0x169   :  { %2929 = vtanh.f32 %v649_v4 }
 0x16b   :  { %2771 = vmatmul.msk.f32.gmra.mxu0 %vm160_vm0, %v76_v5 }
 0x16d   :  { %v3953_v6 = vpop.f32.mrf.mxu1 }
 0x16f   :  { %v2930_v7 = vpop.eup %2929 }
 0x170   :  { %v652_v8 = vpop.f32.mrf.mxu0  ;;  %1197 = vmatmul.f32.gmra.mxu1 %v2930_v7  ;;  %v89_v7 = vld [vmem:[%s5617_s0 + $0x1d0] sm:$0xff] }
 0x171   :  { %2931 = vtanh.f32 %v652_v8 }
 0x173   :  { %2772 = vmatmul.msk.f32.gmra.mxu0 %vm160_vm0, %v77_v9 }
 0x175   :  { %v3959_v10 = vpop.f32.mrf.mxu1 }
 0x177   :  { %v2932_v11 = vpop.eup %2931 }
 0x178   :  { %v655_v12 = vpop.f32.mrf.mxu0  ;;  %1200 = vmatmul.f32.gmra.mxu1 %v2932_v11 }
 0x179   :  { %2933 = vtanh.f32 %v655_v12  ;;  %v90_v12 = vld [vmem:[%s5617_s0 + $0x1d8] sm:$0xff] }
 0x17b   :  { %2773 = vmatmul.msk.f32.gmra.mxu0 %vm160_vm0, %v78_v13 }
 0x17d   :  { %v3965_v14 = vpop.f32.mrf.mxu1 }
 0x17f   :  { %v2934_v15 = vpop.eup %2933 }
 0x180   :  { %v658_v16 = vpop.f32.mrf.mxu0  ;;  %1203 = vmatmul.f32.gmra.mxu1 %v2934_v15 }
 0x181   :  { %2935 = vtanh.f32 %v658_v16 }
 0x183   :  { %2774 = vmatmul.msk.f32.gmra.mxu0 %vm160_vm0, %v79_v17  ;;  %v91_v17 = vld [vmem:[%s5617_s0 + $0x1e0] sm:$0xff] }
 0x185   :  { %v3971_v18 = vpop.f32.mrf.mxu1 }
 0x187   :  { %v2936_v19 = vpop.eup %2935 }
 0x188   :  { %v661_v20 = vpop.f32.mrf.mxu0  ;;  %1206 = vmatmul.f32.gmra.mxu1 %v2936_v19 }
 0x189   :  { %2937 = vtanh.f32 %v661_v20 }
 0x18b   :  { %2775 = vmatmul.msk.f32.gmra.mxu0 %vm160_vm0, %v80_v22 }
 0x18d   :  { %v3977_v23 = vpop.f32.mrf.mxu1 }
 0x18f   :  { %v2938_v24 = vpop.eup %2937 }
 0x190   :  { %v664_v26 = vpop.f32.mrf.mxu0  ;;  %1209 = vmatmul.f32.gmra.mxu1 %v2938_v24  ;;  %v92_v24 = vld [vmem:[%s5617_s0 + $0x1e8] sm:$0xff] }
 0x191   :  { %2939 = vtanh.f32 %v664_v26 }
 0x193   :  { %2776 = vmatmul.msk.f32.gmra.mxu0 %vm160_vm0, %v81_v27 }
 0x195   :  { %v3983_v28 = vpop.f32.mrf.mxu1 }
 0x197   :  { %v2940_v30 = vpop.eup %2939 }
 0x198   :  { %v667_v31 = vpop.f32.mrf.mxu0  ;;  %1212 = vmatmul.f32.gmra.mxu1 %v2940_v30 }
 0x199   :  { %2941 = vtanh.f32 %v667_v31  ;;  %v93_v31 = vld [vmem:[%s5617_s0 + $0x1f0] sm:$0xff] }
 0x19b   :  { %2777 = vmatmul.msk.f32.gmra.mxu0 %vm160_vm0, %v82_v32 }
 0x19d   :  { %v3989_v35 = vpop.f32.mrf.mxu1 }
 0x19f   :  { %v2942_v36 = vpop.eup %2941 }
 0x1a0   :  { %v670_v37 = vpop.f32.mrf.mxu0  ;;  %1215 = vmatmul.f32.gmra.mxu1 %v2942_v36 }
 0x1a1   :  { %2943 = vtanh.f32 %v670_v37 }
 0x1a3   :  { %2778 = vmatmul.msk.f32.gmra.mxu0 %vm160_vm0, %v83_v39  ;;  %v94_v39 = vld [vmem:[%s5617_s0 + $0x1f8] sm:$0xff] }
 0x1a5   :  { %v3995_v40 = vpop.f32.mrf.mxu1 }
 0x1a7   :  { %v2944_v41 = vpop.eup %2943 }
 0x1a8   :  { %v673_v43 = vpop.f32.mrf.mxu0  ;;  %1218 = vmatmul.f32.gmra.mxu1 %v2944_v41 }
 0x1a9   :  { %2945 = vtanh.f32 %v673_v43 }
 0x1ab   :  { %2779 = vmatmul.msk.f32.gmra.mxu0 %vm160_vm0, %v84_v44 }
 0x1ad   :  { %v4001_v45 = vpop.f32.mrf.mxu1 }
 0x1af   :  { %v2946_v47 = vpop.eup %2945 }
 0x1b0   :  { %v676_v48 = vpop.f32.mrf.mxu0  ;;  %1221 = vmatmul.f32.gmra.mxu1 %v2946_v47  ;;  %v95_v47 = vld [vmem:[%s5617_s0 + $0x200] sm:$0xff] }
 0x1b1   :  { %2947 = vtanh.f32 %v676_v48 }
 0x1b3   :  { %2780 = vmatmul.msk.f32.gmra.mxu0 %vm160_vm0, %v85_v49 }
 0x1b5   :  { %v4007_v51 = vpop.f32.mrf.mxu1 }
 0x1b7   :  { %v2948_v52 = vpop.eup %2947 }
 0x1b8   :  { %v679_v53 = vpop.f32.mrf.mxu0  ;;  %1224 = vmatmul.f32.gmra.mxu1 %v2948_v52 }
 0x1b9   :  { %2949 = vtanh.f32 %v679_v53  ;;  %v96_v53 = vld [vmem:[%s5617_s0 + $0x208] sm:$0xff] }
 0x1bb   :  { %2781 = vmatmul.msk.f32.gmra.mxu0 %vm160_vm0, %v86_v55 }
 0x1bd   :  { %v4013_v56 = vpop.f32.mrf.mxu1 }
 0x1bf   :  { %v2950_v57 = vpop.eup %2949 }
 0x1c0   :  { %v682_v59 = vpop.f32.mrf.mxu0  ;;  %1227 = vmatmul.f32.gmra.mxu1 %v2950_v57 }
 0x1c1   :  { %2951 = vtanh.f32 %v682_v59 }
 0x1c3   :  { %2782 = vmatmul.msk.f32.gmra.mxu0 %vm160_vm0, %v87_v60  ;;  %v97_v60 = vld [vmem:[%s5617_s0 + $0x210] sm:$0xff] }
 0x1c5   :  { %v4019_v61 = vpop.f32.mrf.mxu1 }
 0x1c7   :  { %v2952_v63 = vpop.eup %2951 }
 0x1c8   :  { %v685_v0 = vpop.f32.mrf.mxu0  ;;  %1230 = vmatmul.f32.gmra.mxu1 %v2952_v63 }
 0x1c9   :  { %2953 = vtanh.f32 %v685_v0 }
 0x1cb   :  { %2783 = vmatmul.msk.f32.gmra.mxu0 %vm160_vm0, %v88_v1 }
 0x1cd   :  { %v4025_v3 = vpop.f32.mrf.mxu1 }
 0x1cf   :  { %v2954_v4 = vpop.eup %2953 }
 0x1d0   :  { %v688_v5 = vpop.f32.mrf.mxu0  ;;  %1233 = vmatmul.f32.gmra.mxu1 %v2954_v4  ;;  %v98_v4 = vld [vmem:[%s5617_s0 + $0x218] sm:$0xff] }
 0x1d1   :  { %2955 = vtanh.f32 %v688_v5 }
 0x1d3   :  { %2784 = vmatmul.msk.f32.gmra.mxu0 %vm160_vm0, %v89_v7 }
 0x1d5   :  { %v4031_v8 = vpop.f32.mrf.mxu1 }
 0x1d7   :  { %v2956_v9 = vpop.eup %2955 }
 0x1d8   :  { %v691_v11 = vpop.f32.mrf.mxu0  ;;  %1236 = vmatmul.f32.gmra.mxu1 %v2956_v9 }
 0x1d9   :  { %2957 = vtanh.f32 %v691_v11  ;;  %v99_v11 = vld [vmem:[%s5617_s0 + $0x220] sm:$0xff] }
 0x1db   :  { %2785 = vmatmul.msk.f32.gmra.mxu0 %vm160_vm0, %v90_v12 }
 0x1dd   :  { %v4037_v13 = vpop.f32.mrf.mxu1 }
 0x1df   :  { %v2958_v15 = vpop.eup %2957 }
 0x1e0   :  { %v694_v16 = vpop.f32.mrf.mxu0  ;;  %1239 = vmatmul.f32.gmra.mxu1 %v2958_v15 }
 0x1e1   :  { %2959 = vtanh.f32 %v694_v16 }
 0x1e3   :  { %2786 = vmatmul.msk.f32.gmra.mxu0 %vm160_vm0, %v91_v17  ;;  %v100_v17 = vld [vmem:[%s5617_s0 + $0x228] sm:$0xff] }
 0x1e5   :  { %v4043_v19 = vpop.f32.mrf.mxu1 }
 0x1e7   :  { %v2960_v20 = vpop.eup %2959 }
 0x1e8   :  { %v697_v22 = vpop.f32.mrf.mxu0  ;;  %1242 = vmatmul.f32.gmra.mxu1 %v2960_v20 }
 0x1e9   :  { %2961 = vtanh.f32 %v697_v22 }
 0x1eb   :  { %2787 = vmatmul.msk.f32.gmra.mxu0 %vm160_vm0, %v92_v24 }
 0x1ed   :  { %v4049_v26 = vpop.f32.mrf.mxu1 }
 0x1ef   :  { %v2962_v27 = vpop.eup %2961 }
 0x1f0   :  { %v700_v30 = vpop.f32.mrf.mxu0  ;;  %1245 = vmatmul.f32.gmra.mxu1 %v2962_v27  ;;  %v101_v27 = vld [vmem:[%s5617_s0 + $0x230] sm:$0xff] }
 0x1f1   :  { %2963 = vtanh.f32 %v700_v30 }
 0x1f3   :  { %2788 = vmatmul.msk.f32.gmra.mxu0 %vm160_vm0, %v93_v31 }
 0x1f5   :  { %v4055_v32 = vpop.f32.mrf.mxu1 }
 0x1f7   :  { %v2964_v36 = vpop.eup %2963 }
 0x1f8   :  { %v703_v37 = vpop.f32.mrf.mxu0  ;;  %1248 = vmatmul.f32.gmra.mxu1 %v2964_v36 }
 0x1f9   :  { %2965 = vtanh.f32 %v703_v37  ;;  %v102_v37 = vld [vmem:[%s5617_s0 + $0x238] sm:$0xff] }
 0x1fb   :  { %2789 = vmatmul.msk.f32.gmra.mxu0 %vm160_vm0, %v94_v39 }
 0x1fd   :  { %v4061_v41 = vpop.f32.mrf.mxu1 }
 0x1ff   :  { %v2966_v43 = vpop.eup %2965 }
 0x200   :  { %v706_v44 = vpop.f32.mrf.mxu0  ;;  %1251 = vmatmul.f32.gmra.mxu1 %v2966_v43 }
 0x201   :  { %2967 = vtanh.f32 %v706_v44 }
 0x203   :  { %2790 = vmatmul.msk.f32.gmra.mxu0 %vm160_vm0, %v95_v47  ;;  %v103_v47 = vld [vmem:[%s5617_s0 + $0x240] sm:$0xff] }
 0x205   :  { %v4067_v48 = vpop.f32.mrf.mxu1 }
 0x207   :  { %v2968_v49 = vpop.eup %2967 }
 0x208   :  { %v709_v52 = vpop.f32.mrf.mxu0  ;;  %1254 = vmatmul.f32.gmra.mxu1 %v2968_v49 }
 0x209   :  { %2969 = vtanh.f32 %v709_v52 }
 0x20b   :  { %2791 = vmatmul.msk.f32.gmra.mxu0 %vm160_vm0, %v96_v53 }
 0x20d   :  { %v4073_v55 = vpop.f32.mrf.mxu1 }
 0x20f   :  { %v2970_v57 = vpop.eup %2969 }
 0x210   :  { %v712_v59 = vpop.f32.mrf.mxu0  ;;  %1257 = vmatmul.f32.gmra.mxu1 %v2970_v57  ;;  %v104_v57 = vld [vmem:[%s5617_s0 + $0x248] sm:$0xff] }
 0x211   :  { %2971 = vtanh.f32 %v712_v59 }
 0x213   :  { %2792 = vmatmul.msk.f32.gmra.mxu0 %vm160_vm0, %v97_v60 }
 0x215   :  { %v4079_v63 = vpop.f32.mrf.mxu1 }
 0x217   :  { %v2972_v0 = vpop.eup %2971 }
 0x218   :  { %v715_v1 = vpop.f32.mrf.mxu0  ;;  %1260 = vmatmul.f32.gmra.mxu1 %v2972_v0 }
 0x219   :  { %2973 = vtanh.f32 %v715_v1  ;;  %v105_v1 = vld [vmem:[%s5617_s0 + $0x250] sm:$0xff] }
 0x21b   :  { %2793 = vmatmul.msk.f32.gmra.mxu0 %vm160_vm0, %v98_v4 }
 0x21d   :  { %v4085_v5 = vpop.f32.mrf.mxu1 }
 0x21f   :  { %v2974_v7 = vpop.eup %2973 }
 0x220   :  { %v718_v9 = vpop.f32.mrf.mxu0  ;;  %1263 = vmatmul.f32.gmra.mxu1 %v2974_v7 }
 0x221   :  { %2975 = vtanh.f32 %v718_v9 }
 0x223   :  { %2794 = vmatmul.msk.f32.gmra.mxu0 %vm160_vm0, %v99_v11  ;;  %v106_v11 = vld [vmem:[%s5617_s0 + $0x258] sm:$0xff] }
 0x225   :  { %v4091_v12 = vpop.f32.mrf.mxu1 }
 0x227   :  { %v2976_v15 = vpop.eup %2975 }
 0x228   :  { %v721_v16 = vpop.f32.mrf.mxu0  ;;  %1266 = vmatmul.f32.gmra.mxu1 %v2976_v15 }
 0x229   :  { %2977 = vtanh.f32 %v721_v16 }
 0x22b   :  { %2795 = vmatmul.msk.f32.gmra.mxu0 %vm160_vm0, %v100_v17 }
 0x22d   :  { %v4097_v20 = vpop.f32.mrf.mxu1 }
 0x22f   :  { %v2978_v22 = vpop.eup %2977 }
 0x230   :  { %v724_v24 = vpop.f32.mrf.mxu0  ;;  %1269 = vmatmul.f32.gmra.mxu1 %v2978_v22  ;;  %v107_v22 = vld [vmem:[%s5617_s0 + $0x260] sm:$0xff] }
 0x231   :  { %2979 = vtanh.f32 %v724_v24 }
 0x233   :  { %2796 = vmatmul.msk.f32.gmra.mxu0 %vm160_vm0, %v101_v27 }
 0x235   :  { %v4103_v30 = vpop.f32.mrf.mxu1 }
 0x237   :  { %v2980_v31 = vpop.eup %2979 }
 0x238   :  { %v727_v36 = vpop.f32.mrf.mxu0  ;;  %1272 = vmatmul.f32.gmra.mxu1 %v2980_v31 }
 0x239   :  { %2981 = vtanh.f32 %v727_v36  ;;  %v108_v36 = vld [vmem:[%s5617_s0 + $0x268] sm:$0xff] }
 0x23b   :  { %2797 = vmatmul.msk.f32.gmra.mxu0 %vm160_vm0, %v102_v37 }
 0x23d   :  { %v4109_v39 = vpop.f32.mrf.mxu1 }
 0x23f   :  { %v2982_v43 = vpop.eup %2981 }
 0x240   :  { %v730_v44 = vpop.f32.mrf.mxu0  ;;  %1275 = vmatmul.f32.gmra.mxu1 %v2982_v43 }
 0x241   :  { %2983 = vtanh.f32 %v730_v44 }
 0x243   :  { %2798 = vmatmul.msk.f32.gmra.mxu0 %vm160_vm0, %v103_v47  ;;  %v109_v47 = vld [vmem:[%s5617_s0 + $0x270] sm:$0xff] }
 0x245   :  { %v4115_v49 = vpop.f32.mrf.mxu1 }
 0x247   :  { %v2984_v52 = vpop.eup %2983 }
 0x248   :  { %v733_v53 = vpop.f32.mrf.mxu0  ;;  %1278 = vmatmul.f32.gmra.mxu1 %v2984_v52 }
 0x249   :  { %2985 = vtanh.f32 %v733_v53 }
 0x24b   :  { %2799 = vmatmul.msk.f32.gmra.mxu0 %vm160_vm0, %v104_v57 }
 0x24d   :  { %v4121_v59 = vpop.f32.mrf.mxu1 }
 0x24f   :  { %v2986_v60 = vpop.eup %2985 }
 0x250   :  { %v736_v0 = vpop.f32.mrf.mxu0  ;;  %1281 = vmatmul.f32.gmra.mxu1 %v2986_v60  ;;  %v110_v60 = vld [vmem:[%s5617_s0 + $0x278] sm:$0xff] }
 0x251   :  { %2987 = vtanh.f32 %v736_v0 }
 0x253   :  { %2800 = vmatmul.msk.f32.gmra.mxu0 %vm160_vm0, %v105_v1 }
 0x255   :  { %v4127_v4 = vpop.f32.mrf.mxu1 }
 0x257   :  { %v2988_v7 = vpop.eup %2987 }
 0x258   :  { %v739_v9 = vpop.f32.mrf.mxu0  ;;  %1284 = vmatmul.f32.gmra.mxu1 %v2988_v7 }
 0x259   :  { %2989 = vtanh.f32 %v739_v9  ;;  %v111_v9 = vld [vmem:[%s5617_s0 + $0x280] sm:$0xff] }
 0x25b   :  { %2801 = vmatmul.msk.f32.gmra.mxu0 %vm160_vm0, %v106_v11 }
 0x25d   :  { %v4133_v15 = vpop.f32.mrf.mxu1 }
 0x25f   :  { %v2990_v16 = vpop.eup %2989 }
 0x260   :  { %v742_v17 = vpop.f32.mrf.mxu0  ;;  %1287 = vmatmul.f32.gmra.mxu1 %v2990_v16 }
 0x261   :  { %2991 = vtanh.f32 %v742_v17 }
 0x263   :  { %2802 = vmatmul.msk.f32.gmra.mxu0 %vm160_vm0, %v107_v22  ;;  %v112_v22 = vld [vmem:[%s5617_s0 + $0x288] sm:$0xff] }
 0x265   :  { %v4139_v24 = vpop.f32.mrf.mxu1 }
 0x267   :  { %v2992_v27 = vpop.eup %2991 }
 0x268   :  { %v745_v31 = vpop.f32.mrf.mxu0  ;;  %1290 = vmatmul.f32.gmra.mxu1 %v2992_v27 }
 0x269   :  { %2993 = vtanh.f32 %v745_v31 }
 0x26b   :  { %2803 = vmatmul.msk.f32.gmra.mxu0 %vm160_vm0, %v108_v36 }
 0x26d   :  { %v4145_v37 = vpop.f32.mrf.mxu1 }
 0x26f   :  { %v2994_v43 = vpop.eup %2993 }
 0x270   :  { %v748_v44 = vpop.f32.mrf.mxu0  ;;  %1293 = vmatmul.f32.gmra.mxu1 %v2994_v43  ;;  %v113_v43 = vld [vmem:[%s5617_s0 + $0x290] sm:$0xff] }
 0x271   :  { %2995 = vtanh.f32 %v748_v44 }
 0x273   :  { %2804 = vmatmul.msk.f32.gmra.mxu0 %vm160_vm0, %v109_v47 }
 0x275   :  { %v4151_v52 = vpop.f32.mrf.mxu1 }
 0x277   :  { %v2996_v53 = vpop.eup %2995 }
 0x278   :  { %v751_v57 = vpop.f32.mrf.mxu0  ;;  %1296 = vmatmul.f32.gmra.mxu1 %v2996_v53 }
 0x279   :  { %2997 = vtanh.f32 %v751_v57  ;;  %v114_v57 = vld [vmem:[%s5617_s0 + $0x298] sm:$0xff] }
 0x27b   :  { %2805 = vmatmul.msk.f32.gmra.mxu0 %vm160_vm0, %v110_v60 }
 0x27d   :  { %v4157_v0 = vpop.f32.mrf.mxu1 }
 0x27f   :  { %v2998_v1 = vpop.eup %2997 }
 0x280   :  { %v754_v7 = vpop.f32.mrf.mxu0  ;;  %1299 = vmatmul.f32.gmra.mxu1 %v2998_v1 }
 0x281   :  { %2999 = vtanh.f32 %v754_v7 }
 0x283   :  { %2806 = vmatmul.msk.f32.gmra.mxu0 %vm160_vm0, %v111_v9  ;;  %v115_v9 = vld [vmem:[%s5617_s0 + $0x2a0] sm:$0xff] }
 0x285   :  { %v4163_v11 = vpop.f32.mrf.mxu1 }
 0x287   :  { %v3000_v16 = vpop.eup %2999 }
 0x288   :  { %v757_v17 = vpop.f32.mrf.mxu0  ;;  %1302 = vmatmul.f32.gmra.mxu1 %v3000_v16 }
 0x289   :  { %3001 = vtanh.f32 %v757_v17 }
 0x28b   :  { %2807 = vmatmul.msk.f32.gmra.mxu0 %vm160_vm0, %v112_v22 }
 0x28d   :  { %v4169_v27 = vpop.f32.mrf.mxu1 }
 0x28f   :  { %v3002_v31 = vpop.eup %3001 }
 0x290   :  { %v760_v36 = vpop.f32.mrf.mxu0  ;;  %1305 = vmatmul.f32.gmra.mxu1 %v3002_v31  ;;  %v116_v31 = vld [vmem:[%s5617_s0 + $0x2a8] sm:$0xff] }
 0x291   :  { %3003 = vtanh.f32 %v760_v36 }
 0x293   :  { %2808 = vmatmul.msk.f32.gmra.mxu0 %vm160_vm0, %v113_v43 }
 0x295   :  { %v4175_v44 = vpop.f32.mrf.mxu1 }
 0x297   :  { %v3004_v47 = vpop.eup %3003 }
 0x298   :  { %v763_v53 = vpop.f32.mrf.mxu0  ;;  %1308 = vmatmul.f32.gmra.mxu1 %v3004_v47 }
 0x299   :  { %3005 = vtanh.f32 %v763_v53  ;;  %v117_v53 = vld [vmem:[%s5617_s0 + $0x2b0] sm:$0xff] }
 0x29b   :  { %2809 = vmatmul.msk.f32.gmra.mxu0 %vm160_vm0, %v114_v57 }
 0x29d   :  { %v4181_v60 = vpop.f32.mrf.mxu1 }
 0x29f   :  { %v3006_v1 = vpop.eup %3005 }
 0x2a0   :  { %v766_v7 = vpop.f32.mrf.mxu0  ;;  %1311 = vmatmul.f32.gmra.mxu1 %v3006_v1 }
 0x2a1   :  { %3007 = vtanh.f32 %v766_v7 }
 0x2a3   :  { %2810 = vmatmul.msk.f32.gmra.mxu0 %vm160_vm0, %v115_v9  ;;  %v118_v9 = vld [vmem:[%s5617_s0 + $0x2b8] sm:$0xff] }
 0x2a5   :  { %v4187_v16 = vpop.f32.mrf.mxu1 }
 0x2a7   :  { %v3008_v17 = vpop.eup %3007 }
 0x2a8   :  { %v769_v22 = vpop.f32.mrf.mxu0  ;;  %1314 = vmatmul.f32.gmra.mxu1 %v3008_v17 }
 0x2a9   :  { %3009 = vtanh.f32 %v769_v22 }
 0x2ab   :  { %2811 = vmatmul.msk.f32.gmra.mxu0 %vm160_vm0, %v116_v31 }
 0x2ad   :  { %v4193_v36 = vpop.f32.mrf.mxu1 }
 0x2af   :  { %v3010_v43 = vpop.eup %3009 }
 0x2b0   :  { %v772_v47 = vpop.f32.mrf.mxu0  ;;  %1317 = vmatmul.f32.gmra.mxu1 %v3010_v43  ;;  %v119_v43 = vld [vmem:[%s5617_s0 + $0x2c0] sm:$0xff] }
 0x2b1   :  { %3011 = vtanh.f32 %v772_v47 }
 0x2b3   :  { %2812 = vmatmul.msk.f32.gmra.mxu0 %vm160_vm0, %v117_v53 }
 0x2b5   :  { %v4199_v57 = vpop.f32.mrf.mxu1 }
 0x2b6   :  { %5625 = vst [vmem:[#allocation3_spill] sm:$0xff] %v4199_v57 }
 0x2b7   :  { %v3012_v1 = vpop.eup %3011 }
 0x2b8   :  { %v775_v7 = vpop.f32.mrf.mxu0  ;;  %1320 = vmatmul.f32.gmra.mxu1 %v3012_v1 }
 0x2b9   :  { %3013 = vtanh.f32 %v775_v7  ;;  %v120_v7 = vld [vmem:[%s5617_s0 + $0x2c8] sm:$0xff] }
 0x2bb   :  { %2813 = vmatmul.msk.f32.gmra.mxu0 %vm160_vm0, %v118_v9 }
 0x2bd   :  { %v4205_v17 = vpop.f32.mrf.mxu1 }
 0x2be   :  { %5626 = vst [vmem:[#allocation4_spill] sm:$0xff] %v4205_v17 }
 0x2bf   :  { %v3014_v22 = vpop.eup %3013 }
 0x2c0   :  { %v778_v31 = vpop.f32.mrf.mxu0  ;;  %1323 = vmatmul.f32.gmra.mxu1 %v3014_v22 }
 0x2c1   :  { %3015 = vtanh.f32 %v778_v31  ;;  %v121_v31 = vld [vmem:[%s5617_s0 + $0x2d0] sm:$0xff] }
 0x2c3   :  { %2814 = vmatmul.msk.f32.gmra.mxu0 %vm160_vm0, %v119_v43 }
 0x2c5   :  { %v4211_v47 = vpop.f32.mrf.mxu1 }
 0x2c6   :  { %5627 = vst [vmem:[#allocation5_spill] sm:$0xff] %v4211_v47 }
 0x2c7   :  { %v3016_v53 = vpop.eup %3015 }
 0x2c8   :  { %v781_v1 = vpop.f32.mrf.mxu0  ;;  %1326 = vmatmul.f32.gmra.mxu1 %v3016_v53 }
 0x2c9   :  { %3017 = vtanh.f32 %v781_v1  ;;  %v122_v1 = vld [vmem:[%s5617_s0 + $0x2d8] sm:$0xff] }
 0x2cb   :  { %2815 = vmatmul.msk.f32.gmra.mxu0 %vm160_vm0, %v120_v7 }
 0x2cd   :  { %v4217_v9 = vpop.f32.mrf.mxu1 }
 0x2ce   :  { %5628 = vst [vmem:[#allocation6_spill] sm:$0xff] %v4217_v9 }
 0x2cf   :  { %v3018_v22 = vpop.eup %3017 }
 0x2d0   :  { %v784_v17 = vpop.f32.mrf.mxu0  ;;  %1329 = vmatmul.f32.gmra.mxu1 %v3018_v22 }
 0x2d1   :  { %3019 = vtanh.f32 %v784_v17  ;;  %v123_v17 = vld [vmem:[%s5617_s0 + $0x2e0] sm:$0xff] }
 0x2d3   :  { %2816 = vmatmul.msk.f32.gmra.mxu0 %vm160_vm0, %v121_v31 }
 0x2d5   :  { %v4223_v43 = vpop.f32.mrf.mxu1 }
 0x2d6   :  { %5629 = vst [vmem:[#allocation7_spill] sm:$0xff] %v4223_v43 }
 0x2d7   :  { %v3020_v53 = vpop.eup %3019 }
 0x2d8   :  { %v787_v47 = vpop.f32.mrf.mxu0  ;;  %1332 = vmatmul.f32.gmra.mxu1 %v3020_v53 }
 0x2d9   :  { %3021 = vtanh.f32 %v787_v47  ;;  %v124_v47 = vld [vmem:[%s5617_s0 + $0x2e8] sm:$0xff] }
 0x2db   :  { %2817 = vmatmul.msk.f32.gmra.mxu0 %vm160_vm0, %v122_v1 }
 0x2dd   :  { %v4229_v7 = vpop.f32.mrf.mxu1 }
 0x2de   :  { %5630 = vst [vmem:[#allocation8_spill] sm:$0xff] %v4229_v7 }
 0x2df   :  { %v3022_v22 = vpop.eup %3021 }
 0x2e0   :  { %v790_v9 = vpop.f32.mrf.mxu0  ;;  %1335 = vmatmul.f32.gmra.mxu1 %v3022_v22 }
 0x2e1   :  { %3023 = vtanh.f32 %v790_v9  ;;  %v125_v9 = vld [vmem:[%s5617_s0 + $0x2f0] sm:$0xff] }
 0x2e3   :  { %2818 = vmatmul.msk.f32.gmra.mxu0 %vm160_vm0, %v123_v17 }
 0x2e5   :  { %v4235_v31 = vpop.f32.mrf.mxu1 }
 0x2e6   :  { %5631 = vst [vmem:[#allocation9_spill] sm:$0xff] %v4235_v31 }
 0x2e7   :  { %v3024_v53 = vpop.eup %3023 }
 0x2e8   :  { %v793_v43 = vpop.f32.mrf.mxu0  ;;  %1338 = vmatmul.f32.gmra.mxu1 %v3024_v53 }
 0x2e9   :  { %3025 = vtanh.f32 %v793_v43  ;;  %v126_v43 = vld [vmem:[%s5617_s0 + $0x2f8] sm:$0xff] }
 0x2eb   :  { %2819 = vmatmul.msk.f32.gmra.mxu0 %vm160_vm0, %v124_v47 }
 0x2ed   :  { %v4241_v1 = vpop.f32.mrf.mxu1 }
 0x2ee   :  { %5632 = vst [vmem:[#allocation10_spill] sm:$0xff] %v4241_v1 }
 0x2ef   :  { %v3026_v22 = vpop.eup %3025 }
 0x2f0   :  { %v796_v7 = vpop.f32.mrf.mxu0  ;;  %1341 = vmatmul.f32.gmra.mxu1 %v3026_v22 }
 0x2f1   :  { %3027 = vtanh.f32 %v796_v7  ;;  %v127_v7 = vld [vmem:[%s5617_s0 + $0x300] sm:$0xff] }
 0x2f3   :  { %2820 = vmatmul.msk.f32.gmra.mxu0 %vm160_vm0, %v125_v9 }
 0x2f5   :  { %v4247_v17 = vpop.f32.mrf.mxu1 }
 0x2f6   :  { %5633 = vst [vmem:[#allocation11_spill] sm:$0xff] %v4247_v17 }
 0x2f7   :  { %v3028_v53 = vpop.eup %3027 }
 0x2f8   :  { %v799_v31 = vpop.f32.mrf.mxu0  ;;  %1344 = vmatmul.f32.gmra.mxu1 %v3028_v53 }
 0x2f9   :  { %3029 = vtanh.f32 %v799_v31  ;;  %v128_v31 = vld [vmem:[%s5617_s0 + $0x308] sm:$0xff] }
 0x2fb   :  { %2821 = vmatmul.msk.f32.gmra.mxu0 %vm160_vm0, %v126_v43 }
 0x2fd   :  { %v4253_v47 = vpop.f32.mrf.mxu1 }
 0x2fe   :  { %5634 = vst [vmem:[#allocation12_spill] sm:$0xff] %v4253_v47 }
 0x2ff   :  { %v3030_v22 = vpop.eup %3029 }
 0x300   :  { %v802_v1 = vpop.f32.mrf.mxu0  ;;  %1347 = vmatmul.f32.gmra.mxu1 %v3030_v22 }
 0x301   :  { %3031 = vtanh.f32 %v802_v1  ;;  %v129_v1 = vld [vmem:[%s5617_s0 + $0x310] sm:$0xff] }
 0x303   :  { %2822 = vmatmul.msk.f32.gmra.mxu0 %vm160_vm0, %v127_v7 }
 0x305   :  { %v4259_v9 = vpop.f32.mrf.mxu1 }
 0x306   :  { %5635 = vst [vmem:[#allocation13_spill] sm:$0xff] %v4259_v9 }
 0x307   :  { %v3032_v53 = vpop.eup %3031 }
 0x308   :  { %v805_v17 = vpop.f32.mrf.mxu0  ;;  %1350 = vmatmul.f32.gmra.mxu1 %v3032_v53 }
 0x309   :  { %3033 = vtanh.f32 %v805_v17  ;;  %v130_v17 = vld [vmem:[%s5617_s0 + $0x318] sm:$0xff] }
 0x30b   :  { %2823 = vmatmul.msk.f32.gmra.mxu0 %vm160_vm0, %v128_v31 }
 0x30d   :  { %v4265_v43 = vpop.f32.mrf.mxu1 }
 0x30e   :  { %5636 = vst [vmem:[#allocation14_spill] sm:$0xff] %v4265_v43 }
 0x30f   :  { %v3034_v22 = vpop.eup %3033 }
 0x310   :  { %v808_v47 = vpop.f32.mrf.mxu0  ;;  %1353 = vmatmul.f32.gmra.mxu1 %v3034_v22 }
 0x311   :  { %3035 = vtanh.f32 %v808_v47  ;;  %v131_v47 = vld [vmem:[%s5617_s0 + $0x320] sm:$0xff] }
 0x313   :  { %2824 = vmatmul.msk.f32.gmra.mxu0 %vm160_vm0, %v129_v1 }
 0x315   :  { %v4271_v7 = vpop.f32.mrf.mxu1 }
 0x316   :  { %5637 = vst [vmem:[#allocation15_spill] sm:$0xff] %v4271_v7 }
 0x317   :  { %v3036_v53 = vpop.eup %3035 }
 0x318   :  { %v811_v9 = vpop.f32.mrf.mxu0  ;;  %1356 = vmatmul.f32.gmra.mxu1 %v3036_v53 }
 0x319   :  { %3037 = vtanh.f32 %v811_v9  ;;  %v132_v9 = vld [vmem:[%s5617_s0 + $0x328] sm:$0xff] }
 0x31b   :  { %2825 = vmatmul.msk.f32.gmra.mxu0 %vm160_vm0, %v130_v17 }
 0x31d   :  { %v4277_v31 = vpop.f32.mrf.mxu1 }
 0x31e   :  { %5638 = vst [vmem:[#allocation16_spill] sm:$0xff] %v4277_v31 }
 0x31f   :  { %v3038_v22 = vpop.eup %3037 }
 0x320   :  { %v814_v43 = vpop.f32.mrf.mxu0  ;;  %1359 = vmatmul.f32.gmra.mxu1 %v3038_v22 }
 0x321   :  { %3039 = vtanh.f32 %v814_v43  ;;  %v133_v43 = vld [vmem:[%s5617_s0 + $0x330] sm:$0xff] }
 0x323   :  { %2826 = vmatmul.msk.f32.gmra.mxu0 %vm160_vm0, %v131_v47 }
 0x325   :  { %v4283_v1 = vpop.f32.mrf.mxu1 }
 0x326   :  { %5639 = vst [vmem:[#allocation17_spill] sm:$0xff] %v4283_v1 }
 0x327   :  { %v3040_v53 = vpop.eup %3039 }
 0x328   :  { %v817_v7 = vpop.f32.mrf.mxu0  ;;  %1362 = vmatmul.f32.gmra.mxu1 %v3040_v53 }
 0x329   :  { %3041 = vtanh.f32 %v817_v7  ;;  %v134_v7 = vld [vmem:[%s5617_s0 + $0x338] sm:$0xff] }
 0x32b   :  { %2827 = vmatmul.msk.f32.gmra.mxu0 %vm160_vm0, %v132_v9 }
 0x32d   :  { %v4289_v17 = vpop.f32.mrf.mxu1 }
 0x32e   :  { %5640 = vst [vmem:[#allocation18_spill] sm:$0xff] %v4289_v17 }
 0x32f   :  { %v3042_v22 = vpop.eup %3041 }
 0x330   :  { %v820_v31 = vpop.f32.mrf.mxu0  ;;  %1365 = vmatmul.f32.gmra.mxu1 %v3042_v22 }
 0x331   :  { %3043 = vtanh.f32 %v820_v31  ;;  %v135_v31 = vld [vmem:[%s5617_s0 + $0x340] sm:$0xff] }
 0x333   :  { %2828 = vmatmul.msk.f32.gmra.mxu0 %vm160_vm0, %v133_v43 }
 0x335   :  { %v4295_v47 = vpop.f32.mrf.mxu1 }
 0x336   :  { %5641 = vst [vmem:[#allocation19_spill] sm:$0xff] %v4295_v47 }
 0x337   :  { %v3044_v53 = vpop.eup %3043 }
 0x338   :  { %v823_v1 = vpop.f32.mrf.mxu0  ;;  %1368 = vmatmul.f32.gmra.mxu1 %v3044_v53 }
 0x339   :  { %3045 = vtanh.f32 %v823_v1  ;;  %v136_v1 = vld [vmem:[%s5617_s0 + $0x348] sm:$0xff] }
 0x33b   :  { %2829 = vmatmul.msk.f32.gmra.mxu0 %vm160_vm0, %v134_v7 }
 0x33d   :  { %v4301_v22 = vpop.f32.mrf.mxu1 }
 0x33e   :  { %5642 = vst [vmem:[#allocation20_spill] sm:$0xff] %v4301_v22 }
 0x33f   :  { %v3046_v9 = vpop.eup %3045 }
 0x340   :  { %v826_v17 = vpop.f32.mrf.mxu0  ;;  %1371 = vmatmul.f32.gmra.mxu1 %v3046_v9 }
 0x341   :  { %3047 = vtanh.f32 %v826_v17  ;;  %v137_v17 = vld [vmem:[%s5617_s0 + $0x350] sm:$0xff] }
 0x343   :  { %2830 = vmatmul.msk.f32.gmra.mxu0 %vm160_vm0, %v135_v31 }
 0x345   :  { %v4310_v7 = vpop.f32.mrf.mxu1 }
 0x346   :  { %5643 = vst [vmem:[#allocation21_spill] sm:$0xff] %v4310_v7 }
 0x347   :  { %v3048_v43 = vpop.eup %3047 }
 0x348   :  { %v829_v53 = vpop.f32.mrf.mxu0  ;;  %1374 = vmatmul.f32.gmra.mxu1 %v3048_v43 }
 0x349   :  { %3049 = vtanh.f32 %v829_v53  ;;  %v138_v53 = vld [vmem:[%s5617_s0 + $0x358] sm:$0xff] }
 0x34b   :  { %2831 = vmatmul.msk.f32.gmra.mxu0 %vm160_vm0, %v136_v1 }
 0x34d   :  { %v4317_v31 = vpop.f32.mrf.mxu1 }
 0x34e   :  { %5644 = vst [vmem:[#allocation22_spill] sm:$0xff] %v4317_v31 }
 0x34f   :  { %v3050_v9 = vpop.eup %3049 }
 0x350   :  { %v832_v22 = vpop.f32.mrf.mxu0  ;;  %1377 = vmatmul.f32.gmra.mxu1 %v3050_v9 }
 0x351   :  { %3051 = vtanh.f32 %v832_v22  ;;  %v139_v22 = vld [vmem:[%s5617_s0 + $0x360] sm:$0xff] }
 0x353   :  { %2832 = vmatmul.msk.f32.gmra.mxu0 %vm160_vm0, %v137_v17 }
 0x355   :  { %v4323_v1 = vpop.f32.mrf.mxu1 }
 0x356   :  { %5645 = vst [vmem:[#allocation23_spill] sm:$0xff] %v4323_v1 }
 0x357   :  { %v3052_v43 = vpop.eup %3051 }
 0x358   :  { %v835_v47 = vpop.f32.mrf.mxu0  ;;  %1380 = vmatmul.f32.gmra.mxu1 %v3052_v43 }
 0x359   :  { %3053 = vtanh.f32 %v835_v47  ;;  %v140_v47 = vld [vmem:[%s5617_s0 + $0x368] sm:$0xff] }
 0x35b   :  { %2833 = vmatmul.msk.f32.gmra.mxu0 %vm160_vm0, %v138_v53 }
 0x35d   :  { %v4329_v43 = vpop.f32.mrf.mxu1 }
 0x35e   :  { %5646 = vst [vmem:[#allocation24_spill] sm:$0xff] %v4329_v43 }
 0x35f   :  { %v3054_v9 = vpop.eup %3053 }
 0x360   :  { %v838_v7 = vpop.f32.mrf.mxu0  ;;  %1383 = vmatmul.f32.gmra.mxu1 %v3054_v9 }
 0x361   :  { %3055 = vtanh.f32 %v838_v7  ;;  %v141_v7 = vld [vmem:[%s5617_s0 + $0x370] sm:$0xff] }
 0x363   :  { %2834 = vmatmul.msk.f32.gmra.mxu0 %vm160_vm0, %v139_v22 }
 0x365   :  { %v4338_v22 = vpop.f32.mrf.mxu1 }
 0x366   :  { %5647 = vst [vmem:[#allocation25_spill] sm:$0xff] %v4338_v22 }
 0x367   :  { %v3056_v17 = vpop.eup %3055 }
 0x368   :  { %v841_v31 = vpop.f32.mrf.mxu0  ;;  %1386 = vmatmul.f32.gmra.mxu1 %v3056_v17 }
 0x369   :  { %3057 = vtanh.f32 %v841_v31  ;;  %v142_v31 = vld [vmem:[%s5617_s0 + $0x378] sm:$0xff] }
 0x36b   :  { %2835 = vmatmul.msk.f32.gmra.mxu0 %vm160_vm0, %v140_v47 }
 0x36d   :  { %v4345_v47 = vpop.f32.mrf.mxu1 }
 0x36e   :  { %5648 = vst [vmem:[#allocation26_spill] sm:$0xff] %v4345_v47 }
 0x36f   :  { %v3058_v53 = vpop.eup %3057 }
 0x370   :  { %v844_v9 = vpop.f32.mrf.mxu0  ;;  %1389 = vmatmul.f32.gmra.mxu1 %v3058_v53 }
 0x371   :  { %3059 = vtanh.f32 %v844_v9  ;;  %v143_v9 = vld [vmem:[%s5617_s0 + $0x380] sm:$0xff] }
 0x373   :  { %2836 = vmatmul.msk.f32.gmra.mxu0 %vm160_vm0, %v141_v7 }
 0x375   :  { %v4351_v7 = vpop.f32.mrf.mxu1 }
 0x376   :  { %5649 = vst [vmem:[#allocation27_spill] sm:$0xff] %v4351_v7 }
 0x377   :  { %v3060_v17 = vpop.eup %3059 }
 0x378   :  { %v847_v43 = vpop.f32.mrf.mxu0  ;;  %1392 = vmatmul.f32.gmra.mxu1 %v3060_v17 }
 0x379   :  { %3061 = vtanh.f32 %v847_v43  ;;  %v144_v43 = vld [vmem:[%s5617_s0 + $0x388] sm:$0xff] }
 0x37b   :  { %2837 = vmatmul.msk.f32.gmra.mxu0 %vm160_vm0, %v142_v31 }
 0x37f   :  { %v3062_v53 = vpop.eup %3061 }
 0x380   :  { %v850_v1 = vpop.f32.mrf.mxu0  ;;  %1395 = vmatmul.f32.gmra.mxu1 %v3062_v53  ;;  %v4357_v53 = vpop.f32.mrf.mxu1 }
 0x381   :  { %3063 = vtanh.f32 %v850_v1  ;;  %5650 = vst [vmem:[#allocation28_spill] sm:$0xff] %v4357_v53  ;;  %v145_v1 = vld [vmem:[%s5617_s0 + $0x390] sm:$0xff] }
 0x383   :  { %2838 = vmatmul.msk.f32.gmra.mxu0 %vm160_vm0, %v143_v9 }
 0x387   :  { %v3064_v17 = vpop.eup %3063 }
 0x388   :  { %v853_v22 = vpop.f32.mrf.mxu0  ;;  %1398 = vmatmul.f32.gmra.mxu1 %v3064_v17 }
 0x389   :  { %3065 = vtanh.f32 %v853_v22  ;;  %v146_v22 = vld [vmem:[%s5617_s0 + $0x398] sm:$0xff] }
 0x38b   :  { %2839 = vmatmul.msk.f32.gmra.mxu0 %vm160_vm0, %v144_v43  ;;  %v4366_v43 = vpop.f32.mrf.mxu1 }
 0x38c   :  { %5651 = vst [vmem:[#allocation29_spill] sm:$0xff] %v4366_v43 }
 0x38f   :  { %v3066_v31 = vpop.eup %3065 }
 0x390   :  { %v856_v47 = vpop.f32.mrf.mxu0  ;;  %1401 = vmatmul.f32.gmra.mxu1 %v3066_v31 }
 0x391   :  { %3067 = vtanh.f32 %v856_v47  ;;  %v147_v47 = vld [vmem:[%s5617_s0 + $0x3a0] sm:$0xff] }
 0x393   :  { %2840 = vmatmul.msk.f32.gmra.mxu0 %vm160_vm0, %v145_v1  ;;  %v4373_v1 = vpop.f32.mrf.mxu1 }
 0x394   :  { %5652 = vst [vmem:[#allocation30_spill] sm:$0xff] %v4373_v1 }
 0x397   :  { %v3068_v9 = vpop.eup %3067 }
 0x398   :  { %v859_v17 = vpop.f32.mrf.mxu0  ;;  %1404 = vmatmul.f32.gmra.mxu1 %v3068_v9 }
 0x399   :  { %3069 = vtanh.f32 %v859_v17  ;;  %v148_v17 = vld [vmem:[%s5617_s0 + $0x3a8] sm:$0xff] }
 0x39b   :  { %2841 = vmatmul.msk.f32.gmra.mxu0 %vm160_vm0, %v146_v22  ;;  %v4379_v22 = vpop.f32.mrf.mxu1 }
 0x39c   :  { %5653 = vst [vmem:[#allocation31_spill] sm:$0xff] %v4379_v22 }
 0x39f   :  { %v3070_v31 = vpop.eup %3069 }
 0x3a0   :  { %v862_v53 = vpop.f32.mrf.mxu0  ;;  %1407 = vmatmul.f32.gmra.mxu1 %v3070_v31 }
 0x3a1   :  { %3071 = vtanh.f32 %v862_v53  ;;  %v149_v53 = vld [vmem:[%s5617_s0 + $0x3b0] sm:$0xff] }
 0x3a3   :  { %2842 = vmatmul.msk.f32.gmra.mxu0 %vm160_vm0, %v147_v47 }
 0x3a7   :  { %v3072_v9 = vpop.eup %3071 }
 0x3a8   :  { %v865_v7 = vpop.f32.mrf.mxu0  ;;  %1410 = vmatmul.f32.gmra.mxu1 %v3072_v9  ;;  %v4385_v9 = vpop.f32.mrf.mxu1 }
 0x3a9   :  { %3073 = vtanh.f32 %v865_v7  ;;  %5654 = vst [vmem:[#allocation32_spill] sm:$0xff] %v4385_v9  ;;  %v150_v7 = vld [vmem:[%s5617_s0 + $0x3b8] sm:$0xff] }
 0x3ab   :  { %2843 = vmatmul.msk.f32.gmra.mxu0 %vm160_vm0, %v148_v17 }
 0x3af   :  { %v3074_v31 = vpop.eup %3073 }
 0x3b0   :  { %v868_v43 = vpop.f32.mrf.mxu0  ;;  %1413 = vmatmul.f32.gmra.mxu1 %v3074_v31 }
 0x3b1   :  { %3075 = vtanh.f32 %v868_v43  ;;  %v151_v43 = vld [vmem:[%s5617_s0 + $0x3c0] sm:$0xff] }
 0x3b3   :  { %2844 = vmatmul.msk.f32.gmra.mxu0 %vm160_vm0, %v149_v53  ;;  %v4394_v53 = vpop.f32.mrf.mxu1 }
 0x3b4   :  { %5655 = vst [vmem:[#allocation33_spill] sm:$0xff] %v4394_v53 }
 0x3b7   :  { %v3076_v47 = vpop.eup %3075 }
 0x3b8   :  { %v871_v1 = vpop.f32.mrf.mxu0  ;;  %1416 = vmatmul.f32.gmra.mxu1 %v3076_v47 }
 0x3b9   :  { %3077 = vtanh.f32 %v871_v1  ;;  %v152_v1 = vld [vmem:[%s5617_s0 + $0x3c8] sm:$0xff] }
 0x3bb   :  { %2845 = vmatmul.msk.f32.gmra.mxu0 %vm160_vm0, %v150_v7  ;;  %v4401_v7 = vpop.f32.mrf.mxu1 }
 0x3bc   :  { %5656 = vst [vmem:[#allocation34_spill] sm:$0xff] %v4401_v7 }
 0x3bf   :  { %v3078_v17 = vpop.eup %3077 }
 0x3c0   :  { %v874_v31 = vpop.f32.mrf.mxu0  ;;  %1419 = vmatmul.f32.gmra.mxu1 %v3078_v17 }
 0x3c1   :  { %3079 = vtanh.f32 %v874_v31  ;;  %v153_v31 = vld [vmem:[%s5617_s0 + $0x3d0] sm:$0xff] }
 0x3c3   :  { %2846 = vmatmul.msk.f32.gmra.mxu0 %vm160_vm0, %v151_v43  ;;  %v4407_v43 = vpop.f32.mrf.mxu1 }
 0x3c4   :  { %5657 = vst [vmem:[#allocation35_spill] sm:$0xff] %v4407_v43 }
 0x3c7   :  { %v3080_v47 = vpop.eup %3079 }
 0x3c8   :  { %v877_v9 = vpop.f32.mrf.mxu0  ;;  %1422 = vmatmul.f32.gmra.mxu1 %v3080_v47 }
 0x3c9   :  { %3081 = vtanh.f32 %v877_v9  ;;  %v154_v9 = vld [vmem:[%s5617_s0 + $0x3d8] sm:$0xff] }
 0x3cb   :  { %2847 = vmatmul.msk.f32.gmra.mxu0 %vm160_vm0, %v152_v1 }
 0x3cf   :  { %v3082_v17 = vpop.eup %3081 }
 0x3d0   :  { %v880_v22 = vpop.f32.mrf.mxu0  ;;  %1425 = vmatmul.f32.gmra.mxu1 %v3082_v17  ;;  %v4413_v17 = vpop.f32.mrf.mxu1 }
 0x3d1   :  { %3083 = vtanh.f32 %v880_v22  ;;  %5658 = vst [vmem:[#allocation36_spill] sm:$0xff] %v4413_v17  ;;  %v155_v22 = vld [vmem:[%s5617_s0 + $0x3e0] sm:$0xff] }
 0x3d3   :  { %2848 = vmatmul.msk.f32.gmra.mxu0 %vm160_vm0, %v153_v31 }
 0x3d7   :  { %v3084_v47 = vpop.eup %3083 }
 0x3d8   :  { %v883_v53 = vpop.f32.mrf.mxu0  ;;  %1428 = vmatmul.f32.gmra.mxu1 %v3084_v47 }
 0x3d9   :  { %3085 = vtanh.f32 %v883_v53  ;;  %v156_v53 = vld [vmem:[%s5617_s0 + $0x3e8] sm:$0xff] }
 0x3db   :  { %2849 = vmatmul.msk.f32.gmra.mxu0 %vm160_vm0, %v154_v9  ;;  %v4422_v9 = vpop.f32.mrf.mxu1 }
 0x3dc   :  { %5659 = vst [vmem:[#allocation37_spill] sm:$0xff] %v4422_v9 }
 0x3df   :  { %v3086_v1 = vpop.eup %3085 }
 0x3e0   :  { %v886_v7 = vpop.f32.mrf.mxu0  ;;  %1431 = vmatmul.f32.gmra.mxu1 %v3086_v1 }
 0x3e1   :  { %3087 = vtanh.f32 %v886_v7  ;;  %v157_v7 = vld [vmem:[%s5617_s0 + $0x3f0] sm:$0xff] }
 0x3e3   :  { %2850 = vmatmul.msk.f32.gmra.mxu0 %vm160_vm0, %v155_v22  ;;  %v4429_v22 = vpop.f32.mrf.mxu1 }
 0x3e4   :  { %5660 = vst [vmem:[#allocation38_spill] sm:$0xff] %v4429_v22 }
 0x3e7   :  { %v3088_v31 = vpop.eup %3087 }
 0x3e8   :  { %v889_v47 = vpop.f32.mrf.mxu0  ;;  %1434 = vmatmul.f32.gmra.mxu1 %v3088_v31 }
 0x3e9   :  { %3089 = vtanh.f32 %v889_v47  ;;  %v158_v47 = vld [vmem:[%s5617_s0 + $0x3f8] sm:$0xff] }
 0x3eb   :  { %2851 = vmatmul.msk.f32.gmra.mxu0 %vm160_vm0, %v156_v53  ;;  %v4436_v53 = vpop.f32.mrf.mxu1 }
 0x3ec   :  { %5661 = vst [vmem:[#allocation39_spill] sm:$0xff] %v4436_v53 }
 0x3ef   :  { %v3090_v1 = vpop.eup %3089 }
 0x3f0   :  { %v892_v17 = vpop.f32.mrf.mxu0  ;;  %1437 = vmatmul.f32.gmra.mxu1 %v3090_v1 }
 0x3f1   :  { %3091 = vtanh.f32 %v892_v17 }
 0x3f3   :  { %2852 = vmatmul.msk.f32.gmra.mxu0 %vm160_vm0, %v157_v7  ;;  %v4438_v9 = vpop.f32.mrf.mxu1 }
 0x3f4   :  { %5662 = vst [vmem:[#allocation40_spill] sm:$0xff] %v4438_v9 }
 0x3f7   :  { %v3092_v31 = vpop.eup %3091 }
 0x3f8   :  { %v895_v43 = vpop.f32.mrf.mxu0  ;;  %1440 = vmatmul.f32.gmra.mxu1 %v3092_v31 }
 0x3f9   :  { %3093 = vtanh.f32 %v895_v43 }
 0x3fa   :  { %3095 = vtanh.f32 %v3807_v33 }
 0x3fb   :  { %2853 = vmatmul.msk.f32.gmra.mxu0 %vm160_vm0, %v158_v47  ;;  %v4440_v47 = vpop.f32.mrf.mxu1 }
 0x3fc   :  { %5663 = vst [vmem:[#allocation41_spill] sm:$0xff] %v4440_v47 }
 0x3ff   :  { %v3094_v1 = vpop.eup %3093 }
 0x400   :  { %v898_v17 = vpop.f32.mrf.mxu0  ;;  %1443 = vmatmul.f32.gmra.mxu1 %v3094_v1  ;;  %v3096_v7 = vpop.eup %3095 }
 0x401   :  { %3097 = vtanh.f32 %v898_v17 }
 0x403   :  { %1110 = vmatmul.f32.vlgmr.msrb.gmra.mxu0 %v3096_v7  ;;  %v4442_v1 = vpop.f32.mrf.mxu1 }
 0x404   :  { %5664 = vst [vmem:[#allocation42_spill] sm:$0xff] %v4442_v1 }
 0x407   :  { %v3098_v22 = vpop.eup %3097 }
 0x408   :  { %v901_v31 = vpop.f32.mrf.mxu0  ;;  %1446 = vmatmul.f32.gmra.mxu1 %v3098_v22 }
 0x409   :  { %3099 = vtanh.f32 %v901_v31 }
 0x40b   :  { %v4444_v9 = vpop.f32.mrf.mxu1 }
 0x40c   :  { %5665 = vst [vmem:[#allocation43_spill] sm:$0xff] %v4444_v9 }
 0x40f   :  { %v3100_v57 = vpop.eup %3099 }
 0x410   :  { %v904_v43 = vpop.f32.mrf.mxu0  ;;  %1449 = vmatmul.f32.gmra.mxu1 %v3100_v57 }
 0x411   :  { %3101 = vtanh.f32 %v904_v43 }
 0x413   :  { %v4446_v43 = vpop.f32.mrf.mxu1 }
 0x417   :  { %v3102_v33 = vpop.eup %3101 }
 0x418   :  { %v907_v53 = vpop.f32.mrf.mxu0  ;;  %1452 = vmatmul.f32.gmra.mxu1 %v3102_v33 }
 0x419   :  { %3103 = vtanh.f32 %v907_v53 }
 0x41b   :  { %v4448_v1 = vpop.f32.mrf.mxu1 }
 0x41c   :  { %5666 = vst [vmem:[#allocation44_spill] sm:$0xff] %v4448_v1 }
 0x41f   :  { %v3104_v17 = vpop.eup %3103 }
 0x420   :  { %v910_v7 = vpop.f32.mrf.mxu0  ;;  %1455 = vmatmul.f32.gmra.mxu1 %v3104_v17 }
 0x421   :  { %3105 = vtanh.f32 %v910_v7 }
 0x423   :  { %v4450_v9 = vpop.f32.mrf.mxu1 }
 0x424   :  { %5667 = vst [vmem:[#allocation45_spill] sm:$0xff] %v4450_v9 }
 0x427   :  { %v3106_v22 = vpop.eup %3105 }
 0x428   :  { %v913_v31 = vpop.f32.mrf.mxu0  ;;  %1458 = vmatmul.f32.gmra.mxu1 %v3106_v22 }
 0x429   :  { %3107 = vtanh.f32 %v913_v31 }
 0x42f   :  { %v3108_v57 = vpop.eup %3107 }
 0x430   :  { %v916_v47 = vpop.f32.mrf.mxu0  ;;  %1461 = vmatmul.f32.gmra.mxu1 %v3108_v57  ;;  %v1637_v57 = vld [vmem:[%s5620_s4 + $0x70] sm:$0xff] }
 0x431   :  { %3109 = vtanh.f32 %v916_v47  ;;  %v1638_v47 = vld [vmem:[%s5620_s4 + $0x78] sm:$0xff] }
 0x432   :  { %1643 = vmatpush.msra.mxu2 %v1638_v47  ;;  %v1633_v47 = vld [vmem:[%s5620_s4 + $0x50] sm:$0xff] }
 0x434   :  { %1644 = vmatpush.msra.mxu2 %v1637_v57  ;;  %v1632_v57 = vld [vmem:[%s5620_s4 + $0x48] sm:$0xff] }
 0x437   :  { %v3110_v33 = vpop.eup %3109 }
 0x438   :  { %v919_v53 = vpop.f32.mrf.mxu0  ;;  %1464 = vmatmul.f32.gmra.mxu1 %v3110_v33  ;;  %v4458_v33 = vpop.f32.mrf.mxu1 }
 0x439   :  { %3111 = vtanh.f32 %v919_v53  ;;  %5668 = vst [vmem:[#allocation46_spill] sm:$0xff] %v4458_v33  ;;  %v1636_v53 = vld [vmem:[%s5620_s4 + $0x68] sm:$0xff] }
 0x43a   :  { %1645 = vmatpush.msra.mxu2 %v1636_v53 }
 0x43f   :  { %v3112_v17 = vpop.eup %3111 }
 0x440   :  { %v922_v7 = vpop.f32.mrf.mxu0  ;;  %1467 = vmatmul.f32.gmra.mxu1 %v3112_v17 }
 0x441   :  { %3113 = vtanh.f32 %v922_v7 }
 0x447   :  { %v3114_v22 = vpop.eup %3113 }
 0x448   :  { %v925_v31 = vpop.f32.mrf.mxu0  ;;  %1470 = vmatmul.f32.gmra.mxu1 %v3114_v22  ;;  %v1635_v22 = vld [vmem:[%s5620_s4 + $0x60] sm:$0xff] }
 0x449   :  { %3115 = vtanh.f32 %v925_v31  ;;  %1646 = vmatpush.msra.mxu2 %v1635_v22  ;;  %v1634_v31 = vld [vmem:[%s5620_s4 + $0x58] sm:$0xff]  ;;  %v1631_v22 = vld [vmem:[%s5620_s4 + $0x40] sm:$0xff] }
 0x44b   :  { %1647 = vmatpush.msra.mxu2 %v1634_v31  ;;  %v1630_v31 = vld [vmem:[%s5620_s4 + $0x38] sm:$0xff] }
 0x44d   :  { %1648 = vmatpush.msra.mxu2 %v1633_v47  ;;  %v1629_v47 = vld [vmem:[%s5620_s4 + $0x30] sm:$0xff] }
 0x44f   :  { %v3116_v17 = vpop.eup %3115  ;;  %1649 = vmatpush.msra.mxu2 %v1632_v57  ;;  %v1628_v57 = vld [vmem:[%s5620_s4 + $0x28] sm:$0xff] }
 0x450   :  { %v928_v7 = vpop.f32.mrf.mxu0  ;;  %1473 = vmatmul.f32.gmra.mxu1 %v3116_v17  ;;  %v4475_v17 = vpop.f32.mrf.mxu1 }
 0x451   :  { %3117 = vtanh.f32 %v928_v7  ;;  %5669 = vst [vmem:[#allocation47_spill] sm:$0xff] %v4475_v17  ;;  %1650 = vmatpush.msra.mxu2 %v1631_v22 }
 0x453   :  { %1651 = vmatpush.msra.mxu2 %v1630_v31  ;;  %v1626_v31 = vld [vmem:[%s5620_s4 + $0x18] sm:$0xff] }
 0x455   :  { %1652 = vmatpush.msra.mxu2 %v1629_v47  ;;  %v1625_v47 = vld [vmem:[%s5620_s4 + $0x10] sm:$0xff] }
 0x457   :  { %v3118_v53 = vpop.eup %3117  ;;  %1653 = vmatpush.msra.mxu2 %v1628_v57  ;;  %v1624_v57 = vld [vmem:[%s5620_s4 + $0x8] sm:$0xff] }
 0x458   :  { %v931_v7 = vpop.f32.mrf.mxu0  ;;  %1476 = vmatmul.f32.gmra.mxu1 %v3118_v53  ;;  %v4492_v22 = vpop.f32.mrf.mxu1 }
 0x459   :  { %3119 = vtanh.f32 %v931_v7  ;;  %v1627_v7 = vld [vmem:[%s5620_s4 + $0x20] sm:$0xff]  ;;  %5670 = vst [vmem:[#allocation48_spill] sm:$0xff] %v4492_v22 }
 0x45a   :  { %1654 = vmatpush.msra.mxu2 %v1627_v7  ;;  %v1623_v7 = vld [vmem:[%s5620_s4] sm:$0xff] }
 0x45c   :  { %1655 = vmatpush.msra.mxu2 %v1626_v31 }
 0x45e   :  { %1656 = vmatpush.msra.mxu2 %v1625_v47 }
 0x45f   :  { %v3120_v53 = vpop.eup %3119 }
 0x460   :  { %v934_v17 = vpop.f32.mrf.mxu0  ;;  %1479 = vmatmul.f32.gmra.mxu1 %v3120_v53  ;;  %1657 = vmatpush.msra.mxu2 %v1624_v57  ;;  %v4506_v31 = vpop.f32.mrf.mxu1 }
 0x461   :  { %3121 = vtanh.f32 %v934_v17  ;;  %5671 = vst [vmem:[#allocation49_spill] sm:$0xff] %v4506_v31 }
 0x462   :  { %1658 = vmatpush.msra.mxu2 %v1623_v7 }
 0x467   :  { %v3122_v53 = vpop.eup %3121 }
 0x468   :  { %v937_v17 = vpop.f32.mrf.mxu0  ;;  %1482 = vmatmul.f32.gmra.mxu1 %v3122_v53  ;;  %v4508_v47 = vpop.f32.mrf.mxu1  ;;  %v4513_v53 = vld [vmem:[%s5619_s3] ss:$0 sm:$0xff] }
 0x469   :  { %3123 = vtanh.f32 %v937_v17  ;;  %5672 = vst [vmem:[#allocation50_spill] sm:$0xff] %v4508_v47 }
 0x46f   :  { %v3124_v22 = vpop.eup %3123 }
 0x470   :  { %v940_v33 = vpop.f32.mrf.mxu0  ;;  %1485 = vmatmul.f32.gmra.mxu1 %v3124_v22  ;;  %v4515_v17 = vpop.f32.mrf.mxu1 }
 0x471   :  { %3125 = vtanh.f32 %v940_v33  ;;  %5673 = vst [vmem:[#allocation51_spill] sm:$0xff] %v4515_v17  ;;  %v1115_v33 = vadd.f32 %v4513_v53, %v3881_v21  ;;  %v1121_v17 = vadd.f32 %v4513_v53, %v3893_v29  ;;  %v1127_v21 = vadd.f32 %v4513_v53, %v3905_v38 }
 0x472   :  { %v1133_v29 = vadd.f32 %v4513_v53, %v3917_v46  ;;  %v1139_v38 = vadd.f32 %v4513_v53, %v3929_v54  ;;  %v1145_v46 = vadd.f32 %v4513_v53, %v3941_v62  ;;  %v2186_v54 = vld [vmem:[%s5622_s6 + $0x70] sm:$0xff]  ;;  %v2184_v62 = vld [vmem:[%s5622_s6 + $0x60] sm:$0xff] }
 0x477   :  { %v3126_v9 = vpop.eup %3125 }
 0x478   :  { %v943_v1 = vpop.f32.mrf.mxu0  ;;  %1488 = vmatmul.f32.gmra.mxu1 %v3126_v9  ;;  %v1118_v9 = vadd.f32 %v4513_v53, %v3887_v25  ;;  %v1130_v25 = vadd.f32 %v4513_v53, %v3911_v42  ;;  %v1142_v42 = vadd.f32 %v4513_v53, %v3935_v58  ;;  %v2185_v58 = vld [vmem:[%s5622_s6 + $0x68] sm:$0xff] }
 0x479   :  { %3127 = vtanh.f32 %v943_v1 }
 0x47f   :  { %v3128_v57 = vpop.eup %3127 }
 0x480   :  { %v1111_v7 = vpop.f32.mrf.mxu0  ;;  %1491 = vmatmul.f32.gmra.mxu1 %v3128_v57 }
 0x481   :  { %v1112_v31 = vadd.f32 %v4513_v53, %v1111_v7 }
 0x483   :  { %3129 = vtanh.f32 %v1112_v31  ;;  %v1124_v31 = vadd.f32 %v4513_v53, %v3899_v34  ;;  %v1136_v34 = vadd.f32 %v4513_v53, %v3923_v50  ;;  %v2187_v50 = vld [vmem:[%s5622_s6 + $0x78] sm:$0xff] }
 0x484   :  { %3131 = vtanh.f32 %v1115_v33  ;;  %2192 = vmatpush.msra.mxu3 %v2187_v50  ;;  %v1157_v50 = vadd.f32 %v4513_v53, %v3965_v14 }
 0x485   :  { %3133 = vtanh.f32 %v1118_v9 }
 0x486   :  { %3135 = vtanh.f32 %v1121_v17  ;;  %2193 = vmatpush.msra.mxu3 %v2186_v54  ;;  %v1160_v54 = vadd.f32 %v4513_v53, %v3971_v18  ;;  %v1166_v18 = vadd.f32 %v4513_v53, %v3983_v28 }
 0x487   :  { %3137 = vtanh.f32 %v1124_v31  ;;  %v1148_v31 = vadd.f32 %v4513_v53, %v3947_v2  ;;  %v2180_v2 = vld [vmem:[%s5622_s6 + $0x40] sm:$0xff] }
 0x488   :  { %3139 = vtanh.f32 %v1127_v21  ;;  %2194 = vmatpush.msra.mxu3 %v2185_v58 }
 0x489   :  { %v3130_v22 = vpop.eup %3129  ;;  %3141 = vtanh.f32 %v1130_v25  ;;  %v2181_v25 = vld [vmem:[%s5622_s6 + $0x48] sm:$0xff] }
 0x48a   :  { %1659 = vmatmul.f32.vlgmr.msra.gmra.mxu2 %v3130_v22  ;;  %v3132_v1 = vpop.eup %3131  ;;  %3143 = vtanh.f32 %v1133_v29  ;;  %2195 = vmatpush.msra.mxu3 %v2184_v62  ;;  %v1151_v29 = vadd.f32 %v4513_v53, %v3953_v6  ;;  %v1154_v6 = vadd.f32 %v4513_v53, %v3959_v10  ;;  %v2172_v10 = vld [vmem:[%s5622_s6] sm:$0xff]  ;;  %v1163_v62 = vadd.f32 %v4513_v53, %v3977_v23 }
 0x48b   :  { %v3134_v47 = vpop.eup %3133  ;;  %3145 = vtanh.f32 %v1136_v34  ;;  %v2178_v34 = vld [vmem:[%s5622_s6 + $0x30] sm:$0xff] }
 0x48c   :  { %v3136_v57 = vpop.eup %3135  ;;  %3147 = vtanh.f32 %v1139_v38  ;;  %v2176_v38 = vld [vmem:[%s5622_s6 + $0x20] sm:$0xff] }
 0x48d   :  { %v3138_v7 = vpop.eup %3137  ;;  %3149 = vtanh.f32 %v1142_v42 }
 0x48e   :  { %v3140_v33 = vpop.eup %3139  ;;  %3151 = vtanh.f32 %v1145_v46  ;;  %v2173_v46 = vld [vmem:[%s5622_s6 + $0x8] sm:$0xff] }
 0x48f   :  { %3153 = vtanh.f32 %v1148_v31 }
 0x490   :  { %3155 = vtanh.f32 %v1151_v29 }
 0x491   :  { %3157 = vtanh.f32 %v1154_v6 }
 0x492   :  { %1662 = vmatmul.f32.gmra.mxu2 %v3132_v1  ;;  %3159 = vtanh.f32 %v1157_v50  ;;  %v1178_v50 = vadd.f32 %v4513_v53, %v4007_v51 }
 0x493   :  { %3161 = vtanh.f32 %v1160_v54 }
 0x494   :  { %3163 = vtanh.f32 %v1163_v62  ;;  %v1181_v62 = vadd.f32 %v4513_v53, %v4013_v56 }
 0x49a   :  { %1665 = vmatmul.f32.gmra.mxu2 %v3134_v47  ;;  %v3142_v47 = vpop.eup %3141 }
 0x49b   :  { %v3144_v17 = vpop.eup %3143 }
 0x49c   :  { %v3146_v22 = vpop.eup %3145 }
 0x49d   :  { %v3148_v9 = vpop.eup %3147 }
 0x49e   :  { %v3150_v1 = vpop.eup %3149 }
 0x49f   :  { %v3152_v21 = vpop.eup %3151 }
 0x4a2   :  { %1668 = vmatmul.f32.gmra.mxu2 %v3136_v57  ;;  %v2183_v57 = vld [vmem:[%s5622_s6 + $0x58] sm:$0xff] }
 0x4a3   :  { %2196 = vmatpush.msra.mxu3 %v2183_v57  ;;  %v4603_v57 = vld [vmem:[%s5621_s5] ss:$0 sm:$0xff] }
 0x4aa   :  { %1671 = vmatmul.f32.gmra.mxu2 %v3138_v7  ;;  %v2182_v7 = vld [vmem:[%s5622_s6 + $0x50] sm:$0xff] }
 0x4ab   :  { %2197 = vmatpush.msra.mxu3 %v2182_v7 }
 0x4ad   :  { %2198 = vmatpush.msra.mxu3 %v2181_v25 }
 0x4af   :  { %2199 = vmatpush.msra.mxu3 %v2180_v2 }
 0x4b2   :  { %1674 = vmatmul.f32.gmra.mxu2 %v3140_v33  ;;  %v2179_v33 = vld [vmem:[%s5622_s6 + $0x38] sm:$0xff] }
 0x4b3   :  { %2200 = vmatpush.msra.mxu3 %v2179_v33  ;;  %v1169_v33 = vadd.f32 %v4513_v53, %v3989_v35 }
 0x4b5   :  { %2201 = vmatpush.msra.mxu3 %v2178_v34 }
 0x4ba   :  { %1677 = vmatmul.f32.gmra.mxu2 %v3142_v47  ;;  %v3154_v47 = vpop.eup %3153 }
 0x4bb   :  { %v3156_v42 = vpop.eup %3155 }
 0x4c2   :  { %1680 = vmatmul.f32.gmra.mxu2 %v3144_v17  ;;  %v2177_v17 = vld [vmem:[%s5622_s6 + $0x28] sm:$0xff] }
 0x4c3   :  { %2202 = vmatpush.msra.mxu3 %v2177_v17  ;;  %v1172_v17 = vadd.f32 %v4513_v53, %v3995_v40 }
 0x4c5   :  { %2203 = vmatpush.msra.mxu3 %v2176_v38 }
 0x4ca   :  { %1683 = vmatmul.f32.gmra.mxu2 %v3146_v22  ;;  %v2175_v22 = vld [vmem:[%s5622_s6 + $0x18] sm:$0xff] }
 0x4cb   :  { %2204 = vmatpush.msra.mxu3 %v2175_v22 }
 0x4d2   :  { %1686 = vmatmul.f32.gmra.mxu2 %v3148_v9  ;;  %v2174_v9 = vld [vmem:[%s5622_s6 + $0x10] sm:$0xff] }
 0x4d3   :  { %2205 = vmatpush.msra.mxu3 %v2174_v9 }
 0x4d5   :  { %2206 = vmatpush.msra.mxu3 %v2173_v46 }
 0x4d7   :  { %2207 = vmatpush.msra.mxu3 %v2172_v10 }
 0x4da   :  { %1689 = vmatmul.f32.gmra.mxu2 %v3150_v1  ;;  %v3158_v1 = vpop.eup %3157 }
 0x4db   :  { %v3160_v58 = vpop.eup %3159 }
 0x4dc   :  { %v3162_v31 = vpop.eup %3161 }
 0x4dd   :  { %v3164_v7 = vpop.eup %3163 }
 0x4e2   :  { %1692 = vmatmul.f32.gmra.mxu2 %v3152_v21 }
 0x4ea   :  { %1695 = vmatmul.f32.gmra.mxu2 %v3154_v47 }
 0x4f2   :  { %1698 = vmatmul.f32.gmra.mxu2 %v3156_v42  ;;  %v1175_v42 = vadd.f32 %v4513_v53, %v4001_v45 }
 0x4fa   :  { %1701 = vmatmul.f32.gmra.mxu2 %v3158_v1 }
 0x502   :  { %1704 = vmatmul.f32.gmra.mxu2 %v3160_v58 }
 0x50a   :  { %1707 = vmatmul.f32.gmra.mxu2 %v3162_v31 }
 0x50d   :  { %v1660_v14 = vpop.f32.mrf.mxu2 }
 0x50e   :  { %v1661_v21 = vadd.f32 %v4603_v57, %v1660_v14 }
 0x510   :  { %3165 = vtanh.f32 %v1661_v21 }
 0x511   :  { %3167 = vtanh.f32 %v1166_v18  ;;  %v1184_v18 = vadd.f32 %v4513_v53, %v4019_v61 }
 0x512   :  { %1710 = vmatmul.f32.gmra.mxu2 %v3164_v7 }
 0x515   :  { %v1663_v25 = vpop.f32.mrf.mxu2 }
 0x516   :  { %v3166_v23 = vpop.eup %3165  ;;  %v1664_v2 = vadd.f32 %v4603_v57, %v1663_v25 }
 0x517   :  { %2208 = vmatmul.f32.vlgmr.msra.gmra.mxu3 %v3166_v23  ;;  %v3168_v29 = vpop.eup %3167 }
 0x518   :  { %3169 = vtanh.f32 %v1664_v2  ;;  %v1187_v2 = vadd.f32 %v4513_v53, %v4025_v3 }
 0x519   :  { %3171 = vtanh.f32 %v1169_v33 }
 0x51a   :  { %1713 = vmatmul.f32.gmra.mxu2 %v3168_v29 }
 0x51d   :  { %v1666_v47 = vpop.f32.mrf.mxu2 }
 0x51e   :  { %v3170_v34 = vpop.eup %3169  ;;  %v1667_v28 = vadd.f32 %v4603_v57, %v1666_v47 }
 0x51f   :  { %2211 = vmatmul.f32.gmra.mxu3 %v3170_v34  ;;  %v3172_v38 = vpop.eup %3171  ;;  %v1190_v34 = vadd.f32 %v4513_v53, %v4031_v8 }
 0x520   :  { %3173 = vtanh.f32 %v1667_v28 }
 0x521   :  { %3175 = vtanh.f32 %v1172_v17 }
 0x522   :  { %1716 = vmatmul.f32.gmra.mxu2 %v3172_v38 }
 0x525   :  { %v1669_v6 = vpop.f32.mrf.mxu2 }
 0x526   :  { %v3174_v22 = vpop.eup %3173  ;;  %v1670_v35 = vadd.f32 %v4603_v57, %v1669_v6  ;;  %v1193_v6 = vadd.f32 %v4513_v53, %v4037_v13 }
 0x527   :  { %2214 = vmatmul.f32.gmra.mxu3 %v3174_v22  ;;  %v3176_v9 = vpop.eup %3175 }
 0x528   :  { %3177 = vtanh.f32 %v1670_v35 }
 0x529   :  { %3179 = vtanh.f32 %v1175_v42 }
 0x52a   :  { %1719 = vmatmul.f32.gmra.mxu2 %v3176_v9  ;;  %v1196_v9 = vadd.f32 %v4513_v53, %v4043_v19 }
 0x52d   :  { %v1672_v46 = vpop.f32.mrf.mxu2 }
 0x52e   :  { %v3178_v10 = vpop.eup %3177  ;;  %v1673_v40 = vadd.f32 %v4603_v57, %v1672_v46 }
 0x52f   :  { %2217 = vmatmul.f32.gmra.mxu3 %v3178_v10  ;;  %v3180_v1 = vpop.eup %3179 }
 0x530   :  { %3181 = vtanh.f32 %v1673_v40 }
 0x531   :  { %3183 = vtanh.f32 %v1178_v50  ;;  %v1199_v50 = vadd.f32 %v4513_v53, %v4049_v26 }
 0x532   :  { %1722 = vmatmul.f32.gmra.mxu2 %v3180_v1 }
 0x535   :  { %v1675_v54 = vpop.f32.mrf.mxu2 }
 0x536   :  { %v3182_v58 = vpop.eup %3181  ;;  %v1676_v45 = vadd.f32 %v4603_v57, %v1675_v54 }
 0x537   :  { %2220 = vmatmul.f32.gmra.mxu3 %v3182_v58  ;;  %v3184_v31 = vpop.eup %3183 }
 0x538   :  { %3185 = vtanh.f32 %v1676_v45  ;;  %v1202_v45 = vadd.f32 %v4513_v53, %v4055_v32 }
 0x539   :  { %3187 = vtanh.f32 %v1181_v62 }
 0x53a   :  { %1725 = vmatmul.f32.gmra.mxu2 %v3184_v31  ;;  %v13_v31 = vstv %s5623_s7 }
 0x53b   :  { %14 = vst [vmem:[#allocation2] sm:$0x1] %v13_v31 }
 0x53d   :  { %v1678_v14 = vpop.f32.mrf.mxu2 }
 0x53e   :  { %v3186_v21 = vpop.eup %3185  ;;  %v1679_v51 = vadd.f32 %v4603_v57, %v1678_v14 }
 0x53f   :  { %2223 = vmatmul.f32.gmra.mxu3 %v3186_v21  ;;  %v3188_v7 = vpop.eup %3187 }
 0x540   :  { %3189 = vtanh.f32 %v1679_v51  ;;  %v1205_v51 = vadd.f32 %v4513_v53, %v4061_v41 }
 0x541   :  { %3191 = vtanh.f32 %v1184_v18 }
 0x542   :  { %1728 = vmatmul.f32.gmra.mxu2 %v3188_v7 }
 0x545   :  { %v1681_v25 = vpop.f32.mrf.mxu2 }
 0x546   :  { %v3190_v23 = vpop.eup %3189  ;;  %v1682_v56 = vadd.f32 %v4603_v57, %v1681_v25 }
 0x547   :  { %2226 = vmatmul.f32.gmra.mxu3 %v3190_v23  ;;  %v3192_v33 = vpop.eup %3191  ;;  %v1208_v23 = vadd.f32 %v4513_v53, %v4067_v48 }
 0x548   :  { %3193 = vtanh.f32 %v1682_v56 }
 0x549   :  { %3195 = vtanh.f32 %v1187_v2 }
 0x54a   :  { %1731 = vmatmul.f32.gmra.mxu2 %v3192_v33 }
 0x54d   :  { %v1684_v29 = vpop.f32.mrf.mxu2 }
 0x54e   :  { %v3194_v47 = vpop.eup %3193  ;;  %v1685_v61 = vadd.f32 %v4603_v57, %v1684_v29  ;;  %v1211_v29 = vadd.f32 %v4513_v53, %v4073_v55 }
 0x54f   :  { %2229 = vmatmul.f32.gmra.mxu3 %v3194_v47  ;;  %v3196_v28 = vpop.eup %3195 }
 0x550   :  { %3197 = vtanh.f32 %v1685_v61 }
 0x551   :  { %3199 = vtanh.f32 %v1190_v34 }
 0x552   :  { %1734 = vmatmul.f32.gmra.mxu2 %v3196_v28  ;;  %v1214_v28 = vadd.f32 %v4513_v53, %v4079_v63 }
 0x555   :  { %v1687_v17 = vpop.f32.mrf.mxu2 }
 0x556   :  { %v3198_v38 = vpop.eup %3197  ;;  %v1688_v3 = vadd.f32 %v4603_v57, %v1687_v17 }
 0x557   :  { %2232 = vmatmul.f32.gmra.mxu3 %v3198_v38  ;;  %v3200_v22 = vpop.eup %3199 }
 0x558   :  { %3201 = vtanh.f32 %v1688_v3 }
 0x559   :  { %3203 = vtanh.f32 %v1193_v6  ;;  %v1217_v6 = vadd.f32 %v4513_v53, %v4085_v5 }
 0x55a   :  { %1737 = vmatmul.f32.gmra.mxu2 %v3200_v22  ;;  %v4662_v22 = vld [vmem:[#allocation2] ss:$0 sm:$0xff] }
 0x55d   :  { %v1690_v35 = vpop.f32.mrf.mxu2 }
 0x55e   :  { %v3202_v42 = vpop.eup %3201  ;;  %v1691_v8 = vadd.f32 %v4603_v57, %v1690_v35 }
 0x55f   :  { %2235 = vmatmul.f32.gmra.mxu3 %v3202_v42  ;;  %v3204_v46 = vpop.eup %3203 }
 0x560   :  { %3205 = vtanh.f32 %v1691_v8 }
 0x561   :  { %3207 = vtanh.f32 %v1196_v9 }
 0x562   :  { %1740 = vmatmul.f32.gmra.mxu2 %v3204_v46  ;;  %v1220_v46 = vadd.f32 %v4513_v53, %v4091_v12  ;;  %v1223_v12 = vadd.f32 %v4513_v53, %v4097_v20  ;;  %v1226_v20 = vadd.f32 %v4513_v53, %v4103_v30  ;;  %v1229_v30 = vadd.f32 %v4513_v53, %v4109_v39 }
 0x563   :  { %v1232_v39 = vadd.f32 %v4513_v53, %v4115_v49  ;;  %v1235_v49 = vadd.f32 %v4513_v53, %v4121_v59  ;;  %v1238_v59 = vadd.f32 %v4513_v53, %v4127_v4  ;;  %v1241_v4 = vadd.f32 %v4513_v53, %v4133_v15 }
 0x564   :  { %v1244_v15 = vadd.f32 %v4513_v53, %v4139_v24  ;;  %v1247_v24 = vadd.f32 %v4513_v53, %v4145_v37  ;;  %v1250_v37 = vadd.f32 %v4513_v53, %v4151_v52  ;;  %v1253_v52 = vadd.f32 %v4513_v53, %v4157_v0 }
 0x565   :  { %v1693_v10 = vpop.f32.mrf.mxu2  ;;  %v1256_v0 = vadd.f32 %v4513_v53, %v4163_v11  ;;  %v1259_v11 = vadd.f32 %v4513_v53, %v4169_v27  ;;  %v1262_v27 = vadd.f32 %v4513_v53, %v4175_v44  ;;  %v1265_v44 = vadd.f32 %v4513_v53, %v4181_v60 }
 0x566   :  { %v3206_v40 = vpop.eup %3205  ;;  %v1694_v13 = vadd.f32 %v4603_v57, %v1693_v10  ;;  %v1268_v60 = vadd.f32 %v4513_v53, %v4187_v16  ;;  %v1271_v16 = vadd.f32 %v4513_v53, %v4193_v36 }
 0x567   :  { %2238 = vmatmul.f32.gmra.mxu3 %v3206_v40  ;;  %v3208_v1 = vpop.eup %3207 }
 0x568   :  { %3209 = vtanh.f32 %v1694_v13 }
 0x569   :  { %3211 = vtanh.f32 %v1199_v50 }
 0x56a   :  { %1743 = vmatmul.f32.gmra.mxu2 %v3208_v1 }
 0x56d   :  { %v1696_v54 = vpop.f32.mrf.mxu2 }
 0x56e   :  { %v3210_v58 = vpop.eup %3209  ;;  %v1697_v19 = vadd.f32 %v4603_v57, %v1696_v54 }
 0x56f   :  { %2241 = vmatmul.f32.gmra.mxu3 %v3210_v58  ;;  %v3212_v62 = vpop.eup %3211 }
 0x570   :  { %3213 = vtanh.f32 %v1697_v19 }
 0x571   :  { %3215 = vtanh.f32 %v1202_v45 }
 0x572   :  { %1746 = vmatmul.f32.gmra.mxu2 %v3212_v62 }
 0x575   :  { %v1699_v26 = vpop.f32.mrf.mxu2 }
 0x576   :  { %v3214_v14 = vpop.eup %3213  ;;  %v1700_v21 = vadd.f32 %v4603_v57, %v1699_v26 }
 0x577   :  { %2244 = vmatmul.f32.gmra.mxu3 %v3214_v14  ;;  %v3216_v32 = vpop.eup %3215 }
 0x578   :  { %3217 = vtanh.f32 %v1700_v21 }
 0x579   :  { %3219 = vtanh.f32 %v1205_v51 }
 0x57a   :  { %1749 = vmatmul.f32.gmra.mxu2 %v3216_v32 }
 0x57d   :  { %v1702_v18 = vpop.f32.mrf.mxu2 }
 0x57e   :  { %v3218_v7 = vpop.eup %3217  ;;  %v1703_v25 = vadd.f32 %v4603_v57, %v1702_v18 }
 0x57f   :  { %2247 = vmatmul.f32.gmra.mxu3 %v3218_v7  ;;  %v3220_v56 = vpop.eup %3219 }
 0x580   :  { %3221 = vtanh.f32 %v1703_v25 }
 0x581   :  { %3223 = vtanh.f32 %v1208_v23 }
 0x582   :  { %1752 = vmatmul.f32.gmra.mxu2 %v3220_v56 }
 0x585   :  { %v1705_v2 = vpop.f32.mrf.mxu2 }
 0x586   :  { %v3222_v33 = vpop.eup %3221  ;;  %v1706_v41 = vadd.f32 %v4603_v57, %v1705_v2 }
 0x587   :  { %2250 = vmatmul.f32.gmra.mxu3 %v3222_v33  ;;  %v3224_v47 = vpop.eup %3223 }
 0x588   :  { %3225 = vtanh.f32 %v1706_v41 }
 0x589   :  { %3227 = vtanh.f32 %v1211_v29 }
 0x58a   :  { %1755 = vmatmul.f32.gmra.mxu2 %v3224_v47 }
 0x58d   :  { %v1708_v61 = vpop.f32.mrf.mxu2 }
 0x58e   :  { %v3226_v34 = vpop.eup %3225  ;;  %v1709_v48 = vadd.f32 %v4603_v57, %v1708_v61 }
 0x58f   :  { %2253 = vmatmul.f32.gmra.mxu3 %v3226_v34  ;;  %v3228_v17 = vpop.eup %3227 }
 0x590   :  { %3229 = vtanh.f32 %v1709_v48 }
 0x591   :  { %3231 = vtanh.f32 %v1214_v28 }
 0x592   :  { %1758 = vmatmul.f32.gmra.mxu2 %v3228_v17 }
 0x595   :  { %v1711_v38 = vpop.f32.mrf.mxu2 }
 0x596   :  { %v3230_v3 = vpop.eup %3229  ;;  %v1712_v55 = vadd.f32 %v4603_v57, %v1711_v38 }
 0x597   :  { %2256 = vmatmul.f32.gmra.mxu3 %v3230_v3  ;;  %v3232_v35 = vpop.eup %3231 }
 0x598   :  { %3233 = vtanh.f32 %v1712_v55 }
 0x599   :  { %3235 = vtanh.f32 %v1217_v6 }
 0x59a   :  { %1761 = vmatmul.f32.gmra.mxu2 %v3232_v35  ;;  %v2209_v42 = vpop.f32.mrf.mxu3 }
 0x59b   :  { %v2210_v63 = vadd.f32 %v4662_v22, %v2209_v42 }
 0x59d   :  { %2594 = vst.msk [vmem:[%s5624_s8] sm:$0xff] %vm2593_vm1, %v2210_v63  ;;  %v1714_v8 = vpop.f32.mrf.mxu2 }
 0x59e   :  { %v3234_v9 = vpop.eup %3233  ;;  %v1715_v5 = vadd.f32 %v4603_v57, %v1714_v8 }
 0x59f   :  { %2259 = vmatmul.f32.gmra.mxu3 %v3234_v9  ;;  %v3236_v10 = vpop.eup %3235 }
 0x5a0   :  { %3237 = vtanh.f32 %v1715_v5 }
 0x5a1   :  { %3239 = vtanh.f32 %v1220_v46 }
 0x5a2   :  { %1764 = vmatmul.f32.gmra.mxu2 %v3236_v10  ;;  %v2212_v40 = vpop.f32.mrf.mxu3 }
 0x5a3   :  { %v2213_v13 = vadd.f32 %v4662_v22, %v2212_v40 }
 0x5a5   :  { %2595 = vst.msk [vmem:[%s5624_s8 + $0x8] sm:$0xff] %vm2593_vm1, %v2213_v13  ;;  %v1717_v50 = vpop.f32.mrf.mxu2 }
 0x5a6   :  { %v3238_v1 = vpop.eup %3237  ;;  %v1718_v54 = vadd.f32 %v4603_v57, %v1717_v50 }
 0x5a7   :  { %2262 = vmatmul.f32.gmra.mxu3 %v3238_v1  ;;  %v3240_v58 = vpop.eup %3239 }
 0x5a8   :  { %3241 = vtanh.f32 %v1718_v54 }
 0x5a9   :  { %3243 = vtanh.f32 %v1223_v12 }
 0x5aa   :  { %1767 = vmatmul.f32.gmra.mxu2 %v3240_v58  ;;  %v2215_v19 = vpop.f32.mrf.mxu3 }
 0x5ab   :  { %v2216_v45 = vadd.f32 %v4662_v22, %v2215_v19 }
 0x5ad   :  { %2596 = vst.msk [vmem:[%s5624_s8 + $0x10] sm:$0xff] %vm2593_vm1, %v2216_v45  ;;  %v1720_v62 = vpop.f32.mrf.mxu2 }
 0x5ae   :  { %v3242_v31 = vpop.eup %3241  ;;  %v1721_v26 = vadd.f32 %v4603_v57, %v1720_v62 }
 0x5af   :  { %2265 = vmatmul.f32.gmra.mxu3 %v3242_v31  ;;  %v3244_v14 = vpop.eup %3243 }
 0x5b0   :  { %3245 = vtanh.f32 %v1721_v26 }
 0x5b1   :  { %3247 = vtanh.f32 %v1226_v20 }
 0x5b2   :  { %1770 = vmatmul.f32.gmra.mxu2 %v3244_v14  ;;  %v2218_v21 = vpop.f32.mrf.mxu3 }
 0x5b3   :  { %v2219_v51 = vadd.f32 %v4662_v22, %v2218_v21 }
 0x5b5   :  { %2597 = vst.msk [vmem:[%s5624_s8 + $0x18] sm:$0xff] %vm2593_vm1, %v2219_v51  ;;  %v1723_v32 = vpop.f32.mrf.mxu2 }
 0x5b6   :  { %v3246_v18 = vpop.eup %3245  ;;  %v1724_v7 = vadd.f32 %v4603_v57, %v1723_v32 }
 0x5b7   :  { %2268 = vmatmul.f32.gmra.mxu3 %v3246_v18  ;;  %v3248_v25 = vpop.eup %3247 }
 0x5b8   :  { %3249 = vtanh.f32 %v1724_v7 }
 0x5b9   :  { %3251 = vtanh.f32 %v1229_v30 }
 0x5ba   :  { %1773 = vmatmul.f32.gmra.mxu2 %v3248_v25  ;;  %v2221_v23 = vpop.f32.mrf.mxu3 }
 0x5bb   :  { %v2222_v56 = vadd.f32 %v4662_v22, %v2221_v23 }
 0x5bd   :  { %2598 = vst.msk [vmem:[%s5624_s8 + $0x20] sm:$0xff] %vm2593_vm1, %v2222_v56  ;;  %v1726_v2 = vpop.f32.mrf.mxu2 }
 0x5be   :  { %v3250_v33 = vpop.eup %3249  ;;  %v1727_v41 = vadd.f32 %v4603_v57, %v1726_v2 }
 0x5bf   :  { %2271 = vmatmul.f32.gmra.mxu3 %v3250_v33  ;;  %v3252_v29 = vpop.eup %3251 }
 0x5c0   :  { %3253 = vtanh.f32 %v1727_v41 }
 0x5c1   :  { %3255 = vtanh.f32 %v1232_v39 }
 0x5c2   :  { %1776 = vmatmul.f32.gmra.mxu2 %v3252_v29  ;;  %v2224_v47 = vpop.f32.mrf.mxu3 }
 0x5c3   :  { %v2225_v61 = vadd.f32 %v4662_v22, %v2224_v47 }
 0x5c5   :  { %2599 = vst.msk [vmem:[%s5624_s8 + $0x28] sm:$0xff] %vm2593_vm1, %v2225_v61  ;;  %v1729_v34 = vpop.f32.mrf.mxu2 }
 0x5c6   :  { %v3254_v48 = vpop.eup %3253  ;;  %v1730_v28 = vadd.f32 %v4603_v57, %v1729_v34 }
 0x5c7   :  { %2274 = vmatmul.f32.gmra.mxu3 %v3254_v48  ;;  %v3256_v17 = vpop.eup %3255 }
 0x5c8   :  { %3257 = vtanh.f32 %v1730_v28 }
 0x5c9   :  { %3259 = vtanh.f32 %v1235_v49 }
 0x5ca   :  { %1779 = vmatmul.f32.gmra.mxu2 %v3256_v17  ;;  %v2227_v38 = vpop.f32.mrf.mxu3 }
 0x5cb   :  { %v2228_v3 = vadd.f32 %v4662_v22, %v2227_v38 }
 0x5cd   :  { %2600 = vst.msk [vmem:[%s5624_s8 + $0x30] sm:$0xff] %vm2593_vm1, %v2228_v3  ;;  %v1732_v55 = vpop.f32.mrf.mxu2 }
 0x5ce   :  { %v3258_v6 = vpop.eup %3257  ;;  %v1733_v35 = vadd.f32 %v4603_v57, %v1732_v55 }
 0x5cf   :  { %2277 = vmatmul.f32.gmra.mxu3 %v3258_v6  ;;  %v3260_v42 = vpop.eup %3259 }
 0x5d0   :  { %3261 = vtanh.f32 %v1733_v35 }
 0x5d1   :  { %3263 = vtanh.f32 %v1238_v59 }
 0x5d2   :  { %1782 = vmatmul.f32.gmra.mxu2 %v3260_v42  ;;  %v2230_v63 = vpop.f32.mrf.mxu3 }
 0x5d3   :  { %v2231_v8 = vadd.f32 %v4662_v22, %v2230_v63 }
 0x5d5   :  { %2601 = vst.msk [vmem:[%s5624_s8 + $0x38] sm:$0xff] %vm2593_vm1, %v2231_v8  ;;  %v1735_v9 = vpop.f32.mrf.mxu2 }
 0x5d6   :  { %v3262_v5 = vpop.eup %3261  ;;  %v1736_v46 = vadd.f32 %v4603_v57, %v1735_v9 }
 0x5d7   :  { %2280 = vmatmul.f32.gmra.mxu3 %v3262_v5  ;;  %v3264_v10 = vpop.eup %3263 }
 0x5d8   :  { %3265 = vtanh.f32 %v1736_v46 }
 0x5d9   :  { %3267 = vtanh.f32 %v1241_v4 }
 0x5da   :  { %1785 = vmatmul.f32.gmra.mxu2 %v3264_v10  ;;  %v2233_v40 = vpop.f32.mrf.mxu3 }
 0x5db   :  { %v2234_v13 = vadd.f32 %v4662_v22, %v2233_v40 }
 0x5dd   :  { %2602 = vst.msk [vmem:[%s5624_s8 + $0x40] sm:$0xff] %vm2593_vm1, %v2234_v13  ;;  %v1738_v50 = vpop.f32.mrf.mxu2 }
 0x5de   :  { %v3266_v1 = vpop.eup %3265  ;;  %v1739_v54 = vadd.f32 %v4603_v57, %v1738_v50 }
 0x5df   :  { %2283 = vmatmul.f32.gmra.mxu3 %v3266_v1  ;;  %v3268_v12 = vpop.eup %3267 }
 0x5e0   :  { %3269 = vtanh.f32 %v1739_v54 }
 0x5e1   :  { %3271 = vtanh.f32 %v1244_v15 }
 0x5e2   :  { %1788 = vmatmul.f32.gmra.mxu2 %v3268_v12  ;;  %v2236_v58 = vpop.f32.mrf.mxu3 }
 0x5e3   :  { %v2237_v19 = vadd.f32 %v4662_v22, %v2236_v58 }
 0x5e5   :  { %2603 = vst.msk [vmem:[%s5624_s8 + $0x48] sm:$0xff] %vm2593_vm1, %v2237_v19  ;;  %v1741_v45 = vpop.f32.mrf.mxu2 }
 0x5e6   :  { %v3270_v62 = vpop.eup %3269  ;;  %v1742_v31 = vadd.f32 %v4603_v57, %v1741_v45 }
 0x5e7   :  { %2286 = vmatmul.f32.gmra.mxu3 %v3270_v62  ;;  %v3272_v26 = vpop.eup %3271 }
 0x5e8   :  { %3273 = vtanh.f32 %v1742_v31 }
 0x5e9   :  { %3275 = vtanh.f32 %v1247_v24 }
 0x5ea   :  { %1791 = vmatmul.f32.gmra.mxu2 %v3272_v26  ;;  %v2239_v20 = vpop.f32.mrf.mxu3 }
 0x5eb   :  { %v2240_v14 = vadd.f32 %v4662_v22, %v2239_v20 }
 0x5ed   :  { %2604 = vst.msk [vmem:[%s5624_s8 + $0x50] sm:$0xff] %vm2593_vm1, %v2240_v14  ;;  %v1744_v21 = vpop.f32.mrf.mxu2 }
 0x5ee   :  { %v3274_v51 = vpop.eup %3273  ;;  %v1745_v32 = vadd.f32 %v4603_v57, %v1744_v21  ;;  %v5674_v21 = vld [vmem:[#allocation3_spill] sm:$0xff] }
 0x5ef   :  { %2289 = vmatmul.f32.gmra.mxu3 %v3274_v51  ;;  %v3276_v18 = vpop.eup %3275  ;;  %v1274_v36 = vadd.f32 %v4513_v53, %v5674_v21 }
 0x5f0   :  { %3277 = vtanh.f32 %v1745_v32 }
 0x5f1   :  { %3279 = vtanh.f32 %v1250_v37 }
 0x5f2   :  { %1794 = vmatmul.f32.gmra.mxu2 %v3276_v18  ;;  %v2242_v7 = vpop.f32.mrf.mxu3 }
 0x5f3   :  { %v2243_v30 = vadd.f32 %v4662_v22, %v2242_v7 }
 0x5f5   :  { %2605 = vst.msk [vmem:[%s5624_s8 + $0x58] sm:$0xff] %vm2593_vm1, %v2243_v30  ;;  %v1747_v25 = vpop.f32.mrf.mxu2 }
 0x5f6   :  { %v3278_v23 = vpop.eup %3277  ;;  %v1748_v56 = vadd.f32 %v4603_v57, %v1747_v25  ;;  %v5675_v25 = vld [vmem:[#allocation4_spill] sm:$0xff] }
 0x5f7   :  { %2292 = vmatmul.f32.gmra.mxu3 %v3278_v23  ;;  %v3280_v2 = vpop.eup %3279  ;;  %v1277_v23 = vadd.f32 %v4513_v53, %v5675_v25  ;;  %v4833_v53 = vld [vmem:[%s5619_s3] ss:$0 sm:$0xff] }
 0x5f8   :  { %3281 = vtanh.f32 %v1748_v56 }
 0x5f9   :  { %3283 = vtanh.f32 %v1253_v52 }
 0x5fa   :  { %1797 = vmatmul.f32.gmra.mxu2 %v3280_v2  ;;  %v2245_v33 = vpop.f32.mrf.mxu3 }
 0x5fb   :  { %v2246_v41 = vadd.f32 %v4662_v22, %v2245_v33 }
 0x5fd   :  { %2606 = vst.msk [vmem:[%s5624_s8 + $0x60] sm:$0xff] %vm2593_vm1, %v2246_v41  ;;  %v1750_v39 = vpop.f32.mrf.mxu2 }
 0x5fe   :  { %v3282_v29 = vpop.eup %3281  ;;  %v1751_v47 = vadd.f32 %v4603_v57, %v1750_v39 }
 0x5ff   :  { %2295 = vmatmul.f32.gmra.mxu3 %v3282_v29  ;;  %v3284_v61 = vpop.eup %3283  ;;  %v5676_v29 = vld [vmem:[#allocation5_spill] sm:$0xff] }
 0x600   :  { %3285 = vtanh.f32 %v1751_v47  ;;  %v1280_v47 = vadd.f32 %v4833_v53, %v5676_v29 }
 0x601   :  { %3287 = vtanh.f32 %v1256_v0 }
 0x602   :  { %1800 = vmatmul.f32.gmra.mxu2 %v3284_v61  ;;  %v2248_v34 = vpop.f32.mrf.mxu3 }
 0x603   :  { %v2249_v48 = vadd.f32 %v4662_v22, %v2248_v34 }
 0x605   :  { %2607 = vst.msk [vmem:[%s5624_s8 + $0x68] sm:$0xff] %vm2593_vm1, %v2249_v48  ;;  %v1753_v28 = vpop.f32.mrf.mxu2 }
 0x606   :  { %v3286_v49 = vpop.eup %3285  ;;  %v1754_v17 = vadd.f32 %v4603_v57, %v1753_v28 }
 0x607   :  { %2298 = vmatmul.f32.gmra.mxu3 %v3286_v49  ;;  %v3288_v38 = vpop.eup %3287 }
 0x608   :  { %3289 = vtanh.f32 %v1754_v17  ;;  %v5677_v17 = vld [vmem:[#allocation6_spill] sm:$0xff] }
 0x609   :  { %3291 = vtanh.f32 %v1259_v11  ;;  %v1283_v11 = vadd.f32 %v4833_v53, %v5677_v17 }
 0x60a   :  { %1803 = vmatmul.f32.gmra.mxu2 %v3288_v38  ;;  %v2251_v3 = vpop.f32.mrf.mxu3 }
 0x60b   :  { %v2252_v55 = vadd.f32 %v4662_v22, %v2251_v3 }
 0x60d   :  { %2608 = vst.msk [vmem:[%s5624_s8 + $0x70] sm:$0xff] %vm2593_vm1, %v2252_v55  ;;  %v1756_v6 = vpop.f32.mrf.mxu2 }
 0x60e   :  { %v3290_v35 = vpop.eup %3289  ;;  %v1757_v59 = vadd.f32 %v4603_v57, %v1756_v6 }
 0x60f   :  { %2301 = vmatmul.f32.gmra.mxu3 %v3290_v35  ;;  %v3292_v42 = vpop.eup %3291 }
 0x610   :  { %3293 = vtanh.f32 %v1757_v59 }
 0x611   :  { %3295 = vtanh.f32 %v1262_v27  ;;  %v5678_v27 = vld [vmem:[#allocation7_spill] sm:$0xff] }
 0x612   :  { %1806 = vmatmul.f32.gmra.mxu2 %v3292_v42  ;;  %v2254_v63 = vpop.f32.mrf.mxu3  ;;  %v1286_v42 = vadd.f32 %v4833_v53, %v5678_v27 }
 0x613   :  { %v2255_v8 = vadd.f32 %v4662_v22, %v2254_v63 }
 0x615   :  { %2609 = vst.msk [vmem:[%s5624_s8 + $0x78] sm:$0xff] %vm2593_vm1, %v2255_v8  ;;  %v1759_v9 = vpop.f32.mrf.mxu2 }
 0x616   :  { %v3294_v5 = vpop.eup %3293  ;;  %v1760_v46 = vadd.f32 %v4603_v57, %v1759_v9 }
 0x617   :  { %2304 = vmatmul.f32.gmra.mxu3 %v3294_v5  ;;  %v3296_v4 = vpop.eup %3295 }
 0x618   :  { %3297 = vtanh.f32 %v1760_v46 }
 0x619   :  { %3299 = vtanh.f32 %v1265_v44 }
 0x61a   :  { %1809 = vmatmul.f32.gmra.mxu2 %v3296_v4  ;;  %v2257_v10 = vpop.f32.mrf.mxu3  ;;  %v5679_v4 = vld [vmem:[#allocation8_spill] sm:$0xff] }
 0x61b   :  { %v2258_v40 = vadd.f32 %v4662_v22, %v2257_v10  ;;  %v1289_v10 = vadd.f32 %v4833_v53, %v5679_v4 }
 0x61d   :  { %2610 = vst.msk [vmem:[%s5624_s8 + $0x80] sm:$0xff] %vm2593_vm1, %v2258_v40  ;;  %v1762_v13 = vpop.f32.mrf.mxu2 }
 0x61e   :  { %v3298_v50 = vpop.eup %3297  ;;  %v1763_v1 = vadd.f32 %v4603_v57, %v1762_v13 }
 0x61f   :  { %2307 = vmatmul.f32.gmra.mxu3 %v3298_v50  ;;  %v3300_v54 = vpop.eup %3299 }
 0x620   :  { %3301 = vtanh.f32 %v1763_v1 }
 0x621   :  { %3303 = vtanh.f32 %v1268_v60 }
 0x622   :  { %1812 = vmatmul.f32.gmra.mxu2 %v3300_v54  ;;  %v2260_v15 = vpop.f32.mrf.mxu3 }
 0x623   :  { %v2261_v12 = vadd.f32 %v4662_v22, %v2260_v15  ;;  %v5680_v15 = vld [vmem:[#allocation9_spill] sm:$0xff] }
 0x625   :  { %2611 = vst.msk [vmem:[%s5624_s8 + $0x88] sm:$0xff] %vm2593_vm1, %v2261_v12  ;;  %v1765_v58 = vpop.f32.mrf.mxu2  ;;  %v1292_v12 = vadd.f32 %v4833_v53, %v5680_v15 }
 0x626   :  { %v3302_v19 = vpop.eup %3301  ;;  %v1766_v45 = vadd.f32 %v4603_v57, %v1765_v58 }
 0x627   :  { %2310 = vmatmul.f32.gmra.mxu3 %v3302_v19  ;;  %v3304_v62 = vpop.eup %3303 }
 0x628   :  { %3305 = vtanh.f32 %v1766_v45 }
 0x629   :  { %3307 = vtanh.f32 %v1271_v16 }
 0x62a   :  { %1815 = vmatmul.f32.gmra.mxu2 %v3304_v62  ;;  %v2263_v31 = vpop.f32.mrf.mxu3 }
 0x62b   :  { %v2264_v24 = vadd.f32 %v4662_v22, %v2263_v31 }
 0x62d   :  { %2612 = vst.msk [vmem:[%s5624_s8 + $0x90] sm:$0xff] %vm2593_vm1, %v2264_v24  ;;  %v1768_v26 = vpop.f32.mrf.mxu2  ;;  %v5681_v24 = vld [vmem:[#allocation10_spill] sm:$0xff] }
 0x62e   :  { %v3306_v20 = vpop.eup %3305  ;;  %v1769_v14 = vadd.f32 %v4603_v57, %v1768_v26  ;;  %v1295_v26 = vadd.f32 %v4833_v53, %v5681_v24 }
 0x62f   :  { %2313 = vmatmul.f32.gmra.mxu3 %v3306_v20  ;;  %v3308_v51 = vpop.eup %3307 }
 0x630   :  { %3309 = vtanh.f32 %v1769_v14 }
 0x631   :  { %3311 = vtanh.f32 %v1274_v36 }
 0x632   :  { %1818 = vmatmul.f32.gmra.mxu2 %v3308_v51  ;;  %v2266_v32 = vpop.f32.mrf.mxu3 }
 0x633   :  { %v2267_v37 = vadd.f32 %v4662_v22, %v2266_v32 }
 0x635   :  { %2613 = vst.msk [vmem:[%s5624_s8 + $0x98] sm:$0xff] %vm2593_vm1, %v2267_v37  ;;  %v1771_v18 = vpop.f32.mrf.mxu2  ;;  %v5682_v37 = vld [vmem:[#allocation11_spill] sm:$0xff] }
 0x636   :  { %v3310_v7 = vpop.eup %3309  ;;  %v1772_v30 = vadd.f32 %v4603_v57, %v1771_v18  ;;  %v1298_v18 = vadd.f32 %v4833_v53, %v5682_v37 }
 0x637   :  { %2316 = vmatmul.f32.gmra.mxu3 %v3310_v7  ;;  %v3312_v56 = vpop.eup %3311 }
 0x638   :  { %3313 = vtanh.f32 %v1772_v30 }
 0x639   :  { %3315 = vtanh.f32 %v1277_v23 }
 0x63a   :  { %1821 = vmatmul.f32.gmra.mxu2 %v3312_v56  ;;  %v2269_v52 = vpop.f32.mrf.mxu3 }
 0x63b   :  { %v2270_v2 = vadd.f32 %v4662_v22, %v2269_v52 }
 0x63d   :  { %2614 = vst.msk [vmem:[%s5624_s8 + $0xa0] sm:$0xff] %vm2593_vm1, %v2270_v2  ;;  %v1774_v33 = vpop.f32.mrf.mxu2  ;;  %v5683_v2 = vld [vmem:[#allocation12_spill] sm:$0xff] }
 0x63e   :  { %v3314_v41 = vpop.eup %3313  ;;  %v1775_v39 = vadd.f32 %v4603_v57, %v1774_v33  ;;  %v1301_v33 = vadd.f32 %v4833_v53, %v5683_v2 }
 0x63f   :  { %2319 = vmatmul.f32.gmra.mxu3 %v3314_v41  ;;  %v3316_v0 = vpop.eup %3315 }
 0x640   :  { %3317 = vtanh.f32 %v1775_v39 }
 0x641   :  { %3319 = vtanh.f32 %v1280_v47 }
 0x642   :  { %1824 = vmatmul.f32.gmra.mxu2 %v3316_v0  ;;  %v2272_v61 = vpop.f32.mrf.mxu3 }
 0x643   :  { %v2273_v34 = vadd.f32 %v4662_v22, %v2272_v61 }
 0x645   :  { %2615 = vst.msk [vmem:[%s5624_s8 + $0xa8] sm:$0xff] %vm2593_vm1, %v2273_v34  ;;  %v1777_v48 = vpop.f32.mrf.mxu2  ;;  %v5684_v34 = vld [vmem:[#allocation13_spill] sm:$0xff] }
 0x646   :  { %v3318_v28 = vpop.eup %3317  ;;  %v1778_v49 = vadd.f32 %v4603_v57, %v1777_v48  ;;  %v1304_v48 = vadd.f32 %v4833_v53, %v5684_v34 }
 0x647   :  { %2322 = vmatmul.f32.gmra.mxu3 %v3318_v28  ;;  %v3320_v38 = vpop.eup %3319 }
 0x648   :  { %3321 = vtanh.f32 %v1778_v49 }
 0x649   :  { %3323 = vtanh.f32 %v1283_v11 }
 0x64a   :  { %1827 = vmatmul.f32.gmra.mxu2 %v3320_v38  ;;  %v2275_v3 = vpop.f32.mrf.mxu3 }
 0x64b   :  { %v2276_v55 = vadd.f32 %v4662_v22, %v2275_v3 }
 0x64d   :  { %2616 = vst.msk [vmem:[%s5624_s8 + $0xb0] sm:$0xff] %vm2593_vm1, %v2276_v55  ;;  %v1780_v6 = vpop.f32.mrf.mxu2  ;;  %v5685_v55 = vld [vmem:[#allocation14_spill] sm:$0xff] }
 0x64e   :  { %v3322_v35 = vpop.eup %3321  ;;  %v1781_v59 = vadd.f32 %v4603_v57, %v1780_v6  ;;  %v1307_v6 = vadd.f32 %v4833_v53, %v5685_v55 }
 0x64f   :  { %2325 = vmatmul.f32.gmra.mxu3 %v3322_v35  ;;  %v3324_v63 = vpop.eup %3323 }
 0x650   :  { %3325 = vtanh.f32 %v1781_v59 }
 0x651   :  { %3327 = vtanh.f32 %v1286_v42 }
 0x652   :  { %1830 = vmatmul.f32.gmra.mxu2 %v3324_v63  ;;  %v2278_v8 = vpop.f32.mrf.mxu3 }
 0x653   :  { %v2279_v9 = vadd.f32 %v4662_v22, %v2278_v8 }
 0x655   :  { %2617 = vst.msk [vmem:[%s5624_s8 + $0xb8] sm:$0xff] %vm2593_vm1, %v2279_v9  ;;  %v1783_v5 = vpop.f32.mrf.mxu2  ;;  %v5686_v9 = vld [vmem:[#allocation15_spill] sm:$0xff] }
 0x656   :  { %v3326_v46 = vpop.eup %3325  ;;  %v1784_v44 = vadd.f32 %v4603_v57, %v1783_v5  ;;  %v1310_v5 = vadd.f32 %v4833_v53, %v5686_v9 }
 0x657   :  { %2328 = vmatmul.f32.gmra.mxu3 %v3326_v46  ;;  %v3328_v40 = vpop.eup %3327 }
 0x658   :  { %3329 = vtanh.f32 %v1784_v44 }
 0x659   :  { %3331 = vtanh.f32 %v1289_v10 }
 0x65a   :  { %1833 = vmatmul.f32.gmra.mxu2 %v3328_v40  ;;  %v2281_v13 = vpop.f32.mrf.mxu3 }
 0x65b   :  { %v2282_v50 = vadd.f32 %v4662_v22, %v2281_v13 }
 0x65d   :  { %2618 = vst.msk [vmem:[%s5624_s8 + $0xc0] sm:$0xff] %vm2593_vm1, %v2282_v50  ;;  %v1786_v1 = vpop.f32.mrf.mxu2  ;;  %v5687_v50 = vld [vmem:[#allocation16_spill] sm:$0xff] }
 0x65e   :  { %v3330_v60 = vpop.eup %3329  ;;  %v1787_v54 = vadd.f32 %v4603_v57, %v1786_v1  ;;  %v1313_v1 = vadd.f32 %v4833_v53, %v5687_v50 }
 0x65f   :  { %2331 = vmatmul.f32.gmra.mxu3 %v3330_v60  ;;  %v3332_v58 = vpop.eup %3331 }
 0x660   :  { %3333 = vtanh.f32 %v1787_v54 }
 0x661   :  { %3335 = vtanh.f32 %v1292_v12 }
 0x662   :  { %1836 = vmatmul.f32.gmra.mxu2 %v3332_v58  ;;  %v2284_v19 = vpop.f32.mrf.mxu3 }
 0x663   :  { %v2285_v45 = vadd.f32 %v4662_v22, %v2284_v19 }
 0x665   :  { %2619 = vst.msk [vmem:[%s5624_s8 + $0xc8] sm:$0xff] %vm2593_vm1, %v2285_v45  ;;  %v1789_v16 = vpop.f32.mrf.mxu2  ;;  %v5688_v45 = vld [vmem:[#allocation17_spill] sm:$0xff] }
 0x666   :  { %v3334_v62 = vpop.eup %3333  ;;  %v1790_v31 = vadd.f32 %v4603_v57, %v1789_v16  ;;  %v1316_v16 = vadd.f32 %v4833_v53, %v5688_v45 }
 0x667   :  { %2334 = vmatmul.f32.gmra.mxu3 %v3334_v62  ;;  %v3336_v20 = vpop.eup %3335 }
 0x668   :  { %3337 = vtanh.f32 %v1790_v31 }
 0x669   :  { %3339 = vtanh.f32 %v1295_v26 }
 0x66a   :  { %1839 = vmatmul.f32.gmra.mxu2 %v3336_v20  ;;  %v2287_v14 = vpop.f32.mrf.mxu3 }
 0x66b   :  { %v2288_v21 = vadd.f32 %v4662_v22, %v2287_v14 }
 0x66d   :  { %2620 = vst.msk [vmem:[%s5624_s8 + $0xd0] sm:$0xff] %vm2593_vm1, %v2288_v21  ;;  %v1792_v36 = vpop.f32.mrf.mxu2  ;;  %v5689_v21 = vld [vmem:[#allocation18_spill] sm:$0xff] }
 0x66e   :  { %v3338_v51 = vpop.eup %3337  ;;  %v1793_v32 = vadd.f32 %v4603_v57, %v1792_v36  ;;  %v1319_v36 = vadd.f32 %v4833_v53, %v5689_v21 }
 0x66f   :  { %2337 = vmatmul.f32.gmra.mxu3 %v3338_v51  ;;  %v3340_v7 = vpop.eup %3339 }
 0x670   :  { %3341 = vtanh.f32 %v1793_v32 }
 0x671   :  { %3343 = vtanh.f32 %v1298_v18 }
 0x672   :  { %1842 = vmatmul.f32.gmra.mxu2 %v3340_v7  ;;  %v2290_v30 = vpop.f32.mrf.mxu3 }
 0x673   :  { %v2291_v25 = vadd.f32 %v4662_v22, %v2290_v30 }
 0x675   :  { %2621 = vst.msk [vmem:[%s5624_s8 + $0xd8] sm:$0xff] %vm2593_vm1, %v2291_v25  ;;  %v1795_v23 = vpop.f32.mrf.mxu2  ;;  %v5690_v25 = vld [vmem:[#allocation19_spill] sm:$0xff] }
 0x676   :  { %v3342_v56 = vpop.eup %3341  ;;  %v1796_v52 = vadd.f32 %v4603_v57, %v1795_v23  ;;  %v1322_v23 = vadd.f32 %v4833_v53, %v5690_v25  ;;  %v5010_v25 = vld [vmem:[#allocation2] ss:$0 sm:$0xff] }
 0x677   :  { %2340 = vmatmul.f32.gmra.mxu3 %v3342_v56  ;;  %v3344_v41 = vpop.eup %3343 }
 0x678   :  { %3345 = vtanh.f32 %v1796_v52 }
 0x679   :  { %3347 = vtanh.f32 %v1301_v33 }
 0x67a   :  { %1845 = vmatmul.f32.gmra.mxu2 %v3344_v41  ;;  %v2293_v39 = vpop.f32.mrf.mxu3 }
 0x67b   :  { %v2294_v29 = vadd.f32 %v4662_v22, %v2293_v39 }
 0x67d   :  { %2622 = vst.msk [vmem:[%s5624_s8 + $0xe0] sm:$0xff] %vm2593_vm1, %v2294_v29  ;;  %v1798_v47 = vpop.f32.mrf.mxu2  ;;  %v5691_v29 = vld [vmem:[#allocation20_spill] sm:$0xff] }
 0x67e   :  { %v3346_v0 = vpop.eup %3345  ;;  %v1799_v61 = vadd.f32 %v4603_v57, %v1798_v47  ;;  %v4909_v57 = vld [vmem:[%s5621_s5] ss:$0 sm:$0xff]  ;;  %v1325_v47 = vadd.f32 %v4833_v53, %v5691_v29 }
 0x67f   :  { %2343 = vmatmul.f32.gmra.mxu3 %v3346_v0  ;;  %v3348_v28 = vpop.eup %3347 }
 0x680   :  { %3349 = vtanh.f32 %v1799_v61 }
 0x681   :  { %3351 = vtanh.f32 %v1304_v48 }
 0x682   :  { %1848 = vmatmul.f32.gmra.mxu2 %v3348_v28  ;;  %v2296_v49 = vpop.f32.mrf.mxu3 }
 0x683   :  { %v2297_v17 = vadd.f32 %v4662_v22, %v2296_v49 }
 0x685   :  { %2623 = vst.msk [vmem:[%s5624_s8 + $0xe8] sm:$0xff] %vm2593_vm1, %v2297_v17  ;;  %v1801_v11 = vpop.f32.mrf.mxu2  ;;  %v5692_v17 = vld [vmem:[#allocation21_spill] sm:$0xff] }
 0x686   :  { %v3350_v38 = vpop.eup %3349  ;;  %v1802_v3 = vadd.f32 %v4909_v57, %v1801_v11  ;;  %v1328_v11 = vadd.f32 %v4833_v53, %v5692_v17 }
 0x687   :  { %2346 = vmatmul.f32.gmra.mxu3 %v3350_v38  ;;  %v3352_v35 = vpop.eup %3351 }
 0x688   :  { %3353 = vtanh.f32 %v1802_v3 }
 0x689   :  { %3355 = vtanh.f32 %v1307_v6 }
 0x68a   :  { %1851 = vmatmul.f32.gmra.mxu2 %v3352_v35  ;;  %v2299_v59 = vpop.f32.mrf.mxu3 }
 0x68b   :  { %v2300_v27 = vadd.f32 %v4662_v22, %v2299_v59 }
 0x68d   :  { %2624 = vst.msk [vmem:[%s5624_s8 + $0xf0] sm:$0xff] %vm2593_vm1, %v2300_v27  ;;  %v1804_v42 = vpop.f32.mrf.mxu2  ;;  %v5693_v27 = vld [vmem:[#allocation22_spill] sm:$0xff] }
 0x68e   :  { %v3354_v63 = vpop.eup %3353  ;;  %v1805_v8 = vadd.f32 %v4909_v57, %v1804_v42  ;;  %v1331_v42 = vadd.f32 %v4833_v53, %v5693_v27 }
 0x68f   :  { %2349 = vmatmul.f32.gmra.mxu3 %v3354_v63  ;;  %v3356_v46 = vpop.eup %3355 }
 0x690   :  { %3357 = vtanh.f32 %v1805_v8 }
 0x691   :  { %3359 = vtanh.f32 %v1310_v5 }
 0x692   :  { %1854 = vmatmul.f32.gmra.mxu2 %v3356_v46  ;;  %v2302_v44 = vpop.f32.mrf.mxu3 }
 0x693   :  { %v2303_v4 = vadd.f32 %v4662_v22, %v2302_v44 }
 0x695   :  { %2625 = vst.msk [vmem:[%s5624_s8 + $0xf8] sm:$0xff] %vm2593_vm1, %v2303_v4  ;;  %v1807_v10 = vpop.f32.mrf.mxu2  ;;  %v5694_v4 = vld [vmem:[#allocation23_spill] sm:$0xff] }
 0x696   :  { %v3358_v40 = vpop.eup %3357  ;;  %v1808_v13 = vadd.f32 %v4909_v57, %v1807_v10  ;;  %v1334_v10 = vadd.f32 %v4833_v53, %v5694_v4 }
 0x697   :  { %2352 = vmatmul.f32.gmra.mxu3 %v3358_v40  ;;  %v3360_v60 = vpop.eup %3359 }
 0x698   :  { %3361 = vtanh.f32 %v1808_v13 }
 0x699   :  { %3363 = vtanh.f32 %v1313_v1 }
 0x69a   :  { %1857 = vmatmul.f32.gmra.mxu2 %v3360_v60  ;;  %v2305_v54 = vpop.f32.mrf.mxu3 }
 0x69b   :  { %v2306_v15 = vadd.f32 %v4662_v22, %v2305_v54 }
 0x69d   :  { %2626 = vst.msk [vmem:[%s5624_s8 + $0x100] sm:$0xff] %vm2593_vm1, %v2306_v15  ;;  %v1810_v12 = vpop.f32.mrf.mxu2  ;;  %v5695_v15 = vld [vmem:[#allocation24_spill] sm:$0xff] }
 0x69e   :  { %v3362_v58 = vpop.eup %3361  ;;  %v1811_v19 = vadd.f32 %v4909_v57, %v1810_v12  ;;  %v1337_v12 = vadd.f32 %v4833_v53, %v5695_v15 }
 0x69f   :  { %2355 = vmatmul.f32.gmra.mxu3 %v3362_v58  ;;  %v3364_v62 = vpop.eup %3363 }
 0x6a0   :  { %3365 = vtanh.f32 %v1811_v19 }
 0x6a1   :  { %3367 = vtanh.f32 %v1316_v16 }
 0x6a2   :  { %1860 = vmatmul.f32.gmra.mxu2 %v3364_v62  ;;  %v2308_v31 = vpop.f32.mrf.mxu3 }
 0x6a3   :  { %v2309_v24 = vadd.f32 %v4662_v22, %v2308_v31 }
 0x6a5   :  { %2627 = vst.msk [vmem:[%s5624_s8 + $0x108] sm:$0xff] %vm2593_vm1, %v2309_v24  ;;  %v1813_v26 = vpop.f32.mrf.mxu2  ;;  %v5696_v24 = vld [vmem:[#allocation25_spill] sm:$0xff] }
 0x6a6   :  { %v3366_v20 = vpop.eup %3365  ;;  %v1814_v14 = vadd.f32 %v4909_v57, %v1813_v26  ;;  %v1340_v26 = vadd.f32 %v4833_v53, %v5696_v24 }
 0x6a7   :  { %2358 = vmatmul.f32.gmra.mxu3 %v3366_v20  ;;  %v3368_v51 = vpop.eup %3367 }
 0x6a8   :  { %3369 = vtanh.f32 %v1814_v14 }
 0x6a9   :  { %3371 = vtanh.f32 %v1319_v36 }
 0x6aa   :  { %1863 = vmatmul.f32.gmra.mxu2 %v3368_v51  ;;  %v2311_v32 = vpop.f32.mrf.mxu3 }
 0x6ab   :  { %v2312_v37 = vadd.f32 %v4662_v22, %v2311_v32 }
 0x6ad   :  { %2628 = vst.msk [vmem:[%s5624_s8 + $0x110] sm:$0xff] %vm2593_vm1, %v2312_v37  ;;  %v1816_v18 = vpop.f32.mrf.mxu2  ;;  %v5697_v37 = vld [vmem:[#allocation26_spill] sm:$0xff] }
 0x6ae   :  { %v3370_v7 = vpop.eup %3369  ;;  %v1817_v30 = vadd.f32 %v4909_v57, %v1816_v18  ;;  %v1343_v18 = vadd.f32 %v4833_v53, %v5697_v37 }
 0x6af   :  { %2361 = vmatmul.f32.gmra.mxu3 %v3370_v7  ;;  %v3372_v56 = vpop.eup %3371 }
 0x6b0   :  { %3373 = vtanh.f32 %v1817_v30 }
 0x6b1   :  { %3375 = vtanh.f32 %v1322_v23 }
 0x6b2   :  { %1866 = vmatmul.f32.gmra.mxu2 %v3372_v56  ;;  %v2314_v52 = vpop.f32.mrf.mxu3 }
 0x6b3   :  { %v2315_v2 = vadd.f32 %v4662_v22, %v2314_v52 }
 0x6b5   :  { %2629 = vst.msk [vmem:[%s5624_s8 + $0x118] sm:$0xff] %vm2593_vm1, %v2315_v2  ;;  %v1819_v33 = vpop.f32.mrf.mxu2  ;;  %v5698_v2 = vld [vmem:[#allocation27_spill] sm:$0xff] }
 0x6b6   :  { %v3374_v41 = vpop.eup %3373  ;;  %v1820_v39 = vadd.f32 %v4909_v57, %v1819_v33  ;;  %v1346_v33 = vadd.f32 %v4833_v53, %v5698_v2 }
 0x6b7   :  { %2364 = vmatmul.f32.gmra.mxu3 %v3374_v41  ;;  %v3376_v0 = vpop.eup %3375 }
 0x6b8   :  { %3377 = vtanh.f32 %v1820_v39 }
 0x6b9   :  { %3379 = vtanh.f32 %v1325_v47 }
 0x6ba   :  { %1869 = vmatmul.f32.gmra.mxu2 %v3376_v0  ;;  %v2317_v61 = vpop.f32.mrf.mxu3 }
 0x6bb   :  { %v2318_v34 = vadd.f32 %v4662_v22, %v2317_v61 }
 0x6bd   :  { %2630 = vst.msk [vmem:[%s5624_s8 + $0x120] sm:$0xff] %vm2593_vm1, %v2318_v34  ;;  %v1822_v48 = vpop.f32.mrf.mxu2  ;;  %v5699_v34 = vld [vmem:[#allocation28_spill] sm:$0xff] }
 0x6be   :  { %v3378_v28 = vpop.eup %3377  ;;  %v1823_v49 = vadd.f32 %v4909_v57, %v1822_v48  ;;  %v1349_v48 = vadd.f32 %v4833_v53, %v5699_v34 }
 0x6bf   :  { %2367 = vmatmul.f32.gmra.mxu3 %v3378_v28  ;;  %v3380_v38 = vpop.eup %3379 }
 0x6c0   :  { %3381 = vtanh.f32 %v1823_v49 }
 0x6c1   :  { %3383 = vtanh.f32 %v1328_v11 }
 0x6c2   :  { %1872 = vmatmul.f32.gmra.mxu2 %v3380_v38  ;;  %v2320_v3 = vpop.f32.mrf.mxu3 }
 0x6c3   :  { %v2321_v55 = vadd.f32 %v4662_v22, %v2320_v3 }
 0x6c5   :  { %2631 = vst.msk [vmem:[%s5624_s8 + $0x128] sm:$0xff] %vm2593_vm1, %v2321_v55  ;;  %v1825_v6 = vpop.f32.mrf.mxu2  ;;  %v5700_v55 = vld [vmem:[#allocation29_spill] sm:$0xff] }
 0x6c6   :  { %v3382_v35 = vpop.eup %3381  ;;  %v1826_v59 = vadd.f32 %v4909_v57, %v1825_v6  ;;  %v1352_v6 = vadd.f32 %v4833_v53, %v5700_v55 }
 0x6c7   :  { %2370 = vmatmul.f32.gmra.mxu3 %v3382_v35  ;;  %v3384_v63 = vpop.eup %3383 }
 0x6c8   :  { %3385 = vtanh.f32 %v1826_v59 }
 0x6c9   :  { %3387 = vtanh.f32 %v1331_v42 }
 0x6ca   :  { %1875 = vmatmul.f32.gmra.mxu2 %v3384_v63  ;;  %v2323_v8 = vpop.f32.mrf.mxu3 }
 0x6cb   :  { %v2324_v9 = vadd.f32 %v4662_v22, %v2323_v8 }
 0x6cd   :  { %2632 = vst.msk [vmem:[%s5624_s8 + $0x130] sm:$0xff] %vm2593_vm1, %v2324_v9  ;;  %v1828_v5 = vpop.f32.mrf.mxu2  ;;  %v5701_v9 = vld [vmem:[#allocation30_spill] sm:$0xff] }
 0x6ce   :  { %v3386_v46 = vpop.eup %3385  ;;  %v1829_v44 = vadd.f32 %v4909_v57, %v1828_v5  ;;  %v1355_v5 = vadd.f32 %v4833_v53, %v5701_v9 }
 0x6cf   :  { %2373 = vmatmul.f32.gmra.mxu3 %v3386_v46  ;;  %v3388_v40 = vpop.eup %3387 }
 0x6d0   :  { %3389 = vtanh.f32 %v1829_v44 }
 0x6d1   :  { %3391 = vtanh.f32 %v1334_v10 }
 0x6d2   :  { %1878 = vmatmul.f32.gmra.mxu2 %v3388_v40  ;;  %v2326_v13 = vpop.f32.mrf.mxu3 }
 0x6d3   :  { %v2327_v50 = vadd.f32 %v4662_v22, %v2326_v13 }
 0x6d5   :  { %2633 = vst.msk [vmem:[%s5624_s8 + $0x138] sm:$0xff] %vm2593_vm1, %v2327_v50  ;;  %v1831_v1 = vpop.f32.mrf.mxu2  ;;  %v5702_v50 = vld [vmem:[#allocation31_spill] sm:$0xff] }
 0x6d6   :  { %v3390_v60 = vpop.eup %3389  ;;  %v1832_v54 = vadd.f32 %v4909_v57, %v1831_v1  ;;  %v1358_v1 = vadd.f32 %v4833_v53, %v5702_v50 }
 0x6d7   :  { %2376 = vmatmul.f32.gmra.mxu3 %v3390_v60  ;;  %v3392_v58 = vpop.eup %3391 }
 0x6d8   :  { %3393 = vtanh.f32 %v1832_v54 }
 0x6d9   :  { %3395 = vtanh.f32 %v1337_v12 }
 0x6da   :  { %1881 = vmatmul.f32.gmra.mxu2 %v3392_v58  ;;  %v2329_v19 = vpop.f32.mrf.mxu3 }
 0x6db   :  { %v2330_v45 = vadd.f32 %v4662_v22, %v2329_v19 }
 0x6dd   :  { %2634 = vst.msk [vmem:[%s5624_s8 + $0x140] sm:$0xff] %vm2593_vm1, %v2330_v45  ;;  %v1834_v16 = vpop.f32.mrf.mxu2  ;;  %v5703_v45 = vld [vmem:[#allocation32_spill] sm:$0xff] }
 0x6de   :  { %v3394_v62 = vpop.eup %3393  ;;  %v1835_v31 = vadd.f32 %v4909_v57, %v1834_v16  ;;  %v1361_v16 = vadd.f32 %v4833_v53, %v5703_v45 }
 0x6df   :  { %2379 = vmatmul.f32.gmra.mxu3 %v3394_v62  ;;  %v3396_v20 = vpop.eup %3395 }
 0x6e0   :  { %3397 = vtanh.f32 %v1835_v31 }
 0x6e1   :  { %3399 = vtanh.f32 %v1340_v26 }
 0x6e2   :  { %1884 = vmatmul.f32.gmra.mxu2 %v3396_v20  ;;  %v2332_v14 = vpop.f32.mrf.mxu3 }
 0x6e3   :  { %v2333_v21 = vadd.f32 %v4662_v22, %v2332_v14 }
 0x6e5   :  { %2635 = vst.msk [vmem:[%s5624_s8 + $0x148] sm:$0xff] %vm2593_vm1, %v2333_v21  ;;  %v1837_v36 = vpop.f32.mrf.mxu2  ;;  %v5704_v21 = vld [vmem:[#allocation33_spill] sm:$0xff] }
 0x6e6   :  { %v3398_v51 = vpop.eup %3397  ;;  %v1838_v32 = vadd.f32 %v4909_v57, %v1837_v36  ;;  %v1364_v36 = vadd.f32 %v4833_v53, %v5704_v21 }
 0x6e7   :  { %2382 = vmatmul.f32.gmra.mxu3 %v3398_v51  ;;  %v3400_v7 = vpop.eup %3399 }
 0x6e8   :  { %3401 = vtanh.f32 %v1838_v32 }
 0x6e9   :  { %3403 = vtanh.f32 %v1343_v18 }
 0x6ea   :  { %1887 = vmatmul.f32.gmra.mxu2 %v3400_v7  ;;  %v2335_v30 = vpop.f32.mrf.mxu3 }
 0x6eb   :  { %v2336_v22 = vadd.f32 %v5010_v25, %v2335_v30 }
 0x6ed   :  { %2636 = vst.msk [vmem:[%s5624_s8 + $0x150] sm:$0xff] %vm2593_vm1, %v2336_v22  ;;  %v1840_v23 = vpop.f32.mrf.mxu2  ;;  %v5705_v22 = vld [vmem:[#allocation34_spill] sm:$0xff] }
 0x6ee   :  { %v3402_v56 = vpop.eup %3401  ;;  %v1841_v52 = vadd.f32 %v4909_v57, %v1840_v23  ;;  %v1367_v23 = vadd.f32 %v4833_v53, %v5705_v22 }
 0x6ef   :  { %2385 = vmatmul.f32.gmra.mxu3 %v3402_v56  ;;  %v3404_v41 = vpop.eup %3403 }
 0x6f0   :  { %3405 = vtanh.f32 %v1841_v52 }
 0x6f1   :  { %3407 = vtanh.f32 %v1346_v33 }
 0x6f2   :  { %1890 = vmatmul.f32.gmra.mxu2 %v3404_v41  ;;  %v2338_v39 = vpop.f32.mrf.mxu3 }
 0x6f3   :  { %v2339_v29 = vadd.f32 %v5010_v25, %v2338_v39 }
 0x6f5   :  { %2637 = vst.msk [vmem:[%s5624_s8 + $0x158] sm:$0xff] %vm2593_vm1, %v2339_v29  ;;  %v1843_v47 = vpop.f32.mrf.mxu2  ;;  %v5706_v29 = vld [vmem:[#allocation35_spill] sm:$0xff] }
 0x6f6   :  { %v3406_v0 = vpop.eup %3405  ;;  %v1844_v61 = vadd.f32 %v4909_v57, %v1843_v47  ;;  %v1370_v47 = vadd.f32 %v4833_v53, %v5706_v29 }
 0x6f7   :  { %2388 = vmatmul.f32.gmra.mxu3 %v3406_v0  ;;  %v3408_v28 = vpop.eup %3407 }
 0x6f8   :  { %3409 = vtanh.f32 %v1844_v61 }
 0x6f9   :  { %3411 = vtanh.f32 %v1349_v48 }
 0x6fa   :  { %1893 = vmatmul.f32.gmra.mxu2 %v3408_v28  ;;  %v2341_v49 = vpop.f32.mrf.mxu3 }
 0x6fb   :  { %v2342_v17 = vadd.f32 %v5010_v25, %v2341_v49 }
 0x6fd   :  { %2638 = vst.msk [vmem:[%s5624_s8 + $0x160] sm:$0xff] %vm2593_vm1, %v2342_v17  ;;  %v1846_v11 = vpop.f32.mrf.mxu2  ;;  %v5707_v17 = vld [vmem:[#allocation36_spill] sm:$0xff] }
 0x6fe   :  { %v3410_v38 = vpop.eup %3409  ;;  %v1847_v3 = vadd.f32 %v4909_v57, %v1846_v11  ;;  %v1373_v11 = vadd.f32 %v4833_v53, %v5707_v17 }
 0x6ff   :  { %2391 = vmatmul.f32.gmra.mxu3 %v3410_v38  ;;  %v3412_v35 = vpop.eup %3411 }
 0x700   :  { %3413 = vtanh.f32 %v1847_v3 }
 0x701   :  { %3415 = vtanh.f32 %v1352_v6 }
 0x702   :  { %1896 = vmatmul.f32.gmra.mxu2 %v3412_v35  ;;  %v2344_v59 = vpop.f32.mrf.mxu3 }
 0x703   :  { %v2345_v27 = vadd.f32 %v5010_v25, %v2344_v59 }
 0x705   :  { %2639 = vst.msk [vmem:[%s5624_s8 + $0x168] sm:$0xff] %vm2593_vm1, %v2345_v27  ;;  %v1849_v42 = vpop.f32.mrf.mxu2  ;;  %v5708_v27 = vld [vmem:[#allocation37_spill] sm:$0xff] }
 0x706   :  { %v3414_v63 = vpop.eup %3413  ;;  %v1850_v8 = vadd.f32 %v4909_v57, %v1849_v42  ;;  %v1376_v42 = vadd.f32 %v4833_v53, %v5708_v27 }
 0x707   :  { %2394 = vmatmul.f32.gmra.mxu3 %v3414_v63  ;;  %v3416_v46 = vpop.eup %3415 }
 0x708   :  { %3417 = vtanh.f32 %v1850_v8 }
 0x709   :  { %3419 = vtanh.f32 %v1355_v5 }
 0x70a   :  { %1899 = vmatmul.f32.gmra.mxu2 %v3416_v46  ;;  %v2347_v44 = vpop.f32.mrf.mxu3 }
 0x70b   :  { %v2348_v4 = vadd.f32 %v5010_v25, %v2347_v44 }
 0x70d   :  { %2640 = vst.msk [vmem:[%s5624_s8 + $0x170] sm:$0xff] %vm2593_vm1, %v2348_v4  ;;  %v1852_v10 = vpop.f32.mrf.mxu2  ;;  %v5709_v4 = vld [vmem:[#allocation38_spill] sm:$0xff] }
 0x70e   :  { %v3418_v40 = vpop.eup %3417  ;;  %v1853_v13 = vadd.f32 %v4909_v57, %v1852_v10  ;;  %v1379_v10 = vadd.f32 %v4833_v53, %v5709_v4 }
 0x70f   :  { %2397 = vmatmul.f32.gmra.mxu3 %v3418_v40  ;;  %v3420_v60 = vpop.eup %3419 }
 0x710   :  { %3421 = vtanh.f32 %v1853_v13 }
 0x711   :  { %3423 = vtanh.f32 %v1358_v1 }
 0x712   :  { %1902 = vmatmul.f32.gmra.mxu2 %v3420_v60  ;;  %v2350_v54 = vpop.f32.mrf.mxu3 }
 0x713   :  { %v2351_v15 = vadd.f32 %v5010_v25, %v2350_v54 }
 0x715   :  { %2641 = vst.msk [vmem:[%s5624_s8 + $0x178] sm:$0xff] %vm2593_vm1, %v2351_v15  ;;  %v1855_v12 = vpop.f32.mrf.mxu2  ;;  %v5710_v15 = vld [vmem:[#allocation39_spill] sm:$0xff] }
 0x716   :  { %v3422_v58 = vpop.eup %3421  ;;  %v1856_v19 = vadd.f32 %v4909_v57, %v1855_v12  ;;  %v1382_v12 = vadd.f32 %v4833_v53, %v5710_v15 }
 0x717   :  { %2400 = vmatmul.f32.gmra.mxu3 %v3422_v58  ;;  %v3424_v62 = vpop.eup %3423 }
 0x718   :  { %3425 = vtanh.f32 %v1856_v19 }
 0x719   :  { %3427 = vtanh.f32 %v1361_v16 }
 0x71a   :  { %1905 = vmatmul.f32.gmra.mxu2 %v3424_v62  ;;  %v2353_v31 = vpop.f32.mrf.mxu3 }
 0x71b   :  { %v2354_v24 = vadd.f32 %v5010_v25, %v2353_v31 }
 0x71d   :  { %2642 = vst.msk [vmem:[%s5624_s8 + $0x180] sm:$0xff] %vm2593_vm1, %v2354_v24  ;;  %v1858_v26 = vpop.f32.mrf.mxu2  ;;  %v5711_v24 = vld [vmem:[#allocation40_spill] sm:$0xff] }
 0x71e   :  { %v3426_v20 = vpop.eup %3425  ;;  %v1859_v14 = vadd.f32 %v4909_v57, %v1858_v26  ;;  %v1385_v26 = vadd.f32 %v4833_v53, %v5711_v24 }
 0x71f   :  { %2403 = vmatmul.f32.gmra.mxu3 %v3426_v20  ;;  %v3428_v51 = vpop.eup %3427 }
 0x720   :  { %3429 = vtanh.f32 %v1859_v14 }
 0x721   :  { %3431 = vtanh.f32 %v1364_v36 }
 0x722   :  { %1908 = vmatmul.f32.gmra.mxu2 %v3428_v51  ;;  %v2356_v32 = vpop.f32.mrf.mxu3 }
 0x723   :  { %v2357_v37 = vadd.f32 %v5010_v25, %v2356_v32 }
 0x725   :  { %2643 = vst.msk [vmem:[%s5624_s8 + $0x188] sm:$0xff] %vm2593_vm1, %v2357_v37  ;;  %v1861_v18 = vpop.f32.mrf.mxu2  ;;  %v5712_v37 = vld [vmem:[#allocation41_spill] sm:$0xff] }
 0x726   :  { %v3430_v7 = vpop.eup %3429  ;;  %v1862_v30 = vadd.f32 %v4909_v57, %v1861_v18  ;;  %v1388_v18 = vadd.f32 %v4833_v53, %v5712_v37 }
 0x727   :  { %2406 = vmatmul.f32.gmra.mxu3 %v3430_v7  ;;  %v3432_v56 = vpop.eup %3431 }
 0x728   :  { %3433 = vtanh.f32 %v1862_v30 }
 0x729   :  { %3435 = vtanh.f32 %v1367_v23 }
 0x72a   :  { %1911 = vmatmul.f32.gmra.mxu2 %v3432_v56  ;;  %v2359_v52 = vpop.f32.mrf.mxu3 }
 0x72b   :  { %v2360_v2 = vadd.f32 %v5010_v25, %v2359_v52 }
 0x72d   :  { %2644 = vst.msk [vmem:[%s5624_s8 + $0x190] sm:$0xff] %vm2593_vm1, %v2360_v2  ;;  %v1864_v33 = vpop.f32.mrf.mxu2  ;;  %v5713_v2 = vld [vmem:[#allocation42_spill] sm:$0xff] }
 0x72e   :  { %v3434_v41 = vpop.eup %3433  ;;  %v1865_v39 = vadd.f32 %v4909_v57, %v1864_v33  ;;  %v1391_v33 = vadd.f32 %v4833_v53, %v5713_v2 }
 0x72f   :  { %2409 = vmatmul.f32.gmra.mxu3 %v3434_v41  ;;  %v3436_v0 = vpop.eup %3435 }
 0x730   :  { %3437 = vtanh.f32 %v1865_v39 }
 0x731   :  { %3439 = vtanh.f32 %v1370_v47 }
 0x732   :  { %1914 = vmatmul.f32.gmra.mxu2 %v3436_v0  ;;  %v2362_v61 = vpop.f32.mrf.mxu3 }
 0x733   :  { %v2363_v34 = vadd.f32 %v5010_v25, %v2362_v61 }
 0x735   :  { %2645 = vst.msk [vmem:[%s5624_s8 + $0x198] sm:$0xff] %vm2593_vm1, %v2363_v34  ;;  %v1867_v48 = vpop.f32.mrf.mxu2  ;;  %v5714_v34 = vld [vmem:[#allocation43_spill] sm:$0xff] }
 0x736   :  { %v3438_v28 = vpop.eup %3437  ;;  %v1868_v49 = vadd.f32 %v4909_v57, %v1867_v48  ;;  %v1394_v48 = vadd.f32 %v4833_v53, %v5714_v34 }
 0x737   :  { %2412 = vmatmul.f32.gmra.mxu3 %v3438_v28  ;;  %v3440_v38 = vpop.eup %3439 }
 0x738   :  { %3441 = vtanh.f32 %v1868_v49 }
 0x739   :  { %3443 = vtanh.f32 %v1373_v11 }
 0x73a   :  { %1917 = vmatmul.f32.gmra.mxu2 %v3440_v38  ;;  %v2365_v3 = vpop.f32.mrf.mxu3 }
 0x73b   :  { %v2366_v55 = vadd.f32 %v5010_v25, %v2365_v3 }
 0x73d   :  { %2646 = vst.msk [vmem:[%s5624_s8 + $0x1a0] sm:$0xff] %vm2593_vm1, %v2366_v55  ;;  %v1870_v6 = vpop.f32.mrf.mxu2  ;;  %v1397_v55 = vadd.f32 %v4833_v53, %v4446_v43 }
 0x73e   :  { %v3442_v35 = vpop.eup %3441  ;;  %v1871_v59 = vadd.f32 %v4909_v57, %v1870_v6 }
 0x73f   :  { %2415 = vmatmul.f32.gmra.mxu3 %v3442_v35  ;;  %v3444_v63 = vpop.eup %3443 }
 0x740   :  { %3445 = vtanh.f32 %v1871_v59 }
 0x741   :  { %3447 = vtanh.f32 %v1376_v42 }
 0x742   :  { %1920 = vmatmul.f32.gmra.mxu2 %v3444_v63  ;;  %v2368_v8 = vpop.f32.mrf.mxu3 }
 0x743   :  { %v2369_v9 = vadd.f32 %v5010_v25, %v2368_v8  ;;  %v5715_v8 = vld [vmem:[#allocation44_spill] sm:$0xff] }
 0x744   :  { %v1400_v43 = vadd.f32 %v4833_v53, %v5715_v8  ;;  %v5722_v8 = vld [vmem:[#allocation51_spill] sm:$0xff] }
 0x745   :  { %2647 = vst.msk [vmem:[%s5624_s8 + $0x1a8] sm:$0xff] %vm2593_vm1, %v2369_v9  ;;  %v1873_v5 = vpop.f32.mrf.mxu2 }
 0x746   :  { %v3446_v46 = vpop.eup %3445  ;;  %v1874_v44 = vadd.f32 %v4909_v57, %v1873_v5 }
 0x747   :  { %2418 = vmatmul.f32.gmra.mxu3 %v3446_v46  ;;  %v3448_v40 = vpop.eup %3447 }
 0x748   :  { %3449 = vtanh.f32 %v1874_v44 }
 0x749   :  { %3451 = vtanh.f32 %v1379_v10 }
 0x74a   :  { %1923 = vmatmul.f32.gmra.mxu2 %v3448_v40  ;;  %v2371_v13 = vpop.f32.mrf.mxu3  ;;  %v5716_v40 = vld [vmem:[#allocation45_spill] sm:$0xff] }
 0x74b   :  { %v2372_v50 = vadd.f32 %v5010_v25, %v2371_v13  ;;  %v1403_v13 = vadd.f32 %v4833_v53, %v5716_v40 }
 0x74d   :  { %2648 = vst.msk [vmem:[%s5624_s8 + $0x1b0] sm:$0xff] %vm2593_vm1, %v2372_v50  ;;  %v1876_v1 = vpop.f32.mrf.mxu2 }
 0x74e   :  { %v3450_v60 = vpop.eup %3449  ;;  %v1877_v54 = vadd.f32 %v4909_v57, %v1876_v1 }
 0x74f   :  { %2421 = vmatmul.f32.gmra.mxu3 %v3450_v60  ;;  %v3452_v58 = vpop.eup %3451 }
 0x750   :  { %3453 = vtanh.f32 %v1877_v54 }
 0x751   :  { %3455 = vtanh.f32 %v1382_v12  ;;  %v5177_v12 = vpop.f32.mrf.mxu1 }
 0x752   :  { %1926 = vmatmul.f32.gmra.mxu2 %v3452_v58  ;;  %v2374_v19 = vpop.f32.mrf.mxu3 }
 0x753   :  { %v2375_v45 = vadd.f32 %v5010_v25, %v2374_v19  ;;  %v5717_v19 = vld [vmem:[#allocation46_spill] sm:$0xff] }
 0x755   :  { %2649 = vst.msk [vmem:[%s5624_s8 + $0x1b8] sm:$0xff] %vm2593_vm1, %v2375_v45  ;;  %v1879_v16 = vpop.f32.mrf.mxu2  ;;  %v1406_v45 = vadd.f32 %v4833_v53, %v5717_v19  ;;  %v5191_v53 = vld [vmem:[%s5619_s3] ss:$0 sm:$0xff] }
 0x756   :  { %v3454_v62 = vpop.eup %3453  ;;  %v1880_v31 = vadd.f32 %v4909_v57, %v1879_v16  ;;  %v1424_v40 = vadd.f32 %v5191_v53, %v5177_v12 }
 0x757   :  { %2424 = vmatmul.f32.gmra.mxu3 %v3454_v62  ;;  %v3456_v20 = vpop.eup %3455 }
 0x758   :  { %3457 = vtanh.f32 %v1880_v31 }
 0x759   :  { %3459 = vtanh.f32 %v1385_v26 }
 0x75a   :  { %1929 = vmatmul.f32.gmra.mxu2 %v3456_v20  ;;  %v2377_v14 = vpop.f32.mrf.mxu3 }
 0x75b   :  { %v2378_v21 = vadd.f32 %v5010_v25, %v2377_v14  ;;  %v5718_v14 = vld [vmem:[#allocation47_spill] sm:$0xff] }
 0x75d   :  { %2650 = vst.msk [vmem:[%s5624_s8 + $0x1c0] sm:$0xff] %vm2593_vm1, %v2378_v21  ;;  %v1882_v36 = vpop.f32.mrf.mxu2  ;;  %v1409_v21 = vadd.f32 %v5191_v53, %v5718_v14 }
 0x75e   :  { %v3458_v51 = vpop.eup %3457  ;;  %v1883_v32 = vadd.f32 %v4909_v57, %v1882_v36  ;;  %v5195_v36 = vpop.f32.mrf.mxu1 }
 0x75f   :  { %2427 = vmatmul.f32.gmra.mxu3 %v3458_v51  ;;  %v3460_v7 = vpop.eup %3459  ;;  %v1427_v12 = vadd.f32 %v5191_v53, %v5195_v36 }
 0x760   :  { %3461 = vtanh.f32 %v1883_v32 }
 0x761   :  { %3463 = vtanh.f32 %v1388_v18 }
 0x762   :  { %1932 = vmatmul.f32.gmra.mxu2 %v3460_v7  ;;  %v2380_v30 = vpop.f32.mrf.mxu3 }
 0x763   :  { %v2381_v22 = vadd.f32 %v5010_v25, %v2380_v30 }
 0x765   :  { %2651 = vst.msk [vmem:[%s5624_s8 + $0x1c8] sm:$0xff] %vm2593_vm1, %v2381_v22  ;;  %v1885_v23 = vpop.f32.mrf.mxu2  ;;  %v5719_v22 = vld [vmem:[#allocation48_spill] sm:$0xff] }
 0x766   :  { %v3462_v56 = vpop.eup %3461  ;;  %v1886_v52 = vadd.f32 %v4909_v57, %v1885_v23  ;;  %v1412_v23 = vadd.f32 %v5191_v53, %v5719_v22 }
 0x767   :  { %2430 = vmatmul.f32.gmra.mxu3 %v3462_v56  ;;  %v3464_v41 = vpop.eup %3463 }
 0x768   :  { %3465 = vtanh.f32 %v1886_v52  ;;  %v5205_v52 = vpop.f32.mrf.mxu1 }
 0x769   :  { %3467 = vtanh.f32 %v1391_v33 }
 0x76a   :  { %1935 = vmatmul.f32.gmra.mxu2 %v3464_v41  ;;  %v2383_v39 = vpop.f32.mrf.mxu3 }
 0x76b   :  { %v2384_v29 = vadd.f32 %v5010_v25, %v2383_v39 }
 0x76d   :  { %2652 = vst.msk [vmem:[%s5624_s8 + $0x1d0] sm:$0xff] %vm2593_vm1, %v2384_v29  ;;  %v1888_v47 = vpop.f32.mrf.mxu2 }
 0x76e   :  { %v3466_v0 = vpop.eup %3465  ;;  %v1889_v61 = vadd.f32 %v4909_v57, %v1888_v47  ;;  %v5720_v47 = vld [vmem:[#allocation49_spill] sm:$0xff] }
 0x76f   :  { %2433 = vmatmul.f32.gmra.mxu3 %v3466_v0  ;;  %v3468_v28 = vpop.eup %3467  ;;  %v1415_v0 = vadd.f32 %v5191_v53, %v5720_v47 }
 0x770   :  { %3469 = vtanh.f32 %v1889_v61 }
 0x771   :  { %3471 = vtanh.f32 %v1394_v48 }
 0x772   :  { %1938 = vmatmul.f32.gmra.mxu2 %v3468_v28  ;;  %v2386_v49 = vpop.f32.mrf.mxu3  ;;  %v5216_v28 = vpop.f32.mrf.mxu1 }
 0x773   :  { %v2387_v17 = vadd.f32 %v5010_v25, %v2386_v49 }
 0x775   :  { %2653 = vst.msk [vmem:[%s5624_s8 + $0x1d8] sm:$0xff] %vm2593_vm1, %v2387_v17  ;;  %v1891_v11 = vpop.f32.mrf.mxu2 }
 0x776   :  { %v3470_v38 = vpop.eup %3469  ;;  %v1892_v3 = vadd.f32 %v4909_v57, %v1891_v11 }
 0x777   :  { %2436 = vmatmul.f32.gmra.mxu3 %v3470_v38  ;;  %v3472_v6 = vpop.eup %3471  ;;  %v5721_v38 = vld [vmem:[#allocation50_spill] sm:$0xff] }
 0x778   :  { %3473 = vtanh.f32 %v1892_v3  ;;  %v1418_v3 = vadd.f32 %v5191_v53, %v5721_v38 }
 0x779   :  { %3475 = vtanh.f32 %v1397_v55 }
 0x77a   :  { %1941 = vmatmul.f32.gmra.mxu2 %v3472_v6  ;;  %v2389_v35 = vpop.f32.mrf.mxu3 }
 0x77b   :  { %v2390_v59 = vadd.f32 %v5010_v25, %v2389_v35 }
 0x77d   :  { %2654 = vst.msk [vmem:[%s5624_s8 + $0x1e0] sm:$0xff] %vm2593_vm1, %v2390_v59  ;;  %v1894_v27 = vpop.f32.mrf.mxu2 }
 0x77e   :  { %v3474_v42 = vpop.eup %3473  ;;  %v1895_v63 = vadd.f32 %v4909_v57, %v1894_v27 }
 0x77f   :  { %2439 = vmatmul.f32.gmra.mxu3 %v3474_v42  ;;  %v3476_v9 = vpop.eup %3475  ;;  %v5230_v42 = vpop.f32.mrf.mxu1 }
 0x780   :  { %3477 = vtanh.f32 %v1895_v63 }
 0x781   :  { %3479 = vtanh.f32 %v1400_v43  ;;  %v1421_v43 = vadd.f32 %v5191_v53, %v5722_v8 }
 0x782   :  { %1944 = vmatmul.f32.gmra.mxu2 %v3476_v9  ;;  %v2392_v5 = vpop.f32.mrf.mxu3 }
 0x783   :  { %v2393_v46 = vadd.f32 %v5010_v25, %v2392_v5 }
 0x785   :  { %2655 = vst.msk [vmem:[%s5624_s8 + $0x1e8] sm:$0xff] %vm2593_vm1, %v2393_v46  ;;  %v1897_v44 = vpop.f32.mrf.mxu2 }
 0x786   :  { %v3478_v4 = vpop.eup %3477  ;;  %v1898_v10 = vadd.f32 %v4909_v57, %v1897_v44 }
 0x787   :  { %2442 = vmatmul.f32.gmra.mxu3 %v3478_v4  ;;  %v3480_v50 = vpop.eup %3479 }
 0x788   :  { %3481 = vtanh.f32 %v1898_v10 }
 0x789   :  { %3483 = vtanh.f32 %v1403_v13  ;;  %v5243_v13 = vpop.f32.mrf.mxu1 }
 0x78a   :  { %1947 = vmatmul.f32.gmra.mxu2 %v3480_v50  ;;  %v2395_v1 = vpop.f32.mrf.mxu3 }
 0x78b   :  { %v2396_v60 = vadd.f32 %v5010_v25, %v2395_v1 }
 0x78d   :  { %2656 = vst.msk [vmem:[%s5624_s8 + $0x1f0] sm:$0xff] %vm2593_vm1, %v2396_v60  ;;  %v1900_v54 = vpop.f32.mrf.mxu2 }
 0x78e   :  { %v3482_v15 = vpop.eup %3481  ;;  %v1901_v58 = vadd.f32 %v4909_v57, %v1900_v54 }
 0x78f   :  { %2445 = vmatmul.f32.gmra.mxu3 %v3482_v15  ;;  %v3484_v16 = vpop.eup %3483 }
 0x790   :  { %3485 = vtanh.f32 %v1901_v58 }
 0x791   :  { %3487 = vtanh.f32 %v1406_v45  ;;  %v1441_v45 = vpop.f32.mrf.mxu1 }
 0x792   :  { %1950 = vmatmul.f32.gmra.mxu2 %v3484_v16  ;;  %v2398_v62 = vpop.f32.mrf.mxu3 }
 0x793   :  { %v2399_v31 = vadd.f32 %v5010_v25, %v2398_v62 }
 0x795   :  { %2657 = vst.msk [vmem:[%s5624_s8 + $0x1f8] sm:$0xff] %vm2593_vm1, %v2399_v31  ;;  %v1903_v24 = vpop.f32.mrf.mxu2 }
 0x796   :  { %v3486_v26 = vpop.eup %3485  ;;  %v1904_v20 = vadd.f32 %v4909_v57, %v1903_v24 }
 0x797   :  { %2448 = vmatmul.f32.gmra.mxu3 %v3486_v26  ;;  %v3488_v51 = vpop.eup %3487 }
 0x798   :  { %3489 = vtanh.f32 %v1904_v20  ;;  %v1430_v20 = vadd.f32 %v5191_v53, %v5205_v52 }
 0x799   :  { %3491 = vtanh.f32 %v1409_v21 }
 0x79a   :  { %1953 = vmatmul.f32.gmra.mxu2 %v3488_v51  ;;  %v2401_v32 = vpop.f32.mrf.mxu3  ;;  %v1444_v51 = vpop.f32.mrf.mxu1 }
 0x79b   :  { %v2402_v37 = vadd.f32 %v5010_v25, %v2401_v32 }
 0x79d   :  { %2658 = vst.msk [vmem:[%s5624_s8 + $0x200] sm:$0xff] %vm2593_vm1, %v2402_v37  ;;  %v1906_v18 = vpop.f32.mrf.mxu2 }
 0x79e   :  { %v3490_v7 = vpop.eup %3489  ;;  %v1907_v30 = vadd.f32 %v4909_v57, %v1906_v18 }
 0x79f   :  { %2451 = vmatmul.f32.gmra.mxu3 %v3490_v7  ;;  %v3492_v56 = vpop.eup %3491  ;;  %v1433_v7 = vadd.f32 %v5191_v53, %v5216_v28 }
 0x7a0   :  { %3493 = vtanh.f32 %v1907_v30 }
 0x7a1   :  { %3495 = vtanh.f32 %v1412_v23 }
 0x7a2   :  { %1956 = vmatmul.f32.gmra.mxu2 %v3492_v56  ;;  %v2404_v2 = vpop.f32.mrf.mxu3 }
 0x7a3   :  { %v2405_v33 = vadd.f32 %v5010_v25, %v2404_v2  ;;  %v1447_v2 = vpop.f32.mrf.mxu1 }
 0x7a5   :  { %2659 = vst.msk [vmem:[%s5624_s8 + $0x208] sm:$0xff] %vm2593_vm1, %v2405_v33  ;;  %v1909_v41 = vpop.f32.mrf.mxu2 }
 0x7a6   :  { %v3494_v39 = vpop.eup %3493  ;;  %v1910_v29 = vadd.f32 %v4909_v57, %v1909_v41  ;;  %v1436_v41 = vadd.f32 %v5191_v53, %v5230_v42 }
 0x7a7   :  { %2454 = vmatmul.f32.gmra.mxu3 %v3494_v39  ;;  %v3496_v61 = vpop.eup %3495 }
 0x7a8   :  { %3497 = vtanh.f32 %v1910_v29 }
 0x7a9   :  { %3499 = vtanh.f32 %v1415_v0 }
 0x7aa   :  { %1959 = vmatmul.f32.gmra.mxu2 %v3496_v61  ;;  %v2407_v34 = vpop.f32.mrf.mxu3 }
 0x7ab   :  { %v2408_v48 = vadd.f32 %v5010_v25, %v2407_v34  ;;  %v1450_v28 = vpop.f32.mrf.mxu1 }
 0x7ad   :  { %2660 = vst.msk [vmem:[%s5624_s8 + $0x210] sm:$0xff] %vm2593_vm1, %v2408_v48  ;;  %v1912_v49 = vpop.f32.mrf.mxu2  ;;  %v1439_v48 = vadd.f32 %v5191_v53, %v5243_v13 }
 0x7ae   :  { %v3498_v17 = vpop.eup %3497  ;;  %v1913_v11 = vadd.f32 %v4909_v57, %v1912_v49 }
 0x7af   :  { %2457 = vmatmul.f32.gmra.mxu3 %v3498_v17  ;;  %v3500_v55 = vpop.eup %3499 }
 0x7b0   :  { %3501 = vtanh.f32 %v1913_v11 }
 0x7b1   :  { %3503 = vtanh.f32 %v1418_v3 }
 0x7b2   :  { %1962 = vmatmul.f32.gmra.mxu2 %v3500_v55  ;;  %v2410_v6 = vpop.f32.mrf.mxu3 }
 0x7b3   :  { %v2411_v35 = vadd.f32 %v5010_v25, %v2410_v6  ;;  %v1442_v6 = vadd.f32 %v5191_v53, %v1441_v45  ;;  %v1451_v45 = vadd.f32 %v5191_v53, %v1450_v28 }
 0x7b5   :  { %2661 = vst.msk [vmem:[%s5624_s8 + $0x218] sm:$0xff] %vm2593_vm1, %v2411_v35  ;;  %v1915_v59 = vpop.f32.mrf.mxu2 }
 0x7b6   :  { %v3502_v27 = vpop.eup %3501  ;;  %v1916_v63 = vadd.f32 %v4909_v57, %v1915_v59  ;;  %v1453_v59 = vpop.f32.mrf.mxu1 }
 0x7b7   :  { %2460 = vmatmul.f32.gmra.mxu3 %v3502_v27  ;;  %v3504_v9 = vpop.eup %3503 }
 0x7b8   :  { %3505 = vtanh.f32 %v1916_v63 }
 0x7b9   :  { %3507 = vtanh.f32 %v1421_v43 }
 0x7ba   :  { %1965 = vmatmul.f32.gmra.mxu2 %v3504_v9  ;;  %v2413_v5 = vpop.f32.mrf.mxu3  ;;  %v1445_v9 = vadd.f32 %v5191_v53, %v1444_v51 }
 0x7bb   :  { %v2414_v46 = vadd.f32 %v5010_v25, %v2413_v5 }
 0x7bd   :  { %2662 = vst.msk [vmem:[%s5624_s8 + $0x220] sm:$0xff] %vm2593_vm1, %v2414_v46  ;;  %v1918_v44 = vpop.f32.mrf.mxu2 }
 0x7be   :  { %v3506_v4 = vpop.eup %3505  ;;  %v1919_v10 = vadd.f32 %v4909_v57, %v1918_v44 }
 0x7bf   :  { %2463 = vmatmul.f32.gmra.mxu3 %v3506_v4  ;;  %v3508_v50 = vpop.eup %3507  ;;  %v1456_v4 = vpop.f32.mrf.mxu1 }
 0x7c0   :  { %3509 = vtanh.f32 %v1919_v10 }
 0x7c1   :  { %3511 = vtanh.f32 %v1424_v40 }
 0x7c2   :  { %1968 = vmatmul.f32.gmra.mxu2 %v3508_v50  ;;  %v2416_v1 = vpop.f32.mrf.mxu3  ;;  %v1448_v50 = vadd.f32 %v5191_v53, %v1447_v2 }
 0x7c3   :  { %v2417_v60 = vadd.f32 %v5010_v25, %v2416_v1 }
 0x7c5   :  { %2663 = vst.msk [vmem:[%s5624_s8 + $0x228] sm:$0xff] %vm2593_vm1, %v2417_v60  ;;  %v1921_v54 = vpop.f32.mrf.mxu2 }
 0x7c6   :  { %v3510_v15 = vpop.eup %3509  ;;  %v1922_v58 = vadd.f32 %v4909_v57, %v1921_v54 }
 0x7c7   :  { %2466 = vmatmul.f32.gmra.mxu3 %v3510_v15  ;;  %v3512_v19 = vpop.eup %3511 }
 0x7c8   :  { %3513 = vtanh.f32 %v1922_v58 }
 0x7c9   :  { %3515 = vtanh.f32 %v1427_v12  ;;  %v1459_v12 = vpop.f32.mrf.mxu1 }
 0x7ca   :  { %1971 = vmatmul.f32.gmra.mxu2 %v3512_v19  ;;  %v2419_v16 = vpop.f32.mrf.mxu3 }
 0x7cb   :  { %v2420_v62 = vadd.f32 %v5010_v25, %v2419_v16 }
 0x7cd   :  { %2664 = vst.msk [vmem:[%s5624_s8 + $0x230] sm:$0xff] %vm2593_vm1, %v2420_v62  ;;  %v1924_v31 = vpop.f32.mrf.mxu2 }
 0x7ce   :  { %v3514_v24 = vpop.eup %3513  ;;  %v1925_v26 = vadd.f32 %v4909_v57, %v1924_v31  ;;  %v5269_v57 = vld [vmem:[%s5621_s5] ss:$0 sm:$0xff] }
 0x7cf   :  { %2469 = vmatmul.f32.gmra.mxu3 %v3514_v24  ;;  %v3516_v14 = vpop.eup %3515 }
 0x7d0   :  { %3517 = vtanh.f32 %v1925_v26 }
 0x7d1   :  { %3519 = vtanh.f32 %v1430_v20 }
 0x7d2   :  { %1974 = vmatmul.f32.gmra.mxu2 %v3516_v14  ;;  %v2422_v21 = vpop.f32.mrf.mxu3  ;;  %v1454_v14 = vadd.f32 %v5191_v53, %v1453_v59 }
 0x7d3   :  { %v2423_v36 = vadd.f32 %v5010_v25, %v2422_v21  ;;  %v1462_v21 = vpop.f32.mrf.mxu1 }
 0x7d5   :  { %2665 = vst.msk [vmem:[%s5624_s8 + $0x238] sm:$0xff] %vm2593_vm1, %v2423_v36  ;;  %v1927_v32 = vpop.f32.mrf.mxu2 }
 0x7d6   :  { %v3518_v37 = vpop.eup %3517  ;;  %v1928_v18 = vadd.f32 %v5269_v57, %v1927_v32 }
 0x7d7   :  { %2472 = vmatmul.f32.gmra.mxu3 %v3518_v37  ;;  %v3520_v30 = vpop.eup %3519 }
 0x7d8   :  { %3521 = vtanh.f32 %v1928_v18 }
 0x7d9   :  { %3523 = vtanh.f32 %v1433_v7 }
 0x7da   :  { %1977 = vmatmul.f32.gmra.mxu2 %v3520_v30  ;;  %v2425_v22 = vpop.f32.mrf.mxu3  ;;  %v1457_v30 = vadd.f32 %v5191_v53, %v1456_v4 }
 0x7db   :  { %v2426_v23 = vadd.f32 %v5010_v25, %v2425_v22 }
 0x7dd   :  { %2666 = vst.msk [vmem:[%s5624_s8 + $0x240] sm:$0xff] %vm2593_vm1, %v2426_v23  ;;  %v1930_v56 = vpop.f32.mrf.mxu2  ;;  %v1465_v23 = vpop.f32.mrf.mxu1 }
 0x7de   :  { %v3522_v52 = vpop.eup %3521  ;;  %v1931_v33 = vadd.f32 %v5269_v57, %v1930_v56  ;;  %v1466_v59 = vadd.f32 %v5191_v53, %v1465_v23 }
 0x7df   :  { %2475 = vmatmul.f32.gmra.mxu3 %v3522_v52  ;;  %v3524_v39 = vpop.eup %3523 }
 0x7e0   :  { %3525 = vtanh.f32 %v1931_v33 }
 0x7e1   :  { %3527 = vtanh.f32 %v1436_v41 }
 0x7e2   :  { %1980 = vmatmul.f32.gmra.mxu2 %v3524_v39  ;;  %v2428_v29 = vpop.f32.mrf.mxu3  ;;  %v1460_v39 = vadd.f32 %v5191_v53, %v1459_v12 }
 0x7e3   :  { %v2429_v47 = vadd.f32 %v5010_v25, %v2428_v29 }
 0x7e5   :  { %2667 = vst.msk [vmem:[%s5624_s8 + $0x248] sm:$0xff] %vm2593_vm1, %v2429_v47  ;;  %v1933_v0 = vpop.f32.mrf.mxu2 }
 0x7e6   :  { %v3526_v61 = vpop.eup %3525  ;;  %v1934_v34 = vadd.f32 %v5269_v57, %v1933_v0 }
 0x7e7   :  { %2478 = vmatmul.f32.gmra.mxu3 %v3526_v61  ;;  %v3528_v49 = vpop.eup %3527  ;;  %v1468_v61 = vpop.f32.mrf.mxu1 }
 0x7e8   :  { %3529 = vtanh.f32 %v1934_v34 }
 0x7e9   :  { %3531 = vtanh.f32 %v1439_v48 }
 0x7ea   :  { %1983 = vmatmul.f32.gmra.mxu2 %v3528_v49  ;;  %v2431_v17 = vpop.f32.mrf.mxu3  ;;  %v1463_v49 = vadd.f32 %v5191_v53, %v1462_v21 }
 0x7eb   :  { %v2432_v11 = vadd.f32 %v5010_v25, %v2431_v17 }
 0x7ed   :  { %2668 = vst.msk [vmem:[%s5624_s8 + $0x250] sm:$0xff] %vm2593_vm1, %v2432_v11  ;;  %v1936_v38 = vpop.f32.mrf.mxu2 }
 0x7ee   :  { %v3530_v3 = vpop.eup %3529  ;;  %v1937_v55 = vadd.f32 %v5269_v57, %v1936_v38 }
 0x7ef   :  { %2481 = vmatmul.f32.gmra.mxu3 %v3530_v3  ;;  %v3532_v35 = vpop.eup %3531 }
 0x7f0   :  { %3533 = vtanh.f32 %v1937_v55 }
 0x7f1   :  { %3535 = vtanh.f32 %v1442_v6  ;;  %v1471_v6 = vpop.f32.mrf.mxu1 }
 0x7f2   :  { %1986 = vmatmul.f32.gmra.mxu2 %v3532_v35  ;;  %v2434_v27 = vpop.f32.mrf.mxu3 }
 0x7f3   :  { %v2435_v42 = vadd.f32 %v5010_v25, %v2434_v27 }
 0x7f5   :  { %2669 = vst.msk [vmem:[%s5624_s8 + $0x258] sm:$0xff] %vm2593_vm1, %v2435_v42  ;;  %v1939_v63 = vpop.f32.mrf.mxu2 }
 0x7f6   :  { %v3534_v8 = vpop.eup %3533  ;;  %v1940_v43 = vadd.f32 %v5269_v57, %v1939_v63 }
 0x7f7   :  { %2484 = vmatmul.f32.gmra.mxu3 %v3534_v8  ;;  %v3536_v5 = vpop.eup %3535 }
 0x7f8   :  { %3537 = vtanh.f32 %v1940_v43 }
 0x7f9   :  { %3539 = vtanh.f32 %v1445_v9 }
 0x7fa   :  { %1989 = vmatmul.f32.gmra.mxu2 %v3536_v5  ;;  %v2437_v46 = vpop.f32.mrf.mxu3  ;;  %v1469_v5 = vadd.f32 %v5191_v53, %v1468_v61 }
 0x7fb   :  { %v2438_v44 = vadd.f32 %v5010_v25, %v2437_v46  ;;  %v1474_v46 = vpop.f32.mrf.mxu1 }
 0x7fd   :  { %2670 = vst.msk [vmem:[%s5624_s8 + $0x260] sm:$0xff] %vm2593_vm1, %v2438_v44  ;;  %v1942_v10 = vpop.f32.mrf.mxu2 }
 0x7fe   :  { %v3538_v40 = vpop.eup %3537  ;;  %v1943_v13 = vadd.f32 %v5269_v57, %v1942_v10  ;;  %v5360_v10 = vld [vmem:[#allocation2] ss:$0 sm:$0xff] }
 0x7ff   :  { %2487 = vmatmul.f32.gmra.mxu3 %v3538_v40  ;;  %v3540_v1 = vpop.eup %3539 }
 0x800   :  { %3541 = vtanh.f32 %v1943_v13 }
 0x801   :  { %3543 = vtanh.f32 %v1448_v50 }
 0x802   :  { %1992 = vmatmul.f32.gmra.mxu2 %v3540_v1  ;;  %v2440_v60 = vpop.f32.mrf.mxu3  ;;  %v1472_v1 = vadd.f32 %v5191_v53, %v1471_v6 }
 0x803   :  { %v2441_v54 = vadd.f32 %v5010_v25, %v2440_v60 }
 0x805   :  { %2671 = vst.msk [vmem:[%s5624_s8 + $0x268] sm:$0xff] %vm2593_vm1, %v2441_v54  ;;  %v1945_v15 = vpop.f32.mrf.mxu2  ;;  %v1477_v54 = vpop.f32.mrf.mxu1 }
 0x806   :  { %v3542_v58 = vpop.eup %3541  ;;  %v1946_v19 = vadd.f32 %v5269_v57, %v1945_v15 }
 0x807   :  { %2490 = vmatmul.f32.gmra.mxu3 %v3542_v58  ;;  %v3544_v16 = vpop.eup %3543 }
 0x808   :  { %3545 = vtanh.f32 %v1946_v19 }
 0x809   :  { %3547 = vtanh.f32 %v1451_v45 }
 0x80a   :  { %1995 = vmatmul.f32.gmra.mxu2 %v3544_v16  ;;  %v2443_v62 = vpop.f32.mrf.mxu3  ;;  %v1475_v16 = vadd.f32 %v5191_v53, %v1474_v46 }
 0x80b   :  { %v2444_v31 = vadd.f32 %v5010_v25, %v2443_v62 }
 0x80d   :  { %2672 = vst.msk [vmem:[%s5624_s8 + $0x270] sm:$0xff] %vm2593_vm1, %v2444_v31  ;;  %v1948_v24 = vpop.f32.mrf.mxu2 }
 0x80e   :  { %v3546_v26 = vpop.eup %3545  ;;  %v1949_v20 = vadd.f32 %v5269_v57, %v1948_v24 }
 0x80f   :  { %2493 = vmatmul.f32.gmra.mxu3 %v3546_v26  ;;  %v3548_v36 = vpop.eup %3547  ;;  %v1480_v26 = vpop.f32.mrf.mxu1 }
 0x810   :  { %3549 = vtanh.f32 %v1949_v20  ;;  %v1481_v23 = vadd.f32 %v5191_v53, %v1480_v26 }
 0x811   :  { %3551 = vtanh.f32 %v1454_v14 }
 0x812   :  { %1998 = vmatmul.f32.gmra.mxu2 %v3548_v36  ;;  %v2446_v51 = vpop.f32.mrf.mxu3  ;;  %v1478_v36 = vadd.f32 %v5191_v53, %v1477_v54 }
 0x813   :  { %v2447_v32 = vadd.f32 %v5010_v25, %v2446_v51 }
 0x815   :  { %2673 = vst.msk [vmem:[%s5624_s8 + $0x278] sm:$0xff] %vm2593_vm1, %v2447_v32  ;;  %v1951_v37 = vpop.f32.mrf.mxu2 }
 0x816   :  { %v3550_v18 = vpop.eup %3549  ;;  %v1952_v7 = vadd.f32 %v5269_v57, %v1951_v37 }
 0x817   :  { %2496 = vmatmul.f32.gmra.mxu3 %v3550_v18  ;;  %v3552_v22 = vpop.eup %3551 }
 0x818   :  { %3553 = vtanh.f32 %v1952_v7 }
 0x819   :  { %3555 = vtanh.f32 %v1457_v30  ;;  %v1483_v30 = vpop.f32.mrf.mxu1 }
 0x81a   :  { %2001 = vmatmul.f32.gmra.mxu2 %v3552_v22  ;;  %v2449_v56 = vpop.f32.mrf.mxu3 }
 0x81b   :  { %v2450_v52 = vadd.f32 %v5010_v25, %v2449_v56 }
 0x81d   :  { %2674 = vst.msk [vmem:[%s5624_s8 + $0x280] sm:$0xff] %vm2593_vm1, %v2450_v52  ;;  %v1954_v2 = vpop.f32.mrf.mxu2 }
 0x81e   :  { %v3554_v33 = vpop.eup %3553  ;;  %v1955_v41 = vadd.f32 %v5269_v57, %v1954_v2 }
 0x81f   :  { %2499 = vmatmul.f32.gmra.mxu3 %v3554_v33  ;;  %v3556_v29 = vpop.eup %3555 }
 0x820   :  { %3557 = vtanh.f32 %v1955_v41 }
 0x821   :  { %3559 = vtanh.f32 %v1460_v39 }
 0x822   :  { %2004 = vmatmul.f32.gmra.mxu2 %v3556_v29  ;;  %v2452_v47 = vpop.f32.mrf.mxu3  ;;  %v1484_v29 = vadd.f32 %v5191_v53, %v1483_v30 }
 0x823   :  { %v2453_v0 = vadd.f32 %v5010_v25, %v2452_v47  ;;  %v1486_v47 = vpop.f32.mrf.mxu1 }
 0x825   :  { %2675 = vst.msk [vmem:[%s5624_s8 + $0x288] sm:$0xff] %vm2593_vm1, %v2453_v0  ;;  %v1957_v34 = vpop.f32.mrf.mxu2 }
 0x826   :  { %v3558_v48 = vpop.eup %3557  ;;  %v1958_v28 = vadd.f32 %v5269_v57, %v1957_v34 }
 0x827   :  { %2502 = vmatmul.f32.gmra.mxu3 %v3558_v48  ;;  %v3560_v17 = vpop.eup %3559 }
 0x828   :  { %3561 = vtanh.f32 %v1958_v28 }
 0x829   :  { %3563 = vtanh.f32 %v1463_v49 }
 0x82a   :  { %2007 = vmatmul.f32.gmra.mxu2 %v3560_v17  ;;  %v2455_v11 = vpop.f32.mrf.mxu3  ;;  %v1487_v17 = vadd.f32 %v5191_v53, %v1486_v47 }
 0x82b   :  { %v2456_v38 = vadd.f32 %v5010_v25, %v2455_v11 }
 0x82d   :  { %2676 = vst.msk [vmem:[%s5624_s8 + $0x290] sm:$0xff] %vm2593_vm1, %v2456_v38  ;;  %v1960_v3 = vpop.f32.mrf.mxu2  ;;  %v1489_v38 = vpop.f32.mrf.mxu1 }
 0x82e   :  { %v3562_v55 = vpop.eup %3561  ;;  %v1961_v35 = vadd.f32 %v5269_v57, %v1960_v3 }
 0x82f   :  { %2505 = vmatmul.f32.gmra.mxu3 %v3562_v55  ;;  %v3564_v27 = vpop.eup %3563 }
 0x830   :  { %3565 = vtanh.f32 %v1961_v35 }
 0x831   :  { %3567 = vtanh.f32 %v1466_v59 }
 0x832   :  { %2010 = vmatmul.f32.gmra.mxu2 %v3564_v27  ;;  %v2458_v42 = vpop.f32.mrf.mxu3  ;;  %v1490_v27 = vadd.f32 %v5191_v53, %v1489_v38 }
 0x833   :  { %v2459_v63 = vadd.f32 %v5010_v25, %v2458_v42 }
 0x835   :  { %2677 = vst.msk [vmem:[%s5624_s8 + $0x298] sm:$0xff] %vm2593_vm1, %v2459_v63  ;;  %v1963_v8 = vpop.f32.mrf.mxu2 }
 0x836   :  { %v3566_v43 = vpop.eup %3565  ;;  %v1964_v9 = vadd.f32 %v5269_v57, %v1963_v8 }
 0x837   :  { %2508 = vmatmul.f32.gmra.mxu3 %v3566_v43  ;;  %v3568_v44 = vpop.eup %3567  ;;  %v1492_v43 = vpop.f32.mrf.mxu1 }
 0x838   :  { %3569 = vtanh.f32 %v1964_v9 }
 0x839   :  { %3571 = vtanh.f32 %v1469_v5 }
 0x83a   :  { %2013 = vmatmul.f32.gmra.mxu2 %v3568_v44  ;;  %v2461_v4 = vpop.f32.mrf.mxu3  ;;  %v1493_v44 = vadd.f32 %v5191_v53, %v1492_v43 }
 0x83b   :  { %v2462_v25 = vadd.f32 %v5360_v10, %v2461_v4 }
 0x83d   :  { %2678 = vst.msk [vmem:[%s5624_s8 + $0x2a0] sm:$0xff] %vm2593_vm1, %v2462_v25  ;;  %v1966_v40 = vpop.f32.mrf.mxu2 }
 0x83e   :  { %v3570_v13 = vpop.eup %3569  ;;  %v1967_v50 = vadd.f32 %v5269_v57, %v1966_v40 }
 0x83f   :  { %2511 = vmatmul.f32.gmra.mxu3 %v3570_v13  ;;  %v3572_v60 = vpop.eup %3571 }
 0x840   :  { %3573 = vtanh.f32 %v1967_v50 }
 0x841   :  { %3575 = vtanh.f32 %v1472_v1 }
 0x842   :  { %2016 = vmatmul.f32.gmra.mxu2 %v3572_v60  ;;  %v2464_v15 = vpop.f32.mrf.mxu3 }
 0x843   :  { %v2465_v58 = vadd.f32 %v5360_v10, %v2464_v15 }
 0x845   :  { %2679 = vst.msk [vmem:[%s5624_s8 + $0x2a8] sm:$0xff] %vm2593_vm1, %v2465_v58  ;;  %v1969_v12 = vpop.f32.mrf.mxu2 }
 0x846   :  { %v3574_v19 = vpop.eup %3573  ;;  %v1970_v45 = vadd.f32 %v5269_v57, %v1969_v12 }
 0x847   :  { %2514 = vmatmul.f32.gmra.mxu3 %v3574_v19  ;;  %v3576_v62 = vpop.eup %3575 }
 0x848   :  { %3577 = vtanh.f32 %v1970_v45 }
 0x849   :  { %3579 = vtanh.f32 %v1475_v16 }
 0x84a   :  { %2019 = vmatmul.f32.gmra.mxu2 %v3576_v62  ;;  %v2467_v31 = vpop.f32.mrf.mxu3 }
 0x84b   :  { %v2468_v24 = vadd.f32 %v5360_v10, %v2467_v31 }
 0x84d   :  { %2680 = vst.msk [vmem:[%s5624_s8 + $0x2b0] sm:$0xff] %vm2593_vm1, %v2468_v24  ;;  %v1972_v20 = vpop.f32.mrf.mxu2 }
 0x84e   :  { %v3578_v14 = vpop.eup %3577  ;;  %v1973_v21 = vadd.f32 %v5269_v57, %v1972_v20 }
 0x84f   :  { %2517 = vmatmul.f32.gmra.mxu3 %v3578_v14  ;;  %v3580_v51 = vpop.eup %3579 }
 0x850   :  { %3581 = vtanh.f32 %v1973_v21 }
 0x851   :  { %3583 = vtanh.f32 %v1478_v36 }
 0x852   :  { %2022 = vmatmul.f32.gmra.mxu2 %v3580_v51  ;;  %v2470_v32 = vpop.f32.mrf.mxu3 }
 0x853   :  { %v2471_v37 = vadd.f32 %v5360_v10, %v2470_v32 }
 0x855   :  { %2681 = vst.msk [vmem:[%s5624_s8 + $0x2b8] sm:$0xff] %vm2593_vm1, %v2471_v37  ;;  %v1975_v18 = vpop.f32.mrf.mxu2 }
 0x856   :  { %v3582_v7 = vpop.eup %3581  ;;  %v1976_v22 = vadd.f32 %v5269_v57, %v1975_v18 }
 0x857   :  { %2520 = vmatmul.f32.gmra.mxu3 %v3582_v7  ;;  %v3584_v56 = vpop.eup %3583 }
 0x858   :  { %3585 = vtanh.f32 %v1976_v22 }
 0x859   :  { %3587 = vtanh.f32 %v1481_v23 }
 0x85a   :  { %2025 = vmatmul.f32.gmra.mxu2 %v3584_v56  ;;  %v2473_v52 = vpop.f32.mrf.mxu3 }
 0x85b   :  { %v2474_v2 = vadd.f32 %v5360_v10, %v2473_v52 }
 0x85d   :  { %2682 = vst.msk [vmem:[%s5624_s8 + $0x2c0] sm:$0xff] %vm2593_vm1, %v2474_v2  ;;  %v1978_v33 = vpop.f32.mrf.mxu2 }
 0x85e   :  { %v3586_v41 = vpop.eup %3585  ;;  %v1979_v39 = vadd.f32 %v5269_v57, %v1978_v33 }
 0x85f   :  { %2523 = vmatmul.f32.gmra.mxu3 %v3586_v41  ;;  %v3588_v0 = vpop.eup %3587 }
 0x860   :  { %3589 = vtanh.f32 %v1979_v39 }
 0x861   :  { %3591 = vtanh.f32 %v1484_v29 }
 0x862   :  { %2028 = vmatmul.f32.gmra.mxu2 %v3588_v0  ;;  %v2476_v61 = vpop.f32.mrf.mxu3 }
 0x863   :  { %v2477_v34 = vadd.f32 %v5360_v10, %v2476_v61 }
 0x865   :  { %2683 = vst.msk [vmem:[%s5624_s8 + $0x2c8] sm:$0xff] %vm2593_vm1, %v2477_v34  ;;  %v1981_v48 = vpop.f32.mrf.mxu2 }
 0x866   :  { %v3590_v28 = vpop.eup %3589  ;;  %v1982_v49 = vadd.f32 %v5269_v57, %v1981_v48 }
 0x867   :  { %2526 = vmatmul.f32.gmra.mxu3 %v3590_v28  ;;  %v3592_v11 = vpop.eup %3591 }
 0x868   :  { %3593 = vtanh.f32 %v1982_v49 }
 0x869   :  { %3595 = vtanh.f32 %v1487_v17 }
 0x86a   :  { %2031 = vmatmul.f32.gmra.mxu2 %v3592_v11  ;;  %v2479_v3 = vpop.f32.mrf.mxu3 }
 0x86b   :  { %v2480_v55 = vadd.f32 %v5360_v10, %v2479_v3 }
 0x86d   :  { %2684 = vst.msk [vmem:[%s5624_s8 + $0x2d0] sm:$0xff] %vm2593_vm1, %v2480_v55  ;;  %v1984_v6 = vpop.f32.mrf.mxu2 }
 0x86e   :  { %v3594_v35 = vpop.eup %3593  ;;  %v1985_v59 = vadd.f32 %v5269_v57, %v1984_v6 }
 0x86f   :  { %2529 = vmatmul.f32.gmra.mxu3 %v3594_v35  ;;  %v3596_v42 = vpop.eup %3595 }
 0x870   :  { %3597 = vtanh.f32 %v1985_v59 }
 0x871   :  { %3599 = vtanh.f32 %v1490_v27 }
 0x872   :  { %2034 = vmatmul.f32.gmra.mxu2 %v3596_v42  ;;  %v2482_v63 = vpop.f32.mrf.mxu3 }
 0x873   :  { %v2483_v8 = vadd.f32 %v5360_v10, %v2482_v63 }
 0x875   :  { %2685 = vst.msk [vmem:[%s5624_s8 + $0x2d8] sm:$0xff] %vm2593_vm1, %v2483_v8  ;;  %v1987_v9 = vpop.f32.mrf.mxu2 }
 0x876   :  { %v3598_v5 = vpop.eup %3597  ;;  %v1988_v46 = vadd.f32 %v5269_v57, %v1987_v9 }
 0x877   :  { %2532 = vmatmul.f32.gmra.mxu3 %v3598_v5  ;;  %v3600_v4 = vpop.eup %3599 }
 0x878   :  { %3601 = vtanh.f32 %v1988_v46 }
 0x879   :  { %3603 = vtanh.f32 %v1493_v44 }
 0x87a   :  { %2037 = vmatmul.f32.gmra.mxu2 %v3600_v4  ;;  %v2485_v25 = vpop.f32.mrf.mxu3 }
 0x87b   :  { %v2486_v40 = vadd.f32 %v5360_v10, %v2485_v25 }
 0x87d   :  { %2686 = vst.msk [vmem:[%s5624_s8 + $0x2e0] sm:$0xff] %vm2593_vm1, %v2486_v40  ;;  %v1990_v13 = vpop.f32.mrf.mxu2 }
 0x87e   :  { %v3602_v50 = vpop.eup %3601  ;;  %v1991_v1 = vadd.f32 %v5269_v57, %v1990_v13 }
 0x87f   :  { %2535 = vmatmul.f32.gmra.mxu3 %v3602_v50  ;;  %v3604_v53 = vpop.eup %3603 }
 0x880   :  { %3605 = vtanh.f32 %v1991_v1 }
 0x882   :  { %2040 = vmatmul.f32.gmra.mxu2 %v3604_v53  ;;  %v2488_v60 = vpop.f32.mrf.mxu3 }
 0x883   :  { %v2489_v54 = vadd.f32 %v5360_v10, %v2488_v60 }
 0x885   :  { %2687 = vst.msk [vmem:[%s5624_s8 + $0x2e8] sm:$0xff] %vm2593_vm1, %v2489_v54  ;;  %v1993_v15 = vpop.f32.mrf.mxu2 }
 0x886   :  { %v3606_v58 = vpop.eup %3605  ;;  %v1994_v12 = vadd.f32 %v5269_v57, %v1993_v15 }
 0x887   :  { %2538 = vmatmul.f32.gmra.mxu3 %v3606_v58 }
 0x888   :  { %3607 = vtanh.f32 %v1994_v12 }
 0x88a   :  { %v2491_v19 = vpop.f32.mrf.mxu3 }
 0x88b   :  { %v2492_v45 = vadd.f32 %v5360_v10, %v2491_v19 }
 0x88d   :  { %2688 = vst.msk [vmem:[%s5624_s8 + $0x2f0] sm:$0xff] %vm2593_vm1, %v2492_v45  ;;  %v1996_v16 = vpop.f32.mrf.mxu2 }
 0x88e   :  { %v3608_v62 = vpop.eup %3607  ;;  %v1997_v31 = vadd.f32 %v5269_v57, %v1996_v16 }
 0x88f   :  { %2541 = vmatmul.f32.gmra.mxu3 %v3608_v62 }
 0x890   :  { %3609 = vtanh.f32 %v1997_v31 }
 0x892   :  { %v2494_v24 = vpop.f32.mrf.mxu3 }
 0x893   :  { %v2495_v26 = vadd.f32 %v5360_v10, %v2494_v24 }
 0x895   :  { %2689 = vst.msk [vmem:[%s5624_s8 + $0x2f8] sm:$0xff] %vm2593_vm1, %v2495_v26  ;;  %v1999_v20 = vpop.f32.mrf.mxu2 }
 0x896   :  { %v3610_v14 = vpop.eup %3609  ;;  %v2000_v21 = vadd.f32 %v5269_v57, %v1999_v20 }
 0x897   :  { %2544 = vmatmul.f32.gmra.mxu3 %v3610_v14 }
 0x898   :  { %3611 = vtanh.f32 %v2000_v21 }
 0x89a   :  { %v2497_v36 = vpop.f32.mrf.mxu3 }
 0x89b   :  { %v2498_v51 = vadd.f32 %v5360_v10, %v2497_v36 }
 0x89d   :  { %2690 = vst.msk [vmem:[%s5624_s8 + $0x300] sm:$0xff] %vm2593_vm1, %v2498_v51  ;;  %v2002_v32 = vpop.f32.mrf.mxu2 }
 0x89e   :  { %v3612_v37 = vpop.eup %3611  ;;  %v2003_v18 = vadd.f32 %v5269_v57, %v2002_v32 }
 0x89f   :  { %2547 = vmatmul.f32.gmra.mxu3 %v3612_v37 }
 0x8a0   :  { %3613 = vtanh.f32 %v2003_v18 }
 0x8a2   :  { %v2500_v7 = vpop.f32.mrf.mxu3 }
 0x8a3   :  { %v2501_v30 = vadd.f32 %v5360_v10, %v2500_v7 }
 0x8a5   :  { %2691 = vst.msk [vmem:[%s5624_s8 + $0x308] sm:$0xff] %vm2593_vm1, %v2501_v30  ;;  %v2005_v22 = vpop.f32.mrf.mxu2 }
 0x8a6   :  { %v3614_v23 = vpop.eup %3613  ;;  %v2006_v56 = vadd.f32 %v5269_v57, %v2005_v22 }
 0x8a7   :  { %2550 = vmatmul.f32.gmra.mxu3 %v3614_v23 }
 0x8a8   :  { %3615 = vtanh.f32 %v2006_v56 }
 0x8aa   :  { %v2503_v52 = vpop.f32.mrf.mxu3 }
 0x8ab   :  { %v2504_v2 = vadd.f32 %v5360_v10, %v2503_v52 }
 0x8ad   :  { %2692 = vst.msk [vmem:[%s5624_s8 + $0x310] sm:$0xff] %vm2593_vm1, %v2504_v2  ;;  %v2008_v33 = vpop.f32.mrf.mxu2 }
 0x8ae   :  { %v3616_v41 = vpop.eup %3615  ;;  %v2009_v39 = vadd.f32 %v5269_v57, %v2008_v33 }
 0x8af   :  { %2553 = vmatmul.f32.gmra.mxu3 %v3616_v41 }
 0x8b0   :  { %3617 = vtanh.f32 %v2009_v39 }
 0x8b2   :  { %v2506_v29 = vpop.f32.mrf.mxu3 }
 0x8b3   :  { %v2507_v47 = vadd.f32 %v5360_v10, %v2506_v29 }
 0x8b5   :  { %2693 = vst.msk [vmem:[%s5624_s8 + $0x318] sm:$0xff] %vm2593_vm1, %v2507_v47  ;;  %v2011_v0 = vpop.f32.mrf.mxu2 }
 0x8b6   :  { %v3618_v61 = vpop.eup %3617  ;;  %v2012_v34 = vadd.f32 %v5269_v57, %v2011_v0 }
 0x8b7   :  { %2556 = vmatmul.f32.gmra.mxu3 %v3618_v61 }
 0x8b8   :  { %3619 = vtanh.f32 %v2012_v34 }
 0x8ba   :  { %v2509_v48 = vpop.f32.mrf.mxu3 }
 0x8bb   :  { %v2510_v28 = vadd.f32 %v5360_v10, %v2509_v48 }
 0x8bd   :  { %2694 = vst.msk [vmem:[%s5624_s8 + $0x320] sm:$0xff] %vm2593_vm1, %v2510_v28  ;;  %v2014_v49 = vpop.f32.mrf.mxu2 }
 0x8be   :  { %v3620_v17 = vpop.eup %3619  ;;  %v2015_v11 = vadd.f32 %v5269_v57, %v2014_v49 }
 0x8bf   :  { %2559 = vmatmul.f32.gmra.mxu3 %v3620_v17 }
 0x8c0   :  { %3621 = vtanh.f32 %v2015_v11 }
 0x8c2   :  { %v2512_v38 = vpop.f32.mrf.mxu3 }
 0x8c3   :  { %v2513_v3 = vadd.f32 %v5360_v10, %v2512_v38 }
 0x8c5   :  { %2695 = vst.msk [vmem:[%s5624_s8 + $0x328] sm:$0xff] %vm2593_vm1, %v2513_v3  ;;  %v2017_v55 = vpop.f32.mrf.mxu2 }
 0x8c6   :  { %v3622_v6 = vpop.eup %3621  ;;  %v2018_v35 = vadd.f32 %v5269_v57, %v2017_v55 }
 0x8c7   :  { %2562 = vmatmul.f32.gmra.mxu3 %v3622_v6 }
 0x8c8   :  { %3623 = vtanh.f32 %v2018_v35 }
 0x8ca   :  { %v2515_v59 = vpop.f32.mrf.mxu3 }
 0x8cb   :  { %v2516_v27 = vadd.f32 %v5360_v10, %v2515_v59 }
 0x8cd   :  { %2696 = vst.msk [vmem:[%s5624_s8 + $0x330] sm:$0xff] %vm2593_vm1, %v2516_v27  ;;  %v2020_v42 = vpop.f32.mrf.mxu2 }
 0x8ce   :  { %v3624_v63 = vpop.eup %3623  ;;  %v2021_v8 = vadd.f32 %v5269_v57, %v2020_v42 }
 0x8cf   :  { %2565 = vmatmul.f32.gmra.mxu3 %v3624_v63 }
 0x8d0   :  { %3625 = vtanh.f32 %v2021_v8 }
 0x8d2   :  { %v2518_v43 = vpop.f32.mrf.mxu3 }
 0x8d3   :  { %v2519_v9 = vadd.f32 %v5360_v10, %v2518_v43 }
 0x8d5   :  { %2697 = vst.msk [vmem:[%s5624_s8 + $0x338] sm:$0xff] %vm2593_vm1, %v2519_v9  ;;  %v2023_v5 = vpop.f32.mrf.mxu2 }
 0x8d6   :  { %v3626_v46 = vpop.eup %3625  ;;  %v2024_v44 = vadd.f32 %v5269_v57, %v2023_v5 }
 0x8d7   :  { %2568 = vmatmul.f32.gmra.mxu3 %v3626_v46 }
 0x8d8   :  { %3627 = vtanh.f32 %v2024_v44 }
 0x8da   :  { %v2521_v4 = vpop.f32.mrf.mxu3 }
 0x8db   :  { %v2522_v25 = vadd.f32 %v5360_v10, %v2521_v4 }
 0x8dd   :  { %2698 = vst.msk [vmem:[%s5624_s8 + $0x340] sm:$0xff] %vm2593_vm1, %v2522_v25  ;;  %v2026_v40 = vpop.f32.mrf.mxu2 }
 0x8de   :  { %v3628_v13 = vpop.eup %3627  ;;  %v2027_v50 = vadd.f32 %v5269_v57, %v2026_v40 }
 0x8df   :  { %2571 = vmatmul.f32.gmra.mxu3 %v3628_v13 }
 0x8e0   :  { %3629 = vtanh.f32 %v2027_v50 }
 0x8e2   :  { %v2524_v1 = vpop.f32.mrf.mxu3 }
 0x8e3   :  { %v2525_v53 = vadd.f32 %v5360_v10, %v2524_v1 }
 0x8e5   :  { %2699 = vst.msk [vmem:[%s5624_s8 + $0x348] sm:$0xff] %vm2593_vm1, %v2525_v53  ;;  %v2029_v60 = vpop.f32.mrf.mxu2 }
 0x8e6   :  { %v3630_v54 = vpop.eup %3629  ;;  %v2030_v15 = vadd.f32 %v5269_v57, %v2029_v60 }
 0x8e7   :  { %2574 = vmatmul.f32.gmra.mxu3 %v3630_v54 }
 0x8e8   :  { %3631 = vtanh.f32 %v2030_v15 }
 0x8ea   :  { %v2527_v58 = vpop.f32.mrf.mxu3 }
 0x8eb   :  { %v2528_v12 = vadd.f32 %v5360_v10, %v2527_v58 }
 0x8ed   :  { %2700 = vst.msk [vmem:[%s5624_s8 + $0x350] sm:$0xff] %vm2593_vm1, %v2528_v12  ;;  %v2032_v19 = vpop.f32.mrf.mxu2 }
 0x8ee   :  { %v3632_v45 = vpop.eup %3631  ;;  %v2033_v16 = vadd.f32 %v5269_v57, %v2032_v19 }
 0x8ef   :  { %2577 = vmatmul.f32.gmra.mxu3 %v3632_v45 }
 0x8f0   :  { %3633 = vtanh.f32 %v2033_v16 }
 0x8f2   :  { %v2530_v62 = vpop.f32.mrf.mxu3 }
 0x8f3   :  { %v2531_v31 = vadd.f32 %v5360_v10, %v2530_v62 }
 0x8f5   :  { %2701 = vst.msk [vmem:[%s5624_s8 + $0x358] sm:$0xff] %vm2593_vm1, %v2531_v31  ;;  %v2035_v24 = vpop.f32.mrf.mxu2 }
 0x8f6   :  { %v3634_v26 = vpop.eup %3633  ;;  %v2036_v20 = vadd.f32 %v5269_v57, %v2035_v24 }
 0x8f7   :  { %2580 = vmatmul.f32.gmra.mxu3 %v3634_v26 }
 0x8f8   :  { %3635 = vtanh.f32 %v2036_v20 }
 0x8fa   :  { %v2533_v14 = vpop.f32.mrf.mxu3 }
 0x8fb   :  { %v2534_v21 = vadd.f32 %v5360_v10, %v2533_v14 }
 0x8fd   :  { %2702 = vst.msk [vmem:[%s5624_s8 + $0x360] sm:$0xff] %vm2593_vm1, %v2534_v21  ;;  %v2038_v36 = vpop.f32.mrf.mxu2 }
 0x8fe   :  { %v3636_v51 = vpop.eup %3635  ;;  %v2039_v32 = vadd.f32 %v5269_v57, %v2038_v36 }
 0x8ff   :  { %2583 = vmatmul.f32.gmra.mxu3 %v3636_v51 }
 0x900   :  { %3637 = vtanh.f32 %v2039_v32 }
 0x902   :  { %v2536_v37 = vpop.f32.mrf.mxu3 }
 0x903   :  { %v2537_v18 = vadd.f32 %v5360_v10, %v2536_v37 }
 0x905   :  { %2703 = vst.msk [vmem:[%s5624_s8 + $0x368] sm:$0xff] %vm2593_vm1, %v2537_v18  ;;  %v2041_v7 = vpop.f32.mrf.mxu2 }
 0x906   :  { %v3638_v30 = vpop.eup %3637  ;;  %v2042_v22 = vadd.f32 %v5269_v57, %v2041_v7 }
 0x907   :  { %2586 = vmatmul.f32.gmra.mxu3 %v3638_v30 }
 0x908   :  { %3639 = vtanh.f32 %v2042_v22 }
 0x90a   :  { %v2539_v23 = vpop.f32.mrf.mxu3 }
 0x90b   :  { %v2540_v56 = vadd.f32 %v5360_v10, %v2539_v23 }
 0x90d   :  { %2704 = vst.msk [vmem:[%s5624_s8 + $0x370] sm:$0xff] %vm2593_vm1, %v2540_v56 }
 0x90e   :  { %v3640_v52 = vpop.eup %3639 }
 0x90f   :  { %2589 = vmatmul.f32.gmra.mxu3 %v3640_v52 }
 0x912   :  { %v2542_v2 = vpop.f32.mrf.mxu3 }
 0x913   :  { %v2543_v33 = vadd.f32 %v5360_v10, %v2542_v2 }
 0x915   :  { %2705 = vst.msk [vmem:[%s5624_s8 + $0x378] sm:$0xff] %vm2593_vm1, %v2543_v33 }
 0x91a   :  { %v2545_v57 = vpop.f32.mrf.mxu3 }
 0x91b   :  { %v2546_v41 = vadd.f32 %v5360_v10, %v2545_v57 }
 0x91d   :  { %2706 = vst.msk [vmem:[%s5624_s8 + $0x380] sm:$0xff] %vm2593_vm1, %v2546_v41 }
 0x922   :  { %v2548_v39 = vpop.f32.mrf.mxu3 }
 0x923   :  { %v2549_v29 = vadd.f32 %v5360_v10, %v2548_v39 }
 0x925   :  { %2707 = vst.msk [vmem:[%s5624_s8 + $0x388] sm:$0xff] %vm2593_vm1, %v2549_v29 }
 0x92a   :  { %v2551_v47 = vpop.f32.mrf.mxu3 }
 0x92b   :  { %v2552_v0 = vadd.f32 %v5360_v10, %v2551_v47 }
 0x92d   :  { %2708 = vst.msk [vmem:[%s5624_s8 + $0x390] sm:$0xff] %vm2593_vm1, %v2552_v0 }
 0x932   :  { %v2554_v61 = vpop.f32.mrf.mxu3 }
 0x933   :  { %v2555_v34 = vadd.f32 %v5360_v10, %v2554_v61 }
 0x935   :  { %2709 = vst.msk [vmem:[%s5624_s8 + $0x398] sm:$0xff] %vm2593_vm1, %v2555_v34 }
 0x93a   :  { %v2557_v48 = vpop.f32.mrf.mxu3 }
 0x93b   :  { %v2558_v28 = vadd.f32 %v5360_v10, %v2557_v48 }
 0x93d   :  { %2710 = vst.msk [vmem:[%s5624_s8 + $0x3a0] sm:$0xff] %vm2593_vm1, %v2558_v28 }
 0x942   :  { %v2560_v49 = vpop.f32.mrf.mxu3 }
 0x943   :  { %v2561_v17 = vadd.f32 %v5360_v10, %v2560_v49 }
 0x945   :  { %2711 = vst.msk [vmem:[%s5624_s8 + $0x3a8] sm:$0xff] %vm2593_vm1, %v2561_v17 }
 0x94a   :  { %v2563_v11 = vpop.f32.mrf.mxu3 }
 0x94b   :  { %v2564_v38 = vadd.f32 %v5360_v10, %v2563_v11 }
 0x94d   :  { %2712 = vst.msk [vmem:[%s5624_s8 + $0x3b0] sm:$0xff] %vm2593_vm1, %v2564_v38 }
 0x952   :  { %v2566_v3 = vpop.f32.mrf.mxu3 }
 0x953   :  { %v2567_v55 = vadd.f32 %v5360_v10, %v2566_v3 }
 0x955   :  { %2713 = vst.msk [vmem:[%s5624_s8 + $0x3b8] sm:$0xff] %vm2593_vm1, %v2567_v55 }
 0x95a   :  { %v2569_v6 = vpop.f32.mrf.mxu3 }
 0x95b   :  { %v2570_v35 = vadd.f32 %v5360_v10, %v2569_v6 }
 0x95d   :  { %2714 = vst.msk [vmem:[%s5624_s8 + $0x3c0] sm:$0xff] %vm2593_vm1, %v2570_v35 }
 0x962   :  { %v2572_v59 = vpop.f32.mrf.mxu3 }
 0x963   :  { %v2573_v27 = vadd.f32 %v5360_v10, %v2572_v59 }
 0x965   :  { %2715 = vst.msk [vmem:[%s5624_s8 + $0x3c8] sm:$0xff] %vm2593_vm1, %v2573_v27 }
 0x96a   :  { %v2575_v42 = vpop.f32.mrf.mxu3 }
 0x96b   :  { %v2576_v63 = vadd.f32 %v5360_v10, %v2575_v42 }
 0x96d   :  { %2716 = vst.msk [vmem:[%s5624_s8 + $0x3d0] sm:$0xff] %vm2593_vm1, %v2576_v63 }
 0x972   :  { %v2578_v8 = vpop.f32.mrf.mxu3 }
 0x973   :  { %v2579_v43 = vadd.f32 %v5360_v10, %v2578_v8 }
 0x975   :  { %2717 = vst.msk [vmem:[%s5624_s8 + $0x3d8] sm:$0xff] %vm2593_vm1, %v2579_v43 }
 0x97a   :  { %v2581_v9 = vpop.f32.mrf.mxu3 }
 0x97b   :  { %v2582_v5 = vadd.f32 %v5360_v10, %v2581_v9 }
 0x97d   :  { %2718 = vst.msk [vmem:[%s5624_s8 + $0x3e0] sm:$0xff] %vm2593_vm1, %v2582_v5 }
 0x982   :  { %v2584_v46 = vpop.f32.mrf.mxu3 }
 0x983   :  { %v2585_v44 = vadd.f32 %v5360_v10, %v2584_v46 }
 0x985   :  { %2719 = vst.msk [vmem:[%s5624_s8 + $0x3e8] sm:$0xff] %vm2593_vm1, %v2585_v44 }
 0x98a   :  { %v2587_v4 = vpop.f32.mrf.mxu3 }
 0x98b   :  { %v2588_v25 = vadd.f32 %v5360_v10, %v2587_v4 }
 0x98d   :  { %2720 = vst.msk [vmem:[%s5624_s8 + $0x3f0] sm:$0xff] %vm2593_vm1, %v2588_v25 }
 0x992   :  { %v2590_v40 = vpop.f32.mrf.mxu3 }
 0x993   :  { %v2591_v13 = vadd.f32 %v5360_v10, %v2590_v40 }
 0x995   :  { %2721 = vst.msk [vmem:[%s5624_s8 + $0x3f8] sm:$0xff] %vm2593_vm1, %v2591_v13 }

</bundles_post_ra>
